<compile_context>
chip_gen: v7x
topology: tpu7x:2x2x1
jax: 0.10.0
libtpu: 0.0.40
codegen_flags: <defaults>
</compile_context>

<pallas_src>
import jax
import jax.numpy as jnp
from jax.experimental import pallas as pl
from jax.experimental.pallas import tpu as pltpu

# ----- "args" (hyperparameters), small but structurally faithful -------------
INPUT_SIZE = 49                    # args.in_size  -> time_window = 784 // 49 = 16
OUTPUT_SIZE = 10                   # args.out_size
CFG_FC = (64, 96, 128)             # args.fc
SKIP_LENGTH = (2, 3, 4)            # args.skip_length  ("grp_234")
SUB_FC = tuple(c // s for c, s in zip(CFG_FC, SKIP_LENGTH))  # (32, 32, 32)
THRESH = 0.5                       # args.thresh
DECAY = 0.2                        # args.decay
TIME_WINDOW = 784 // INPUT_SIZE    # 16  (> 12, exercises all branches)

IN_K = 64          # fc1 contraction: 49 real features padded to 64 (NOT 128)
H = SUB_FC[0]      # 32 — hidden sub-layer width, used unpadded as matmul K/N
OUT_PAD = 128      # readout lanes padded 10 -> 128: single lane-dense store

# Group cycling exactly as in the PyTorch forward's step%12 if/elif chain.
FC1_ORDER = ("in1", "in2")                                      # index = step % 2
FC2_ORDER = ("11", "22", "13", "21", "12", "23")                # index = step % 6
FC3_ORDER = ("111", "222", "133", "214", "121", "232",
             "113", "224", "131", "212", "123", "234")          # index = step % 12

# Per-step (fc1, fc2, fc3) sub-layer names, copied 1:1 from the torch forward.
SCHEDULE = [
    ("in1", "11", "111"), ("in2", "22", "222"), ("in1", "13", "133"),
    ("in2", "21", "214"), ("in1", "12", "121"), ("in2", "23", "232"),
    ("in1", "11", "113"), ("in2", "22", "224"), ("in1", "13", "131"),
    ("in2", "21", "212"), ("in1", "12", "123"), ("in2", "23", "234"),
]


# --------------------------------- kernel ------------------------------------
def _snn_kernel(x_ref, w1_ref, b1_ref, w2_ref, b2_ref, w3_ref, b3_ref,
                w4_ref, b4m_ref, out_ref):
    bt = out_ref.shape[0]

    # per-group membrane (f32) / spike (bf16, exactly 0/1) state at natural width
    mem1 = [jnp.zeros((bt, H), jnp.float32) for _ in range(2)]
    spk1 = [jnp.zeros((bt, H), jnp.bfloat16) for _ in range(2)]
    mem2 = [jnp.zeros((bt, H), jnp.float32) for _ in range(6)]
    spk2 = [jnp.zeros((bt, H), jnp.bfloat16) for _ in range(6)]
    mem3 = [jnp.zeros((bt, H), jnp.float32) for _ in range(12)]
    spk3 = [jnp.zeros((bt, H), jnp.bfloat16) for _ in range(12)]
    acc = jnp.zeros((bt, OUT_PAD), jnp.float32)

    # hoist small grid-invariant loads out of the unrolled time loop
    w1 = [w1_ref[g] for g in range(2)]          # each used 8x
    b1 = [b1_ref[g] for g in range(2)]
    b2 = [b2_ref[g] for g in range(6)]
    b3 = [b3_ref[g] for g in range(12)]

    def lif(lhs_bf16, w_bf16, b_f32, m_prev, s_prev):
        # pre-activation: bf16 x bf16 on the MXU, f32 accumulation
        pre = jnp.dot(lhs_bf16, w_bf16, preferred_element_type=jnp.float32) + b_f32
        # LIF elementwise math in f32; spikes are exactly 0/1 so the cast is exact
        m = m_prev * (DECAY * (1.0 - s_prev.astype(jnp.float32))) + pre
        s = (m > THRESH).astype(jnp.bfloat16)   # bf16: feeds the next matmul directly
        return m, s

    # Fully unrolled time loop: all group indices & ref slices are static.
    for step in range(TIME_WINDOW):
        i1 = step % 2
        i2 = step % 6
        i3 = step % 12
        x = x_ref[step]                                       # (bt, IN_K) bf16, contiguous
        mem1[i1], spk1[i1] = lif(x, w1[i1], b1[i1], mem1[i1], spk1[i1])
        mem2[i2], spk2[i2] = lif(spk1[i1], w2_ref[i2], b2[i2], mem2[i2], spk2[i2])
        mem3[i3], spk3[i3] = lif(spk2[i2], w3_ref[i3], b3[i3], mem3[i3], spk3[i3])
        acc = acc + jnp.dot(spk3[i3], w4_ref[i3], preferred_element_type=jnp.float32)

    # readout biases for the 16 scheduled steps were summed on the host (b4m)
    out_ref[...] = acc * (1.0 / TIME_WINDOW) + b4m_ref[...]


# ------------------------------ host wrapper ---------------------------------
def _round_up(v, m):
    return ((v + m - 1) // m) * m


def _pad_to(a, shape):
    return jnp.pad(a, [(0, t - s) for s, t in zip(a.shape, shape)])


def _stack_layer(params, prefix, order, k_pad, n_pad):
    """Stack per-group (w, b): weights -> padded bf16 (G,K,N), biases -> f32 (G,1,N)."""
    ws, bs = [], []
    for g in order:
        w, b = params[prefix + g]
        ws.append(_pad_to(w.astype(jnp.float32), (k_pad, n_pad)))
        bs.append(_pad_to(b.astype(jnp.float32)[None, :], (1, n_pad)))
    return jnp.stack(ws).astype(jnp.bfloat16), jnp.stack(bs)


def ffsnn_grp_234_forward(x, params):
    """Pallas forward pass. x: (N, 1, 28, 28) (any shape with N*784 elements)."""
    N = x.shape[0]
    xr = x.reshape(N, INPUT_SIZE, TIME_WINDOW).astype(jnp.float32)   # torch .view(N, in, -1)
    x_t = jnp.transpose(xr, (2, 0, 1))                               # (T, N, input_size)

    # Batch tiling: 256-row tiles amortize grid overhead and keep >=2 "parallel"
    # tiles at production batch sizes (v7x megacore); sublane-aligned (mult. of 8).
    bt = min(max(8, _round_up(N, 8)), 256)
    n_tiles = -(-N // bt)
    n_pad = n_tiles * bt
    x_t = jnp.pad(x_t, ((0, 0), (0, n_pad - N), (0, IN_K - INPUT_SIZE)))
    # pre-tile to (n_tiles, T, bt, IN_K): one contiguous DMA per grid step and a
    # contiguous (bt, IN_K) slab per time step inside the kernel
    x_tiled = jnp.transpose(x_t.reshape(TIME_WINDOW, n_tiles, bt, IN_K),
                            (1, 0, 2, 3)).astype(jnp.bfloat16)

    w1, b1 = _stack_layer(params, "fc1_", FC1_ORDER, IN_K, H)
    w2, b2 = _stack_layer(params, "fc2_", FC2_ORDER, H, H)
    w3, b3 = _stack_layer(params, "fc3_", FC3_ORDER, H, H)
    w4, _ = _stack_layer(params, "fc4_", tuple(g + "o" for g in FC3_ORDER), H, OUT_PAD)
    # fold the readout bias: sum over the 16 scheduled steps, applied once in-kernel
    b4_sum = sum(params["fc4_" + FC3_ORDER[s % 12] + "o"][1].astype(jnp.float32)
                 for s in range(TIME_WINDOW))
    b4_mean = _pad_to((b4_sum / TIME_WINDOW)[None, :], (1, OUT_PAD))

    const3 = lambda b: (0, 0, 0)
    const2 = lambda b: (0, 0)

    out = pl.pallas_call(
        _snn_kernel,
        out_shape=jax.ShapeDtypeStruct((n_pad, OUT_PAD), jnp.float32),
        grid_spec=pltpu.PrefetchScalarGridSpec(
            num_scalar_prefetch=0,
            grid=(n_tiles,),
            in_specs=[
                pl.BlockSpec((None, TIME_WINDOW, bt, IN_K), lambda b: (b, 0, 0, 0)),
                pl.BlockSpec(w1.shape, const3),
                pl.BlockSpec(b1.shape, const3),
                pl.BlockSpec(w2.shape, const3),
                pl.BlockSpec(b2.shape, const3),
                pl.BlockSpec(w3.shape, const3),
                pl.BlockSpec(b3.shape, const3),
                pl.BlockSpec(w4.shape, const3),
                pl.BlockSpec(b4_mean.shape, const2),
            ],
            out_specs=pl.BlockSpec((bt, OUT_PAD), lambda b: (b, 0)),
        ),
        compiler_params=pltpu.CompilerParams(
            dimension_semantics=("parallel",),      # batch tiles are independent
            vmem_limit_bytes=32 * 1024 * 1024),
    )(x_tiled, w1, b1, w2, b2, w3, b3, w4, b4_mean)

    # strip batch / lane padding
    return out[:N, :OUTPUT_SIZE], None


# ------------------------- parameter construction ---------------------------
def _linear_init(key, fan_in, fan_out):
    """PyTorch nn.Linear default init: U(-1/sqrt(fan_in), 1/sqrt(fan_in)).

    Weights are round-tripped through bf16 so the kernel's bf16 weight cast is
    lossless and the f32 reference uses the exact same effective parameters."""
    kw, kb = jax.random.split(key)
    bound = 1.0 / float(fan_in) ** 0.5
    w = jax.random.uniform(kw, (fan_in, fan_out), jnp.float32, -bound, bound)
    b = jax.random.uniform(kb, (fan_out,), jnp.float32, -bound, bound)
    w = w.astype(jnp.bfloat16).astype(jnp.float32)
    return w, b


def make_params(key):
    names = ([("fc1_" + g, INPUT_SIZE, SUB_FC[0]) for g in FC1_ORDER]
             + [("fc2_" + g, SUB_FC[0], SUB_FC[1]) for g in FC2_ORDER]
             + [("fc3_" + g, SUB_FC[1], SUB_FC[2]) for g in FC3_ORDER]
             + [("fc4_" + g + "o", SUB_FC[2], OUTPUT_SIZE) for g in FC3_ORDER])
    keys = jax.random.split(key, len(names))
    return {name: _linear_init(k, fi, fo) for (name, fi, fo), k in zip(names, keys)}


# --------------------------- pure-JAX reference ------------------------------
# Mirrors the PyTorch forward step-by-step (named per-sub-layer states and the
# explicit step%12 schedule), independently of the kernel's stacked layout.
# TODO(synk): ActFun's surrogate-gradient backward (custom VJP) is not needed
# for the forward pass and is not implemented.
def ffsnn_reference(x, params):
    N = x.shape[0]
    xr = x.reshape(N, INPUT_SIZE, TIME_WINDOW).astype(jnp.float32)
    mem1 = {g: jnp.zeros((N, SUB_FC[0]), jnp.float32) for g in FC1_ORDER}
    spk1 = {g: jnp.zeros((N, SUB_FC[0]), jnp.float32) for g in FC1_ORDER}
    mem2 = {g: jnp.zeros((N, SUB_FC[1]), jnp.float32) for g in FC2_ORDER}
    spk2 = {g: jnp.zeros((N, SUB_FC[1]), jnp.float32) for g in FC2_ORDER}
    mem3 = {g: jnp.zeros((N, SUB_FC[2]), jnp.float32) for g in FC3_ORDER}
    spk3 = {g: jnp.zeros((N, SUB_FC[2]), jnp.float32) for g in FC3_ORDER}
    out_sum = jnp.zeros((N, OUTPUT_SIZE), jnp.float32)

    def mem_update(name, x_in, m, s):
        w, b = params[name]
        m = m * DECAY * (1.0 - s) + x_in @ w + b
        s = (m > THRESH).astype(jnp.float32)
        return m, s

    for step in range(TIME_WINDOW):
        g1, g2, g3 = SCHEDULE[step % 12]
        xi = xr[:, :, step]
        mem1[g1], spk1[g1] = mem_update("fc1_" + g1, xi, mem1[g1], spk1[g1])
        mem2[g2], spk2[g2] = mem_update("fc2_" + g2, spk1[g1], mem2[g2], spk2[g2])
        mem3[g3], spk3[g3] = mem_update("fc3_" + g3, spk2[g2], mem3[g3], spk3[g3])
        w4, b4 = params["fc4_" + g3 + "o"]
        out_sum = out_sum + spk3[g3] @ w4 + b4
    return out_sum / TIME_WINDOW


# ---------------------------------- main -------------------------------------
if __name__ == "__main__":
    key = jax.random.PRNGKey(0)
    k_x, k_p = jax.random.split(key)

    N = 2
    x = jax.random.uniform(k_x, (N, 1, 28, 28), jnp.float32)   # PS-MNIST-like input
    # make the test input bf16-representable so the kernel's bf16 cast is lossless
    x = x.astype(jnp.bfloat16).astype(jnp.float32)
    params = make_params(k_p)

    out, _ = jax.jit(ffsnn_grp_234_forward)(x, params)
    out = jax.block_until_ready(out)

    ref = ffsnn_reference(x, params)
    if out.shape != ref.shape:
        raise SystemExit(f"shape mismatch: {out.shape} vs {ref.shape}")
    if not jnp.allclose(out, ref, atol=5e-2, rtol=5e-2):
        raise SystemExit("mismatch vs reference: max abs diff = "
                         f"{float(jnp.max(jnp.abs(out - ref)))}")

    print("KERNEL_OK")
</pallas_src>

<mosaic_0001>
module attributes {stable_mosaic.version = 11 : i64} {
  func.func @_snn_kernel(%arg0: i32, %arg1: memref<1x16x8x64xbf16, #tpu.memory_space<vmem>>, %arg2: memref<2x64x32xbf16, #tpu.memory_space<vmem>>, %arg3: memref<2x1x32xf32, #tpu.memory_space<vmem>>, %arg4: memref<6x32x32xbf16, #tpu.memory_space<vmem>>, %arg5: memref<6x1x32xf32, #tpu.memory_space<vmem>>, %arg6: memref<12x32x32xbf16, #tpu.memory_space<vmem>>, %arg7: memref<12x1x32xf32, #tpu.memory_space<vmem>>, %arg8: memref<12x32x128xbf16, #tpu.memory_space<vmem>>, %arg9: memref<1x128xf32, #tpu.memory_space<vmem>>, %arg10: memref<8x128xf32, #tpu.memory_space<vmem>>) attributes {dimension_semantics = [#tpu.dimension_semantics<parallel>], iteration_bounds = array<i64: 1>, scalar_prefetch = 0 : i64, scratch_operands = 0 : i64, tpu.core_type = #tpu.core_type<tc>, window_params = [{transform_indices = @transform_0, window_bounds = array<i64: 1, 16, 8, 64>}, {pipeline_mode = #tpu.pipeline_mode<synchronous>, transform_indices = @transform_1, window_bounds = array<i64: 2, 64, 32>}, {pipeline_mode = #tpu.pipeline_mode<synchronous>, transform_indices = @transform_2, window_bounds = array<i64: 2, 1, 32>}, {pipeline_mode = #tpu.pipeline_mode<synchronous>, transform_indices = @transform_3, window_bounds = array<i64: 6, 32, 32>}, {pipeline_mode = #tpu.pipeline_mode<synchronous>, transform_indices = @transform_4, window_bounds = array<i64: 6, 1, 32>}, {pipeline_mode = #tpu.pipeline_mode<synchronous>, transform_indices = @transform_5, window_bounds = array<i64: 12, 32, 32>}, {pipeline_mode = #tpu.pipeline_mode<synchronous>, transform_indices = @transform_6, window_bounds = array<i64: 12, 1, 32>}, {pipeline_mode = #tpu.pipeline_mode<synchronous>, transform_indices = @transform_7, window_bounds = array<i64: 12, 32, 128>}, {pipeline_mode = #tpu.pipeline_mode<synchronous>, transform_indices = @transform_8, window_bounds = array<i64: 1, 128>}, {transform_indices = @transform_9, window_bounds = array<i64: 8, 128>}]} {
    %cst = arith.constant 0.000000e+00 : f32
    %0 = vector.broadcast %cst : f32 to vector<8x32xf32>
    %cst_0 = arith.constant 0.000000e+00 : f32
    %1 = vector.broadcast %cst_0 : f32 to vector<8x32xf32>
    %cst_1 = arith.constant 0.000000e+00 : bf16
    %2 = vector.broadcast %cst_1 : bf16 to vector<8x32xbf16>
    %cst_2 = arith.constant 0.000000e+00 : bf16
    %3 = vector.broadcast %cst_2 : bf16 to vector<8x32xbf16>
    %cst_3 = arith.constant 0.000000e+00 : f32
    %4 = vector.broadcast %cst_3 : f32 to vector<8x32xf32>
    %cst_4 = arith.constant 0.000000e+00 : f32
    %5 = vector.broadcast %cst_4 : f32 to vector<8x32xf32>
    %cst_5 = arith.constant 0.000000e+00 : f32
    %6 = vector.broadcast %cst_5 : f32 to vector<8x32xf32>
    %cst_6 = arith.constant 0.000000e+00 : f32
    %7 = vector.broadcast %cst_6 : f32 to vector<8x32xf32>
    %cst_7 = arith.constant 0.000000e+00 : f32
    %8 = vector.broadcast %cst_7 : f32 to vector<8x32xf32>
    %cst_8 = arith.constant 0.000000e+00 : f32
    %9 = vector.broadcast %cst_8 : f32 to vector<8x32xf32>
    %cst_9 = arith.constant 0.000000e+00 : bf16
    %10 = vector.broadcast %cst_9 : bf16 to vector<8x32xbf16>
    %cst_10 = arith.constant 0.000000e+00 : bf16
    %11 = vector.broadcast %cst_10 : bf16 to vector<8x32xbf16>
    %cst_11 = arith.constant 0.000000e+00 : bf16
    %12 = vector.broadcast %cst_11 : bf16 to vector<8x32xbf16>
    %cst_12 = arith.constant 0.000000e+00 : bf16
    %13 = vector.broadcast %cst_12 : bf16 to vector<8x32xbf16>
    %cst_13 = arith.constant 0.000000e+00 : bf16
    %14 = vector.broadcast %cst_13 : bf16 to vector<8x32xbf16>
    %cst_14 = arith.constant 0.000000e+00 : bf16
    %15 = vector.broadcast %cst_14 : bf16 to vector<8x32xbf16>
    %cst_15 = arith.constant 0.000000e+00 : f32
    %16 = vector.broadcast %cst_15 : f32 to vector<8x32xf32>
    %cst_16 = arith.constant 0.000000e+00 : f32
    %17 = vector.broadcast %cst_16 : f32 to vector<8x32xf32>
    %cst_17 = arith.constant 0.000000e+00 : f32
    %18 = vector.broadcast %cst_17 : f32 to vector<8x32xf32>
    %cst_18 = arith.constant 0.000000e+00 : f32
    %19 = vector.broadcast %cst_18 : f32 to vector<8x32xf32>
    %cst_19 = arith.constant 0.000000e+00 : f32
    %20 = vector.broadcast %cst_19 : f32 to vector<8x32xf32>
    %cst_20 = arith.constant 0.000000e+00 : f32
    %21 = vector.broadcast %cst_20 : f32 to vector<8x32xf32>
    %cst_21 = arith.constant 0.000000e+00 : f32
    %22 = vector.broadcast %cst_21 : f32 to vector<8x32xf32>
    %cst_22 = arith.constant 0.000000e+00 : f32
    %23 = vector.broadcast %cst_22 : f32 to vector<8x32xf32>
    %cst_23 = arith.constant 0.000000e+00 : f32
    %24 = vector.broadcast %cst_23 : f32 to vector<8x32xf32>
    %cst_24 = arith.constant 0.000000e+00 : f32
    %25 = vector.broadcast %cst_24 : f32 to vector<8x32xf32>
    %cst_25 = arith.constant 0.000000e+00 : f32
    %26 = vector.broadcast %cst_25 : f32 to vector<8x32xf32>
    %cst_26 = arith.constant 0.000000e+00 : f32
    %27 = vector.broadcast %cst_26 : f32 to vector<8x32xf32>
    %cst_27 = arith.constant 0.000000e+00 : bf16
    %28 = vector.broadcast %cst_27 : bf16 to vector<8x32xbf16>
    %cst_28 = arith.constant 0.000000e+00 : bf16
    %29 = vector.broadcast %cst_28 : bf16 to vector<8x32xbf16>
    %cst_29 = arith.constant 0.000000e+00 : bf16
    %30 = vector.broadcast %cst_29 : bf16 to vector<8x32xbf16>
    %cst_30 = arith.constant 0.000000e+00 : bf16
    %31 = vector.broadcast %cst_30 : bf16 to vector<8x32xbf16>
    %cst_31 = arith.constant 0.000000e+00 : bf16
    %32 = vector.broadcast %cst_31 : bf16 to vector<8x32xbf16>
    %cst_32 = arith.constant 0.000000e+00 : bf16
    %33 = vector.broadcast %cst_32 : bf16 to vector<8x32xbf16>
    %cst_33 = arith.constant 0.000000e+00 : bf16
    %34 = vector.broadcast %cst_33 : bf16 to vector<8x32xbf16>
    %cst_34 = arith.constant 0.000000e+00 : bf16
    %35 = vector.broadcast %cst_34 : bf16 to vector<8x32xbf16>
    %cst_35 = arith.constant 0.000000e+00 : bf16
    %36 = vector.broadcast %cst_35 : bf16 to vector<8x32xbf16>
    %cst_36 = arith.constant 0.000000e+00 : bf16
    %37 = vector.broadcast %cst_36 : bf16 to vector<8x32xbf16>
    %cst_37 = arith.constant 0.000000e+00 : bf16
    %38 = vector.broadcast %cst_37 : bf16 to vector<8x32xbf16>
    %cst_38 = arith.constant 0.000000e+00 : bf16
    %39 = vector.broadcast %cst_38 : bf16 to vector<8x32xbf16>
    %cst_39 = arith.constant 0.000000e+00 : f32
    %40 = vector.broadcast %cst_39 : f32 to vector<8x128xf32>
    %c0 = arith.constant 0 : index
    %c0_40 = arith.constant 0 : index
    %c0_41 = arith.constant 0 : index
    %41 = vector.load %arg2[%c0, %c0_40, %c0_41] : memref<2x64x32xbf16, #tpu.memory_space<vmem>>, vector<1x64x32xbf16>
    %42 = vector.shape_cast %41 : vector<1x64x32xbf16> to vector<64x32xbf16>
    %c1 = arith.constant 1 : index
    %c0_42 = arith.constant 0 : index
    %c0_43 = arith.constant 0 : index
    %43 = vector.load %arg2[%c1, %c0_42, %c0_43] : memref<2x64x32xbf16, #tpu.memory_space<vmem>>, vector<1x64x32xbf16>
    %44 = vector.shape_cast %43 : vector<1x64x32xbf16> to vector<64x32xbf16>
    %c0_44 = arith.constant 0 : index
    %c0_45 = arith.constant 0 : index
    %c0_46 = arith.constant 0 : index
    %45 = vector.load %arg3[%c0_44, %c0_45, %c0_46] : memref<2x1x32xf32, #tpu.memory_space<vmem>>, vector<1x1x32xf32>
    %46 = vector.shape_cast %45 : vector<1x1x32xf32> to vector<1x32xf32>
    %c1_47 = arith.constant 1 : index
    %c0_48 = arith.constant 0 : index
    %c0_49 = arith.constant 0 : index
    %47 = vector.load %arg3[%c1_47, %c0_48, %c0_49] : memref<2x1x32xf32, #tpu.memory_space<vmem>>, vector<1x1x32xf32>
    %48 = vector.shape_cast %47 : vector<1x1x32xf32> to vector<1x32xf32>
    %c0_50 = arith.constant 0 : index
    %c0_51 = arith.constant 0 : index
    %c0_52 = arith.constant 0 : index
    %49 = vector.load %arg5[%c0_50, %c0_51, %c0_52] : memref<6x1x32xf32, #tpu.memory_space<vmem>>, vector<1x1x32xf32>
    %50 = vector.shape_cast %49 : vector<1x1x32xf32> to vector<1x32xf32>
    %c1_53 = arith.constant 1 : index
    %c0_54 = arith.constant 0 : index
    %c0_55 = arith.constant 0 : index
    %51 = vector.load %arg5[%c1_53, %c0_54, %c0_55] : memref<6x1x32xf32, #tpu.memory_space<vmem>>, vector<1x1x32xf32>
    %52 = vector.shape_cast %51 : vector<1x1x32xf32> to vector<1x32xf32>
    %c2 = arith.constant 2 : index
    %c0_56 = arith.constant 0 : index
    %c0_57 = arith.constant 0 : index
    %53 = vector.load %arg5[%c2, %c0_56, %c0_57] : memref<6x1x32xf32, #tpu.memory_space<vmem>>, vector<1x1x32xf32>
    %54 = vector.shape_cast %53 : vector<1x1x32xf32> to vector<1x32xf32>
    %c3 = arith.constant 3 : index
    %c0_58 = arith.constant 0 : index
    %c0_59 = arith.constant 0 : index
    %55 = vector.load %arg5[%c3, %c0_58, %c0_59] : memref<6x1x32xf32, #tpu.memory_space<vmem>>, vector<1x1x32xf32>
    %56 = vector.shape_cast %55 : vector<1x1x32xf32> to vector<1x32xf32>
    %c4 = arith.constant 4 : index
    %c0_60 = arith.constant 0 : index
    %c0_61 = arith.constant 0 : index
    %57 = vector.load %arg5[%c4, %c0_60, %c0_61] : memref<6x1x32xf32, #tpu.memory_space<vmem>>, vector<1x1x32xf32>
    %58 = vector.shape_cast %57 : vector<1x1x32xf32> to vector<1x32xf32>
    %c5 = arith.constant 5 : index
    %c0_62 = arith.constant 0 : index
    %c0_63 = arith.constant 0 : index
    %59 = vector.load %arg5[%c5, %c0_62, %c0_63] : memref<6x1x32xf32, #tpu.memory_space<vmem>>, vector<1x1x32xf32>
    %60 = vector.shape_cast %59 : vector<1x1x32xf32> to vector<1x32xf32>
    %c0_64 = arith.constant 0 : index
    %c0_65 = arith.constant 0 : index
    %c0_66 = arith.constant 0 : index
    %61 = vector.load %arg7[%c0_64, %c0_65, %c0_66] : memref<12x1x32xf32, #tpu.memory_space<vmem>>, vector<1x1x32xf32>
    %62 = vector.shape_cast %61 : vector<1x1x32xf32> to vector<1x32xf32>
    %c1_67 = arith.constant 1 : index
    %c0_68 = arith.constant 0 : index
    %c0_69 = arith.constant 0 : index
    %63 = vector.load %arg7[%c1_67, %c0_68, %c0_69] : memref<12x1x32xf32, #tpu.memory_space<vmem>>, vector<1x1x32xf32>
    %64 = vector.shape_cast %63 : vector<1x1x32xf32> to vector<1x32xf32>
    %c2_70 = arith.constant 2 : index
    %c0_71 = arith.constant 0 : index
    %c0_72 = arith.constant 0 : index
    %65 = vector.load %arg7[%c2_70, %c0_71, %c0_72] : memref<12x1x32xf32, #tpu.memory_space<vmem>>, vector<1x1x32xf32>
    %66 = vector.shape_cast %65 : vector<1x1x32xf32> to vector<1x32xf32>
    %c3_73 = arith.constant 3 : index
    %c0_74 = arith.constant 0 : index
    %c0_75 = arith.constant 0 : index
    %67 = vector.load %arg7[%c3_73, %c0_74, %c0_75] : memref<12x1x32xf32, #tpu.memory_space<vmem>>, vector<1x1x32xf32>
    %68 = vector.shape_cast %67 : vector<1x1x32xf32> to vector<1x32xf32>
    %c4_76 = arith.constant 4 : index
    %c0_77 = arith.constant 0 : index
    %c0_78 = arith.constant 0 : index
    %69 = vector.load %arg7[%c4_76, %c0_77, %c0_78] : memref<12x1x32xf32, #tpu.memory_space<vmem>>, vector<1x1x32xf32>
    %70 = vector.shape_cast %69 : vector<1x1x32xf32> to vector<1x32xf32>
    %c5_79 = arith.constant 5 : index
    %c0_80 = arith.constant 0 : index
    %c0_81 = arith.constant 0 : index
    %71 = vector.load %arg7[%c5_79, %c0_80, %c0_81] : memref<12x1x32xf32, #tpu.memory_space<vmem>>, vector<1x1x32xf32>
    %72 = vector.shape_cast %71 : vector<1x1x32xf32> to vector<1x32xf32>
    %c6 = arith.constant 6 : index
    %c0_82 = arith.constant 0 : index
    %c0_83 = arith.constant 0 : index
    %73 = vector.load %arg7[%c6, %c0_82, %c0_83] : memref<12x1x32xf32, #tpu.memory_space<vmem>>, vector<1x1x32xf32>
    %74 = vector.shape_cast %73 : vector<1x1x32xf32> to vector<1x32xf32>
    %c7 = arith.constant 7 : index
    %c0_84 = arith.constant 0 : index
    %c0_85 = arith.constant 0 : index
    %75 = vector.load %arg7[%c7, %c0_84, %c0_85] : memref<12x1x32xf32, #tpu.memory_space<vmem>>, vector<1x1x32xf32>
    %76 = vector.shape_cast %75 : vector<1x1x32xf32> to vector<1x32xf32>
    %c8 = arith.constant 8 : index
    %c0_86 = arith.constant 0 : index
    %c0_87 = arith.constant 0 : index
    %77 = vector.load %arg7[%c8, %c0_86, %c0_87] : memref<12x1x32xf32, #tpu.memory_space<vmem>>, vector<1x1x32xf32>
    %78 = vector.shape_cast %77 : vector<1x1x32xf32> to vector<1x32xf32>
    %c9 = arith.constant 9 : index
    %c0_88 = arith.constant 0 : index
    %c0_89 = arith.constant 0 : index
    %79 = vector.load %arg7[%c9, %c0_88, %c0_89] : memref<12x1x32xf32, #tpu.memory_space<vmem>>, vector<1x1x32xf32>
    %80 = vector.shape_cast %79 : vector<1x1x32xf32> to vector<1x32xf32>
    %c10 = arith.constant 10 : index
    %c0_90 = arith.constant 0 : index
    %c0_91 = arith.constant 0 : index
    %81 = vector.load %arg7[%c10, %c0_90, %c0_91] : memref<12x1x32xf32, #tpu.memory_space<vmem>>, vector<1x1x32xf32>
    %82 = vector.shape_cast %81 : vector<1x1x32xf32> to vector<1x32xf32>
    %c11 = arith.constant 11 : index
    %c0_92 = arith.constant 0 : index
    %c0_93 = arith.constant 0 : index
    %83 = vector.load %arg7[%c11, %c0_92, %c0_93] : memref<12x1x32xf32, #tpu.memory_space<vmem>>, vector<1x1x32xf32>
    %84 = vector.shape_cast %83 : vector<1x1x32xf32> to vector<1x32xf32>
    %c0_94 = arith.constant 0 : index
    %c0_95 = arith.constant 0 : index
    %c0_96 = arith.constant 0 : index
    %c0_97 = arith.constant 0 : index
    %85 = vector.load %arg1[%c0_94, %c0_95, %c0_96, %c0_97] : memref<1x16x8x64xbf16, #tpu.memory_space<vmem>>, vector<1x1x8x64xbf16>
    %86 = vector.shape_cast %85 : vector<1x1x8x64xbf16> to vector<8x64xbf16>
    %cst_98 = arith.constant dense<0.000000e+00> : vector<8x32xf32>
    %87 = tpu.matmul %86, %42, %cst_98 {dimension_numbers = #tpu.dot_dimension_numbers<[1], [0], [0], [1], [0, 0, 1, 1], [], []>} : vector<8x64xbf16>, vector<64x32xbf16>, vector<8x32xf32> -> vector<8x32xf32>
    %88 = vector.broadcast %46 : vector<1x32xf32> to vector<8x32xf32>
    %89 = arith.addf %87, %88 : vector<8x32xf32>
    %90 = arith.extf %2 : vector<8x32xbf16> to vector<8x32xf32>
    %cst_99 = arith.constant 1.000000e+00 : f32
    %91 = vector.broadcast %cst_99 : f32 to vector<8x32xf32>
    %92 = arith.subf %91, %90 : vector<8x32xf32>
    %cst_100 = arith.constant 2.000000e-01 : f32
    %93 = vector.broadcast %cst_100 : f32 to vector<8x32xf32>
    %94 = arith.mulf %93, %92 : vector<8x32xf32>
    %95 = arith.mulf %0, %94 : vector<8x32xf32>
    %96 = arith.addf %95, %89 : vector<8x32xf32>
    %cst_101 = arith.constant 5.000000e-01 : f32
    %97 = vector.broadcast %cst_101 : f32 to vector<8x32xf32>
    %98 = arith.cmpf ogt, %96, %97 : vector<8x32xf32>
    %99 = arith.extui %98 : vector<8x32xi1> to vector<8x32xi32>
    %100 = arith.sitofp %99 : vector<8x32xi32> to vector<8x32xf32>
    %101 = arith.truncf %100 : vector<8x32xf32> to vector<8x32xbf16>
    %c0_102 = arith.constant 0 : index
    %c0_103 = arith.constant 0 : index
    %c0_104 = arith.constant 0 : index
    %102 = vector.load %arg4[%c0_102, %c0_103, %c0_104] : memref<6x32x32xbf16, #tpu.memory_space<vmem>>, vector<1x32x32xbf16>
    %103 = vector.shape_cast %102 : vector<1x32x32xbf16> to vector<32x32xbf16>
    %cst_105 = arith.constant dense<0.000000e+00> : vector<8x32xf32>
    %104 = tpu.matmul %101, %103, %cst_105 {dimension_numbers = #tpu.dot_dimension_numbers<[1], [0], [0], [1], [0, 0, 1, 1], [], []>} : vector<8x32xbf16>, vector<32x32xbf16>, vector<8x32xf32> -> vector<8x32xf32>
    %105 = vector.broadcast %50 : vector<1x32xf32> to vector<8x32xf32>
    %106 = arith.addf %104, %105 : vector<8x32xf32>
    %107 = arith.extf %10 : vector<8x32xbf16> to vector<8x32xf32>
    %cst_106 = arith.constant 1.000000e+00 : f32
    %108 = vector.broadcast %cst_106 : f32 to vector<8x32xf32>
    %109 = arith.subf %108, %107 : vector<8x32xf32>
    %cst_107 = arith.constant 2.000000e-01 : f32
    %110 = vector.broadcast %cst_107 : f32 to vector<8x32xf32>
    %111 = arith.mulf %110, %109 : vector<8x32xf32>
    %112 = arith.mulf %4, %111 : vector<8x32xf32>
    %113 = arith.addf %112, %106 : vector<8x32xf32>
    %cst_108 = arith.constant 5.000000e-01 : f32
    %114 = vector.broadcast %cst_108 : f32 to vector<8x32xf32>
    %115 = arith.cmpf ogt, %113, %114 : vector<8x32xf32>
    %116 = arith.extui %115 : vector<8x32xi1> to vector<8x32xi32>
    %117 = arith.sitofp %116 : vector<8x32xi32> to vector<8x32xf32>
    %118 = arith.truncf %117 : vector<8x32xf32> to vector<8x32xbf16>
    %c0_109 = arith.constant 0 : index
    %c0_110 = arith.constant 0 : index
    %c0_111 = arith.constant 0 : index
    %119 = vector.load %arg6[%c0_109, %c0_110, %c0_111] : memref<12x32x32xbf16, #tpu.memory_space<vmem>>, vector<1x32x32xbf16>
    %120 = vector.shape_cast %119 : vector<1x32x32xbf16> to vector<32x32xbf16>
    %cst_112 = arith.constant dense<0.000000e+00> : vector<8x32xf32>
    %121 = tpu.matmul %118, %120, %cst_112 {dimension_numbers = #tpu.dot_dimension_numbers<[1], [0], [0], [1], [0, 0, 1, 1], [], []>} : vector<8x32xbf16>, vector<32x32xbf16>, vector<8x32xf32> -> vector<8x32xf32>
    %122 = vector.broadcast %62 : vector<1x32xf32> to vector<8x32xf32>
    %123 = arith.addf %121, %122 : vector<8x32xf32>
    %124 = arith.extf %28 : vector<8x32xbf16> to vector<8x32xf32>
    %cst_113 = arith.constant 1.000000e+00 : f32
    %125 = vector.broadcast %cst_113 : f32 to vector<8x32xf32>
    %126 = arith.subf %125, %124 : vector<8x32xf32>
    %cst_114 = arith.constant 2.000000e-01 : f32
    %127 = vector.broadcast %cst_114 : f32 to vector<8x32xf32>
    %128 = arith.mulf %127, %126 : vector<8x32xf32>
    %129 = arith.mulf %16, %128 : vector<8x32xf32>
    %130 = arith.addf %129, %123 : vector<8x32xf32>
    %cst_115 = arith.constant 5.000000e-01 : f32
    %131 = vector.broadcast %cst_115 : f32 to vector<8x32xf32>
    %132 = arith.cmpf ogt, %130, %131 : vector<8x32xf32>
    %133 = arith.extui %132 : vector<8x32xi1> to vector<8x32xi32>
    %134 = arith.sitofp %133 : vector<8x32xi32> to vector<8x32xf32>
    %135 = arith.truncf %134 : vector<8x32xf32> to vector<8x32xbf16>
    %c0_116 = arith.constant 0 : index
    %c0_117 = arith.constant 0 : index
    %c0_118 = arith.constant 0 : index
    %136 = vector.load %arg8[%c0_116, %c0_117, %c0_118] : memref<12x32x128xbf16, #tpu.memory_space<vmem>>, vector<1x32x128xbf16>
    %137 = vector.shape_cast %136 : vector<1x32x128xbf16> to vector<32x128xbf16>
    %cst_119 = arith.constant dense<0.000000e+00> : vector<8x128xf32>
    %138 = tpu.matmul %135, %137, %cst_119 {dimension_numbers = #tpu.dot_dimension_numbers<[1], [0], [0], [1], [0, 0, 1, 1], [], []>} : vector<8x32xbf16>, vector<32x128xbf16>, vector<8x128xf32> -> vector<8x128xf32>
    %139 = arith.addf %40, %138 : vector<8x128xf32>
    %c0_120 = arith.constant 0 : index
    %c1_121 = arith.constant 1 : index
    %c0_122 = arith.constant 0 : index
    %c0_123 = arith.constant 0 : index
    %140 = vector.load %arg1[%c0_120, %c1_121, %c0_122, %c0_123] : memref<1x16x8x64xbf16, #tpu.memory_space<vmem>>, vector<1x1x8x64xbf16>
    %141 = vector.shape_cast %140 : vector<1x1x8x64xbf16> to vector<8x64xbf16>
    %cst_124 = arith.constant dense<0.000000e+00> : vector<8x32xf32>
    %142 = tpu.matmul %141, %44, %cst_124 {dimension_numbers = #tpu.dot_dimension_numbers<[1], [0], [0], [1], [0, 0, 1, 1], [], []>} : vector<8x64xbf16>, vector<64x32xbf16>, vector<8x32xf32> -> vector<8x32xf32>
    %143 = vector.broadcast %48 : vector<1x32xf32> to vector<8x32xf32>
    %144 = arith.addf %142, %143 : vector<8x32xf32>
    %145 = arith.extf %3 : vector<8x32xbf16> to vector<8x32xf32>
    %cst_125 = arith.constant 1.000000e+00 : f32
    %146 = vector.broadcast %cst_125 : f32 to vector<8x32xf32>
    %147 = arith.subf %146, %145 : vector<8x32xf32>
    %cst_126 = arith.constant 2.000000e-01 : f32
    %148 = vector.broadcast %cst_126 : f32 to vector<8x32xf32>
    %149 = arith.mulf %148, %147 : vector<8x32xf32>
    %150 = arith.mulf %1, %149 : vector<8x32xf32>
    %151 = arith.addf %150, %144 : vector<8x32xf32>
    %cst_127 = arith.constant 5.000000e-01 : f32
    %152 = vector.broadcast %cst_127 : f32 to vector<8x32xf32>
    %153 = arith.cmpf ogt, %151, %152 : vector<8x32xf32>
    %154 = arith.extui %153 : vector<8x32xi1> to vector<8x32xi32>
    %155 = arith.sitofp %154 : vector<8x32xi32> to vector<8x32xf32>
    %156 = arith.truncf %155 : vector<8x32xf32> to vector<8x32xbf16>
    %c1_128 = arith.constant 1 : index
    %c0_129 = arith.constant 0 : index
    %c0_130 = arith.constant 0 : index
    %157 = vector.load %arg4[%c1_128, %c0_129, %c0_130] : memref<6x32x32xbf16, #tpu.memory_space<vmem>>, vector<1x32x32xbf16>
    %158 = vector.shape_cast %157 : vector<1x32x32xbf16> to vector<32x32xbf16>
    %cst_131 = arith.constant dense<0.000000e+00> : vector<8x32xf32>
    %159 = tpu.matmul %156, %158, %cst_131 {dimension_numbers = #tpu.dot_dimension_numbers<[1], [0], [0], [1], [0, 0, 1, 1], [], []>} : vector<8x32xbf16>, vector<32x32xbf16>, vector<8x32xf32> -> vector<8x32xf32>
    %160 = vector.broadcast %52 : vector<1x32xf32> to vector<8x32xf32>
    %161 = arith.addf %159, %160 : vector<8x32xf32>
    %162 = arith.extf %11 : vector<8x32xbf16> to vector<8x32xf32>
    %cst_132 = arith.constant 1.000000e+00 : f32
    %163 = vector.broadcast %cst_132 : f32 to vector<8x32xf32>
    %164 = arith.subf %163, %162 : vector<8x32xf32>
    %cst_133 = arith.constant 2.000000e-01 : f32
    %165 = vector.broadcast %cst_133 : f32 to vector<8x32xf32>
    %166 = arith.mulf %165, %164 : vector<8x32xf32>
    %167 = arith.mulf %5, %166 : vector<8x32xf32>
    %168 = arith.addf %167, %161 : vector<8x32xf32>
    %cst_134 = arith.constant 5.000000e-01 : f32
    %169 = vector.broadcast %cst_134 : f32 to vector<8x32xf32>
    %170 = arith.cmpf ogt, %168, %169 : vector<8x32xf32>
    %171 = arith.extui %170 : vector<8x32xi1> to vector<8x32xi32>
    %172 = arith.sitofp %171 : vector<8x32xi32> to vector<8x32xf32>
    %173 = arith.truncf %172 : vector<8x32xf32> to vector<8x32xbf16>
    %c1_135 = arith.constant 1 : index
    %c0_136 = arith.constant 0 : index
    %c0_137 = arith.constant 0 : index
    %174 = vector.load %arg6[%c1_135, %c0_136, %c0_137] : memref<12x32x32xbf16, #tpu.memory_space<vmem>>, vector<1x32x32xbf16>
    %175 = vector.shape_cast %174 : vector<1x32x32xbf16> to vector<32x32xbf16>
    %cst_138 = arith.constant dense<0.000000e+00> : vector<8x32xf32>
    %176 = tpu.matmul %173, %175, %cst_138 {dimension_numbers = #tpu.dot_dimension_numbers<[1], [0], [0], [1], [0, 0, 1, 1], [], []>} : vector<8x32xbf16>, vector<32x32xbf16>, vector<8x32xf32> -> vector<8x32xf32>
    %177 = vector.broadcast %64 : vector<1x32xf32> to vector<8x32xf32>
    %178 = arith.addf %176, %177 : vector<8x32xf32>
    %179 = arith.extf %29 : vector<8x32xbf16> to vector<8x32xf32>
    %cst_139 = arith.constant 1.000000e+00 : f32
    %180 = vector.broadcast %cst_139 : f32 to vector<8x32xf32>
    %181 = arith.subf %180, %179 : vector<8x32xf32>
    %cst_140 = arith.constant 2.000000e-01 : f32
    %182 = vector.broadcast %cst_140 : f32 to vector<8x32xf32>
    %183 = arith.mulf %182, %181 : vector<8x32xf32>
    %184 = arith.mulf %17, %183 : vector<8x32xf32>
    %185 = arith.addf %184, %178 : vector<8x32xf32>
    %cst_141 = arith.constant 5.000000e-01 : f32
    %186 = vector.broadcast %cst_141 : f32 to vector<8x32xf32>
    %187 = arith.cmpf ogt, %185, %186 : vector<8x32xf32>
    %188 = arith.extui %187 : vector<8x32xi1> to vector<8x32xi32>
    %189 = arith.sitofp %188 : vector<8x32xi32> to vector<8x32xf32>
    %190 = arith.truncf %189 : vector<8x32xf32> to vector<8x32xbf16>
    %c1_142 = arith.constant 1 : index
    %c0_143 = arith.constant 0 : index
    %c0_144 = arith.constant 0 : index
    %191 = vector.load %arg8[%c1_142, %c0_143, %c0_144] : memref<12x32x128xbf16, #tpu.memory_space<vmem>>, vector<1x32x128xbf16>
    %192 = vector.shape_cast %191 : vector<1x32x128xbf16> to vector<32x128xbf16>
    %cst_145 = arith.constant dense<0.000000e+00> : vector<8x128xf32>
    %193 = tpu.matmul %190, %192, %cst_145 {dimension_numbers = #tpu.dot_dimension_numbers<[1], [0], [0], [1], [0, 0, 1, 1], [], []>} : vector<8x32xbf16>, vector<32x128xbf16>, vector<8x128xf32> -> vector<8x128xf32>
    %194 = arith.addf %139, %193 : vector<8x128xf32>
    %c0_146 = arith.constant 0 : index
    %c2_147 = arith.constant 2 : index
    %c0_148 = arith.constant 0 : index
    %c0_149 = arith.constant 0 : index
    %195 = vector.load %arg1[%c0_146, %c2_147, %c0_148, %c0_149] : memref<1x16x8x64xbf16, #tpu.memory_space<vmem>>, vector<1x1x8x64xbf16>
    %196 = vector.shape_cast %195 : vector<1x1x8x64xbf16> to vector<8x64xbf16>
    %cst_150 = arith.constant dense<0.000000e+00> : vector<8x32xf32>
    %197 = tpu.matmul %196, %42, %cst_150 {dimension_numbers = #tpu.dot_dimension_numbers<[1], [0], [0], [1], [0, 0, 1, 1], [], []>} : vector<8x64xbf16>, vector<64x32xbf16>, vector<8x32xf32> -> vector<8x32xf32>
    %198 = vector.broadcast %46 : vector<1x32xf32> to vector<8x32xf32>
    %199 = arith.addf %197, %198 : vector<8x32xf32>
    %200 = arith.extf %101 : vector<8x32xbf16> to vector<8x32xf32>
    %cst_151 = arith.constant 1.000000e+00 : f32
    %201 = vector.broadcast %cst_151 : f32 to vector<8x32xf32>
    %202 = arith.subf %201, %200 : vector<8x32xf32>
    %cst_152 = arith.constant 2.000000e-01 : f32
    %203 = vector.broadcast %cst_152 : f32 to vector<8x32xf32>
    %204 = arith.mulf %203, %202 : vector<8x32xf32>
    %205 = arith.mulf %96, %204 : vector<8x32xf32>
    %206 = arith.addf %205, %199 : vector<8x32xf32>
    %cst_153 = arith.constant 5.000000e-01 : f32
    %207 = vector.broadcast %cst_153 : f32 to vector<8x32xf32>
    %208 = arith.cmpf ogt, %206, %207 : vector<8x32xf32>
    %209 = arith.extui %208 : vector<8x32xi1> to vector<8x32xi32>
    %210 = arith.sitofp %209 : vector<8x32xi32> to vector<8x32xf32>
    %211 = arith.truncf %210 : vector<8x32xf32> to vector<8x32xbf16>
    %c2_154 = arith.constant 2 : index
    %c0_155 = arith.constant 0 : index
    %c0_156 = arith.constant 0 : index
    %212 = vector.load %arg4[%c2_154, %c0_155, %c0_156] : memref<6x32x32xbf16, #tpu.memory_space<vmem>>, vector<1x32x32xbf16>
    %213 = vector.shape_cast %212 : vector<1x32x32xbf16> to vector<32x32xbf16>
    %cst_157 = arith.constant dense<0.000000e+00> : vector<8x32xf32>
    %214 = tpu.matmul %211, %213, %cst_157 {dimension_numbers = #tpu.dot_dimension_numbers<[1], [0], [0], [1], [0, 0, 1, 1], [], []>} : vector<8x32xbf16>, vector<32x32xbf16>, vector<8x32xf32> -> vector<8x32xf32>
    %215 = vector.broadcast %54 : vector<1x32xf32> to vector<8x32xf32>
    %216 = arith.addf %214, %215 : vector<8x32xf32>
    %217 = arith.extf %12 : vector<8x32xbf16> to vector<8x32xf32>
    %cst_158 = arith.constant 1.000000e+00 : f32
    %218 = vector.broadcast %cst_158 : f32 to vector<8x32xf32>
    %219 = arith.subf %218, %217 : vector<8x32xf32>
    %cst_159 = arith.constant 2.000000e-01 : f32
    %220 = vector.broadcast %cst_159 : f32 to vector<8x32xf32>
    %221 = arith.mulf %220, %219 : vector<8x32xf32>
    %222 = arith.mulf %6, %221 : vector<8x32xf32>
    %223 = arith.addf %222, %216 : vector<8x32xf32>
    %cst_160 = arith.constant 5.000000e-01 : f32
    %224 = vector.broadcast %cst_160 : f32 to vector<8x32xf32>
    %225 = arith.cmpf ogt, %223, %224 : vector<8x32xf32>
    %226 = arith.extui %225 : vector<8x32xi1> to vector<8x32xi32>
    %227 = arith.sitofp %226 : vector<8x32xi32> to vector<8x32xf32>
    %228 = arith.truncf %227 : vector<8x32xf32> to vector<8x32xbf16>
    %c2_161 = arith.constant 2 : index
    %c0_162 = arith.constant 0 : index
    %c0_163 = arith.constant 0 : index
    %229 = vector.load %arg6[%c2_161, %c0_162, %c0_163] : memref<12x32x32xbf16, #tpu.memory_space<vmem>>, vector<1x32x32xbf16>
    %230 = vector.shape_cast %229 : vector<1x32x32xbf16> to vector<32x32xbf16>
    %cst_164 = arith.constant dense<0.000000e+00> : vector<8x32xf32>
    %231 = tpu.matmul %228, %230, %cst_164 {dimension_numbers = #tpu.dot_dimension_numbers<[1], [0], [0], [1], [0, 0, 1, 1], [], []>} : vector<8x32xbf16>, vector<32x32xbf16>, vector<8x32xf32> -> vector<8x32xf32>
    %232 = vector.broadcast %66 : vector<1x32xf32> to vector<8x32xf32>
    %233 = arith.addf %231, %232 : vector<8x32xf32>
    %234 = arith.extf %30 : vector<8x32xbf16> to vector<8x32xf32>
    %cst_165 = arith.constant 1.000000e+00 : f32
    %235 = vector.broadcast %cst_165 : f32 to vector<8x32xf32>
    %236 = arith.subf %235, %234 : vector<8x32xf32>
    %cst_166 = arith.constant 2.000000e-01 : f32
    %237 = vector.broadcast %cst_166 : f32 to vector<8x32xf32>
    %238 = arith.mulf %237, %236 : vector<8x32xf32>
    %239 = arith.mulf %18, %238 : vector<8x32xf32>
    %240 = arith.addf %239, %233 : vector<8x32xf32>
    %cst_167 = arith.constant 5.000000e-01 : f32
    %241 = vector.broadcast %cst_167 : f32 to vector<8x32xf32>
    %242 = arith.cmpf ogt, %240, %241 : vector<8x32xf32>
    %243 = arith.extui %242 : vector<8x32xi1> to vector<8x32xi32>
    %244 = arith.sitofp %243 : vector<8x32xi32> to vector<8x32xf32>
    %245 = arith.truncf %244 : vector<8x32xf32> to vector<8x32xbf16>
    %c2_168 = arith.constant 2 : index
    %c0_169 = arith.constant 0 : index
    %c0_170 = arith.constant 0 : index
    %246 = vector.load %arg8[%c2_168, %c0_169, %c0_170] : memref<12x32x128xbf16, #tpu.memory_space<vmem>>, vector<1x32x128xbf16>
    %247 = vector.shape_cast %246 : vector<1x32x128xbf16> to vector<32x128xbf16>
    %cst_171 = arith.constant dense<0.000000e+00> : vector<8x128xf32>
    %248 = tpu.matmul %245, %247, %cst_171 {dimension_numbers = #tpu.dot_dimension_numbers<[1], [0], [0], [1], [0, 0, 1, 1], [], []>} : vector<8x32xbf16>, vector<32x128xbf16>, vector<8x128xf32> -> vector<8x128xf32>
    %249 = arith.addf %194, %248 : vector<8x128xf32>
    %c0_172 = arith.constant 0 : index
    %c3_173 = arith.constant 3 : index
    %c0_174 = arith.constant 0 : index
    %c0_175 = arith.constant 0 : index
    %250 = vector.load %arg1[%c0_172, %c3_173, %c0_174, %c0_175] : memref<1x16x8x64xbf16, #tpu.memory_space<vmem>>, vector<1x1x8x64xbf16>
    %251 = vector.shape_cast %250 : vector<1x1x8x64xbf16> to vector<8x64xbf16>
    %cst_176 = arith.constant dense<0.000000e+00> : vector<8x32xf32>
    %252 = tpu.matmul %251, %44, %cst_176 {dimension_numbers = #tpu.dot_dimension_numbers<[1], [0], [0], [1], [0, 0, 1, 1], [], []>} : vector<8x64xbf16>, vector<64x32xbf16>, vector<8x32xf32> -> vector<8x32xf32>
    %253 = vector.broadcast %48 : vector<1x32xf32> to vector<8x32xf32>
    %254 = arith.addf %252, %253 : vector<8x32xf32>
    %255 = arith.extf %156 : vector<8x32xbf16> to vector<8x32xf32>
    %cst_177 = arith.constant 1.000000e+00 : f32
    %256 = vector.broadcast %cst_177 : f32 to vector<8x32xf32>
    %257 = arith.subf %256, %255 : vector<8x32xf32>
    %cst_178 = arith.constant 2.000000e-01 : f32
    %258 = vector.broadcast %cst_178 : f32 to vector<8x32xf32>
    %259 = arith.mulf %258, %257 : vector<8x32xf32>
    %260 = arith.mulf %151, %259 : vector<8x32xf32>
    %261 = arith.addf %260, %254 : vector<8x32xf32>
    %cst_179 = arith.constant 5.000000e-01 : f32
    %262 = vector.broadcast %cst_179 : f32 to vector<8x32xf32>
    %263 = arith.cmpf ogt, %261, %262 : vector<8x32xf32>
    %264 = arith.extui %263 : vector<8x32xi1> to vector<8x32xi32>
    %265 = arith.sitofp %264 : vector<8x32xi32> to vector<8x32xf32>
    %266 = arith.truncf %265 : vector<8x32xf32> to vector<8x32xbf16>
    %c3_180 = arith.constant 3 : index
    %c0_181 = arith.constant 0 : index
    %c0_182 = arith.constant 0 : index
    %267 = vector.load %arg4[%c3_180, %c0_181, %c0_182] : memref<6x32x32xbf16, #tpu.memory_space<vmem>>, vector<1x32x32xbf16>
    %268 = vector.shape_cast %267 : vector<1x32x32xbf16> to vector<32x32xbf16>
    %cst_183 = arith.constant dense<0.000000e+00> : vector<8x32xf32>
    %269 = tpu.matmul %266, %268, %cst_183 {dimension_numbers = #tpu.dot_dimension_numbers<[1], [0], [0], [1], [0, 0, 1, 1], [], []>} : vector<8x32xbf16>, vector<32x32xbf16>, vector<8x32xf32> -> vector<8x32xf32>
    %270 = vector.broadcast %56 : vector<1x32xf32> to vector<8x32xf32>
    %271 = arith.addf %269, %270 : vector<8x32xf32>
    %272 = arith.extf %13 : vector<8x32xbf16> to vector<8x32xf32>
    %cst_184 = arith.constant 1.000000e+00 : f32
    %273 = vector.broadcast %cst_184 : f32 to vector<8x32xf32>
    %274 = arith.subf %273, %272 : vector<8x32xf32>
    %cst_185 = arith.constant 2.000000e-01 : f32
    %275 = vector.broadcast %cst_185 : f32 to vector<8x32xf32>
    %276 = arith.mulf %275, %274 : vector<8x32xf32>
    %277 = arith.mulf %7, %276 : vector<8x32xf32>
    %278 = arith.addf %277, %271 : vector<8x32xf32>
    %cst_186 = arith.constant 5.000000e-01 : f32
    %279 = vector.broadcast %cst_186 : f32 to vector<8x32xf32>
    %280 = arith.cmpf ogt, %278, %279 : vector<8x32xf32>
    %281 = arith.extui %280 : vector<8x32xi1> to vector<8x32xi32>
    %282 = arith.sitofp %281 : vector<8x32xi32> to vector<8x32xf32>
    %283 = arith.truncf %282 : vector<8x32xf32> to vector<8x32xbf16>
    %c3_187 = arith.constant 3 : index
    %c0_188 = arith.constant 0 : index
    %c0_189 = arith.constant 0 : index
    %284 = vector.load %arg6[%c3_187, %c0_188, %c0_189] : memref<12x32x32xbf16, #tpu.memory_space<vmem>>, vector<1x32x32xbf16>
    %285 = vector.shape_cast %284 : vector<1x32x32xbf16> to vector<32x32xbf16>
    %cst_190 = arith.constant dense<0.000000e+00> : vector<8x32xf32>
    %286 = tpu.matmul %283, %285, %cst_190 {dimension_numbers = #tpu.dot_dimension_numbers<[1], [0], [0], [1], [0, 0, 1, 1], [], []>} : vector<8x32xbf16>, vector<32x32xbf16>, vector<8x32xf32> -> vector<8x32xf32>
    %287 = vector.broadcast %68 : vector<1x32xf32> to vector<8x32xf32>
    %288 = arith.addf %286, %287 : vector<8x32xf32>
    %289 = arith.extf %31 : vector<8x32xbf16> to vector<8x32xf32>
    %cst_191 = arith.constant 1.000000e+00 : f32
    %290 = vector.broadcast %cst_191 : f32 to vector<8x32xf32>
    %291 = arith.subf %290, %289 : vector<8x32xf32>
    %cst_192 = arith.constant 2.000000e-01 : f32
    %292 = vector.broadcast %cst_192 : f32 to vector<8x32xf32>
    %293 = arith.mulf %292, %291 : vector<8x32xf32>
    %294 = arith.mulf %19, %293 : vector<8x32xf32>
    %295 = arith.addf %294, %288 : vector<8x32xf32>
    %cst_193 = arith.constant 5.000000e-01 : f32
    %296 = vector.broadcast %cst_193 : f32 to vector<8x32xf32>
    %297 = arith.cmpf ogt, %295, %296 : vector<8x32xf32>
    %298 = arith.extui %297 : vector<8x32xi1> to vector<8x32xi32>
    %299 = arith.sitofp %298 : vector<8x32xi32> to vector<8x32xf32>
    %300 = arith.truncf %299 : vector<8x32xf32> to vector<8x32xbf16>
    %c3_194 = arith.constant 3 : index
    %c0_195 = arith.constant 0 : index
    %c0_196 = arith.constant 0 : index
    %301 = vector.load %arg8[%c3_194, %c0_195, %c0_196] : memref<12x32x128xbf16, #tpu.memory_space<vmem>>, vector<1x32x128xbf16>
    %302 = vector.shape_cast %301 : vector<1x32x128xbf16> to vector<32x128xbf16>
    %cst_197 = arith.constant dense<0.000000e+00> : vector<8x128xf32>
    %303 = tpu.matmul %300, %302, %cst_197 {dimension_numbers = #tpu.dot_dimension_numbers<[1], [0], [0], [1], [0, 0, 1, 1], [], []>} : vector<8x32xbf16>, vector<32x128xbf16>, vector<8x128xf32> -> vector<8x128xf32>
    %304 = arith.addf %249, %303 : vector<8x128xf32>
    %c0_198 = arith.constant 0 : index
    %c4_199 = arith.constant 4 : index
    %c0_200 = arith.constant 0 : index
    %c0_201 = arith.constant 0 : index
    %305 = vector.load %arg1[%c0_198, %c4_199, %c0_200, %c0_201] : memref<1x16x8x64xbf16, #tpu.memory_space<vmem>>, vector<1x1x8x64xbf16>
    %306 = vector.shape_cast %305 : vector<1x1x8x64xbf16> to vector<8x64xbf16>
    %cst_202 = arith.constant dense<0.000000e+00> : vector<8x32xf32>
    %307 = tpu.matmul %306, %42, %cst_202 {dimension_numbers = #tpu.dot_dimension_numbers<[1], [0], [0], [1], [0, 0, 1, 1], [], []>} : vector<8x64xbf16>, vector<64x32xbf16>, vector<8x32xf32> -> vector<8x32xf32>
    %308 = vector.broadcast %46 : vector<1x32xf32> to vector<8x32xf32>
    %309 = arith.addf %307, %308 : vector<8x32xf32>
    %310 = arith.extf %211 : vector<8x32xbf16> to vector<8x32xf32>
    %cst_203 = arith.constant 1.000000e+00 : f32
    %311 = vector.broadcast %cst_203 : f32 to vector<8x32xf32>
    %312 = arith.subf %311, %310 : vector<8x32xf32>
    %cst_204 = arith.constant 2.000000e-01 : f32
    %313 = vector.broadcast %cst_204 : f32 to vector<8x32xf32>
    %314 = arith.mulf %313, %312 : vector<8x32xf32>
    %315 = arith.mulf %206, %314 : vector<8x32xf32>
    %316 = arith.addf %315, %309 : vector<8x32xf32>
    %cst_205 = arith.constant 5.000000e-01 : f32
    %317 = vector.broadcast %cst_205 : f32 to vector<8x32xf32>
    %318 = arith.cmpf ogt, %316, %317 : vector<8x32xf32>
    %319 = arith.extui %318 : vector<8x32xi1> to vector<8x32xi32>
    %320 = arith.sitofp %319 : vector<8x32xi32> to vector<8x32xf32>
    %321 = arith.truncf %320 : vector<8x32xf32> to vector<8x32xbf16>
    %c4_206 = arith.constant 4 : index
    %c0_207 = arith.constant 0 : index
    %c0_208 = arith.constant 0 : index
    %322 = vector.load %arg4[%c4_206, %c0_207, %c0_208] : memref<6x32x32xbf16, #tpu.memory_space<vmem>>, vector<1x32x32xbf16>
    %323 = vector.shape_cast %322 : vector<1x32x32xbf16> to vector<32x32xbf16>
    %cst_209 = arith.constant dense<0.000000e+00> : vector<8x32xf32>
    %324 = tpu.matmul %321, %323, %cst_209 {dimension_numbers = #tpu.dot_dimension_numbers<[1], [0], [0], [1], [0, 0, 1, 1], [], []>} : vector<8x32xbf16>, vector<32x32xbf16>, vector<8x32xf32> -> vector<8x32xf32>
    %325 = vector.broadcast %58 : vector<1x32xf32> to vector<8x32xf32>
    %326 = arith.addf %324, %325 : vector<8x32xf32>
    %327 = arith.extf %14 : vector<8x32xbf16> to vector<8x32xf32>
    %cst_210 = arith.constant 1.000000e+00 : f32
    %328 = vector.broadcast %cst_210 : f32 to vector<8x32xf32>
    %329 = arith.subf %328, %327 : vector<8x32xf32>
    %cst_211 = arith.constant 2.000000e-01 : f32
    %330 = vector.broadcast %cst_211 : f32 to vector<8x32xf32>
    %331 = arith.mulf %330, %329 : vector<8x32xf32>
    %332 = arith.mulf %8, %331 : vector<8x32xf32>
    %333 = arith.addf %332, %326 : vector<8x32xf32>
    %cst_212 = arith.constant 5.000000e-01 : f32
    %334 = vector.broadcast %cst_212 : f32 to vector<8x32xf32>
    %335 = arith.cmpf ogt, %333, %334 : vector<8x32xf32>
    %336 = arith.extui %335 : vector<8x32xi1> to vector<8x32xi32>
    %337 = arith.sitofp %336 : vector<8x32xi32> to vector<8x32xf32>
    %338 = arith.truncf %337 : vector<8x32xf32> to vector<8x32xbf16>
    %c4_213 = arith.constant 4 : index
    %c0_214 = arith.constant 0 : index
    %c0_215 = arith.constant 0 : index
    %339 = vector.load %arg6[%c4_213, %c0_214, %c0_215] : memref<12x32x32xbf16, #tpu.memory_space<vmem>>, vector<1x32x32xbf16>
    %340 = vector.shape_cast %339 : vector<1x32x32xbf16> to vector<32x32xbf16>
    %cst_216 = arith.constant dense<0.000000e+00> : vector<8x32xf32>
    %341 = tpu.matmul %338, %340, %cst_216 {dimension_numbers = #tpu.dot_dimension_numbers<[1], [0], [0], [1], [0, 0, 1, 1], [], []>} : vector<8x32xbf16>, vector<32x32xbf16>, vector<8x32xf32> -> vector<8x32xf32>
    %342 = vector.broadcast %70 : vector<1x32xf32> to vector<8x32xf32>
    %343 = arith.addf %341, %342 : vector<8x32xf32>
    %344 = arith.extf %32 : vector<8x32xbf16> to vector<8x32xf32>
    %cst_217 = arith.constant 1.000000e+00 : f32
    %345 = vector.broadcast %cst_217 : f32 to vector<8x32xf32>
    %346 = arith.subf %345, %344 : vector<8x32xf32>
    %cst_218 = arith.constant 2.000000e-01 : f32
    %347 = vector.broadcast %cst_218 : f32 to vector<8x32xf32>
    %348 = arith.mulf %347, %346 : vector<8x32xf32>
    %349 = arith.mulf %20, %348 : vector<8x32xf32>
    %350 = arith.addf %349, %343 : vector<8x32xf32>
    %cst_219 = arith.constant 5.000000e-01 : f32
    %351 = vector.broadcast %cst_219 : f32 to vector<8x32xf32>
    %352 = arith.cmpf ogt, %350, %351 : vector<8x32xf32>
    %353 = arith.extui %352 : vector<8x32xi1> to vector<8x32xi32>
    %354 = arith.sitofp %353 : vector<8x32xi32> to vector<8x32xf32>
    %355 = arith.truncf %354 : vector<8x32xf32> to vector<8x32xbf16>
    %c4_220 = arith.constant 4 : index
    %c0_221 = arith.constant 0 : index
    %c0_222 = arith.constant 0 : index
    %356 = vector.load %arg8[%c4_220, %c0_221, %c0_222] : memref<12x32x128xbf16, #tpu.memory_space<vmem>>, vector<1x32x128xbf16>
    %357 = vector.shape_cast %356 : vector<1x32x128xbf16> to vector<32x128xbf16>
    %cst_223 = arith.constant dense<0.000000e+00> : vector<8x128xf32>
    %358 = tpu.matmul %355, %357, %cst_223 {dimension_numbers = #tpu.dot_dimension_numbers<[1], [0], [0], [1], [0, 0, 1, 1], [], []>} : vector<8x32xbf16>, vector<32x128xbf16>, vector<8x128xf32> -> vector<8x128xf32>
    %359 = arith.addf %304, %358 : vector<8x128xf32>
    %c0_224 = arith.constant 0 : index
    %c5_225 = arith.constant 5 : index
    %c0_226 = arith.constant 0 : index
    %c0_227 = arith.constant 0 : index
    %360 = vector.load %arg1[%c0_224, %c5_225, %c0_226, %c0_227] : memref<1x16x8x64xbf16, #tpu.memory_space<vmem>>, vector<1x1x8x64xbf16>
    %361 = vector.shape_cast %360 : vector<1x1x8x64xbf16> to vector<8x64xbf16>
    %cst_228 = arith.constant dense<0.000000e+00> : vector<8x32xf32>
    %362 = tpu.matmul %361, %44, %cst_228 {dimension_numbers = #tpu.dot_dimension_numbers<[1], [0], [0], [1], [0, 0, 1, 1], [], []>} : vector<8x64xbf16>, vector<64x32xbf16>, vector<8x32xf32> -> vector<8x32xf32>
    %363 = vector.broadcast %48 : vector<1x32xf32> to vector<8x32xf32>
    %364 = arith.addf %362, %363 : vector<8x32xf32>
    %365 = arith.extf %266 : vector<8x32xbf16> to vector<8x32xf32>
    %cst_229 = arith.constant 1.000000e+00 : f32
    %366 = vector.broadcast %cst_229 : f32 to vector<8x32xf32>
    %367 = arith.subf %366, %365 : vector<8x32xf32>
    %cst_230 = arith.constant 2.000000e-01 : f32
    %368 = vector.broadcast %cst_230 : f32 to vector<8x32xf32>
    %369 = arith.mulf %368, %367 : vector<8x32xf32>
    %370 = arith.mulf %261, %369 : vector<8x32xf32>
    %371 = arith.addf %370, %364 : vector<8x32xf32>
    %cst_231 = arith.constant 5.000000e-01 : f32
    %372 = vector.broadcast %cst_231 : f32 to vector<8x32xf32>
    %373 = arith.cmpf ogt, %371, %372 : vector<8x32xf32>
    %374 = arith.extui %373 : vector<8x32xi1> to vector<8x32xi32>
    %375 = arith.sitofp %374 : vector<8x32xi32> to vector<8x32xf32>
    %376 = arith.truncf %375 : vector<8x32xf32> to vector<8x32xbf16>
    %c5_232 = arith.constant 5 : index
    %c0_233 = arith.constant 0 : index
    %c0_234 = arith.constant 0 : index
    %377 = vector.load %arg4[%c5_232, %c0_233, %c0_234] : memref<6x32x32xbf16, #tpu.memory_space<vmem>>, vector<1x32x32xbf16>
    %378 = vector.shape_cast %377 : vector<1x32x32xbf16> to vector<32x32xbf16>
    %cst_235 = arith.constant dense<0.000000e+00> : vector<8x32xf32>
    %379 = tpu.matmul %376, %378, %cst_235 {dimension_numbers = #tpu.dot_dimension_numbers<[1], [0], [0], [1], [0, 0, 1, 1], [], []>} : vector<8x32xbf16>, vector<32x32xbf16>, vector<8x32xf32> -> vector<8x32xf32>
    %380 = vector.broadcast %60 : vector<1x32xf32> to vector<8x32xf32>
    %381 = arith.addf %379, %380 : vector<8x32xf32>
    %382 = arith.extf %15 : vector<8x32xbf16> to vector<8x32xf32>
    %cst_236 = arith.constant 1.000000e+00 : f32
    %383 = vector.broadcast %cst_236 : f32 to vector<8x32xf32>
    %384 = arith.subf %383, %382 : vector<8x32xf32>
    %cst_237 = arith.constant 2.000000e-01 : f32
    %385 = vector.broadcast %cst_237 : f32 to vector<8x32xf32>
    %386 = arith.mulf %385, %384 : vector<8x32xf32>
    %387 = arith.mulf %9, %386 : vector<8x32xf32>
    %388 = arith.addf %387, %381 : vector<8x32xf32>
    %cst_238 = arith.constant 5.000000e-01 : f32
    %389 = vector.broadcast %cst_238 : f32 to vector<8x32xf32>
    %390 = arith.cmpf ogt, %388, %389 : vector<8x32xf32>
    %391 = arith.extui %390 : vector<8x32xi1> to vector<8x32xi32>
    %392 = arith.sitofp %391 : vector<8x32xi32> to vector<8x32xf32>
    %393 = arith.truncf %392 : vector<8x32xf32> to vector<8x32xbf16>
    %c5_239 = arith.constant 5 : index
    %c0_240 = arith.constant 0 : index
    %c0_241 = arith.constant 0 : index
    %394 = vector.load %arg6[%c5_239, %c0_240, %c0_241] : memref<12x32x32xbf16, #tpu.memory_space<vmem>>, vector<1x32x32xbf16>
    %395 = vector.shape_cast %394 : vector<1x32x32xbf16> to vector<32x32xbf16>
    %cst_242 = arith.constant dense<0.000000e+00> : vector<8x32xf32>
    %396 = tpu.matmul %393, %395, %cst_242 {dimension_numbers = #tpu.dot_dimension_numbers<[1], [0], [0], [1], [0, 0, 1, 1], [], []>} : vector<8x32xbf16>, vector<32x32xbf16>, vector<8x32xf32> -> vector<8x32xf32>
    %397 = vector.broadcast %72 : vector<1x32xf32> to vector<8x32xf32>
    %398 = arith.addf %396, %397 : vector<8x32xf32>
    %399 = arith.extf %33 : vector<8x32xbf16> to vector<8x32xf32>
    %cst_243 = arith.constant 1.000000e+00 : f32
    %400 = vector.broadcast %cst_243 : f32 to vector<8x32xf32>
    %401 = arith.subf %400, %399 : vector<8x32xf32>
    %cst_244 = arith.constant 2.000000e-01 : f32
    %402 = vector.broadcast %cst_244 : f32 to vector<8x32xf32>
    %403 = arith.mulf %402, %401 : vector<8x32xf32>
    %404 = arith.mulf %21, %403 : vector<8x32xf32>
    %405 = arith.addf %404, %398 : vector<8x32xf32>
    %cst_245 = arith.constant 5.000000e-01 : f32
    %406 = vector.broadcast %cst_245 : f32 to vector<8x32xf32>
    %407 = arith.cmpf ogt, %405, %406 : vector<8x32xf32>
    %408 = arith.extui %407 : vector<8x32xi1> to vector<8x32xi32>
    %409 = arith.sitofp %408 : vector<8x32xi32> to vector<8x32xf32>
    %410 = arith.truncf %409 : vector<8x32xf32> to vector<8x32xbf16>
    %c5_246 = arith.constant 5 : index
    %c0_247 = arith.constant 0 : index
    %c0_248 = arith.constant 0 : index
    %411 = vector.load %arg8[%c5_246, %c0_247, %c0_248] : memref<12x32x128xbf16, #tpu.memory_space<vmem>>, vector<1x32x128xbf16>
    %412 = vector.shape_cast %411 : vector<1x32x128xbf16> to vector<32x128xbf16>
    %cst_249 = arith.constant dense<0.000000e+00> : vector<8x128xf32>
    %413 = tpu.matmul %410, %412, %cst_249 {dimension_numbers = #tpu.dot_dimension_numbers<[1], [0], [0], [1], [0, 0, 1, 1], [], []>} : vector<8x32xbf16>, vector<32x128xbf16>, vector<8x128xf32> -> vector<8x128xf32>
    %414 = arith.addf %359, %413 : vector<8x128xf32>
    %c0_250 = arith.constant 0 : index
    %c6_251 = arith.constant 6 : index
    %c0_252 = arith.constant 0 : index
    %c0_253 = arith.constant 0 : index
    %415 = vector.load %arg1[%c0_250, %c6_251, %c0_252, %c0_253] : memref<1x16x8x64xbf16, #tpu.memory_space<vmem>>, vector<1x1x8x64xbf16>
    %416 = vector.shape_cast %415 : vector<1x1x8x64xbf16> to vector<8x64xbf16>
    %cst_254 = arith.constant dense<0.000000e+00> : vector<8x32xf32>
    %417 = tpu.matmul %416, %42, %cst_254 {dimension_numbers = #tpu.dot_dimension_numbers<[1], [0], [0], [1], [0, 0, 1, 1], [], []>} : vector<8x64xbf16>, vector<64x32xbf16>, vector<8x32xf32> -> vector<8x32xf32>
    %418 = vector.broadcast %46 : vector<1x32xf32> to vector<8x32xf32>
    %419 = arith.addf %417, %418 : vector<8x32xf32>
    %420 = arith.extf %321 : vector<8x32xbf16> to vector<8x32xf32>
    %cst_255 = arith.constant 1.000000e+00 : f32
    %421 = vector.broadcast %cst_255 : f32 to vector<8x32xf32>
    %422 = arith.subf %421, %420 : vector<8x32xf32>
    %cst_256 = arith.constant 2.000000e-01 : f32
    %423 = vector.broadcast %cst_256 : f32 to vector<8x32xf32>
    %424 = arith.mulf %423, %422 : vector<8x32xf32>
    %425 = arith.mulf %316, %424 : vector<8x32xf32>
    %426 = arith.addf %425, %419 : vector<8x32xf32>
    %cst_257 = arith.constant 5.000000e-01 : f32
    %427 = vector.broadcast %cst_257 : f32 to vector<8x32xf32>
    %428 = arith.cmpf ogt, %426, %427 : vector<8x32xf32>
    %429 = arith.extui %428 : vector<8x32xi1> to vector<8x32xi32>
    %430 = arith.sitofp %429 : vector<8x32xi32> to vector<8x32xf32>
    %431 = arith.truncf %430 : vector<8x32xf32> to vector<8x32xbf16>
    %c0_258 = arith.constant 0 : index
    %c0_259 = arith.constant 0 : index
    %c0_260 = arith.constant 0 : index
    %432 = vector.load %arg4[%c0_258, %c0_259, %c0_260] : memref<6x32x32xbf16, #tpu.memory_space<vmem>>, vector<1x32x32xbf16>
    %433 = vector.shape_cast %432 : vector<1x32x32xbf16> to vector<32x32xbf16>
    %cst_261 = arith.constant dense<0.000000e+00> : vector<8x32xf32>
    %434 = tpu.matmul %431, %433, %cst_261 {dimension_numbers = #tpu.dot_dimension_numbers<[1], [0], [0], [1], [0, 0, 1, 1], [], []>} : vector<8x32xbf16>, vector<32x32xbf16>, vector<8x32xf32> -> vector<8x32xf32>
    %435 = vector.broadcast %50 : vector<1x32xf32> to vector<8x32xf32>
    %436 = arith.addf %434, %435 : vector<8x32xf32>
    %437 = arith.extf %118 : vector<8x32xbf16> to vector<8x32xf32>
    %cst_262 = arith.constant 1.000000e+00 : f32
    %438 = vector.broadcast %cst_262 : f32 to vector<8x32xf32>
    %439 = arith.subf %438, %437 : vector<8x32xf32>
    %cst_263 = arith.constant 2.000000e-01 : f32
    %440 = vector.broadcast %cst_263 : f32 to vector<8x32xf32>
    %441 = arith.mulf %440, %439 : vector<8x32xf32>
    %442 = arith.mulf %113, %441 : vector<8x32xf32>
    %443 = arith.addf %442, %436 : vector<8x32xf32>
    %cst_264 = arith.constant 5.000000e-01 : f32
    %444 = vector.broadcast %cst_264 : f32 to vector<8x32xf32>
    %445 = arith.cmpf ogt, %443, %444 : vector<8x32xf32>
    %446 = arith.extui %445 : vector<8x32xi1> to vector<8x32xi32>
    %447 = arith.sitofp %446 : vector<8x32xi32> to vector<8x32xf32>
    %448 = arith.truncf %447 : vector<8x32xf32> to vector<8x32xbf16>
    %c6_265 = arith.constant 6 : index
    %c0_266 = arith.constant 0 : index
    %c0_267 = arith.constant 0 : index
    %449 = vector.load %arg6[%c6_265, %c0_266, %c0_267] : memref<12x32x32xbf16, #tpu.memory_space<vmem>>, vector<1x32x32xbf16>
    %450 = vector.shape_cast %449 : vector<1x32x32xbf16> to vector<32x32xbf16>
    %cst_268 = arith.constant dense<0.000000e+00> : vector<8x32xf32>
    %451 = tpu.matmul %448, %450, %cst_268 {dimension_numbers = #tpu.dot_dimension_numbers<[1], [0], [0], [1], [0, 0, 1, 1], [], []>} : vector<8x32xbf16>, vector<32x32xbf16>, vector<8x32xf32> -> vector<8x32xf32>
    %452 = vector.broadcast %74 : vector<1x32xf32> to vector<8x32xf32>
    %453 = arith.addf %451, %452 : vector<8x32xf32>
    %454 = arith.extf %34 : vector<8x32xbf16> to vector<8x32xf32>
    %cst_269 = arith.constant 1.000000e+00 : f32
    %455 = vector.broadcast %cst_269 : f32 to vector<8x32xf32>
    %456 = arith.subf %455, %454 : vector<8x32xf32>
    %cst_270 = arith.constant 2.000000e-01 : f32
    %457 = vector.broadcast %cst_270 : f32 to vector<8x32xf32>
    %458 = arith.mulf %457, %456 : vector<8x32xf32>
    %459 = arith.mulf %22, %458 : vector<8x32xf32>
    %460 = arith.addf %459, %453 : vector<8x32xf32>
    %cst_271 = arith.constant 5.000000e-01 : f32
    %461 = vector.broadcast %cst_271 : f32 to vector<8x32xf32>
    %462 = arith.cmpf ogt, %460, %461 : vector<8x32xf32>
    %463 = arith.extui %462 : vector<8x32xi1> to vector<8x32xi32>
    %464 = arith.sitofp %463 : vector<8x32xi32> to vector<8x32xf32>
    %465 = arith.truncf %464 : vector<8x32xf32> to vector<8x32xbf16>
    %c6_272 = arith.constant 6 : index
    %c0_273 = arith.constant 0 : index
    %c0_274 = arith.constant 0 : index
    %466 = vector.load %arg8[%c6_272, %c0_273, %c0_274] : memref<12x32x128xbf16, #tpu.memory_space<vmem>>, vector<1x32x128xbf16>
    %467 = vector.shape_cast %466 : vector<1x32x128xbf16> to vector<32x128xbf16>
    %cst_275 = arith.constant dense<0.000000e+00> : vector<8x128xf32>
    %468 = tpu.matmul %465, %467, %cst_275 {dimension_numbers = #tpu.dot_dimension_numbers<[1], [0], [0], [1], [0, 0, 1, 1], [], []>} : vector<8x32xbf16>, vector<32x128xbf16>, vector<8x128xf32> -> vector<8x128xf32>
    %469 = arith.addf %414, %468 : vector<8x128xf32>
    %c0_276 = arith.constant 0 : index
    %c7_277 = arith.constant 7 : index
    %c0_278 = arith.constant 0 : index
    %c0_279 = arith.constant 0 : index
    %470 = vector.load %arg1[%c0_276, %c7_277, %c0_278, %c0_279] : memref<1x16x8x64xbf16, #tpu.memory_space<vmem>>, vector<1x1x8x64xbf16>
    %471 = vector.shape_cast %470 : vector<1x1x8x64xbf16> to vector<8x64xbf16>
    %cst_280 = arith.constant dense<0.000000e+00> : vector<8x32xf32>
    %472 = tpu.matmul %471, %44, %cst_280 {dimension_numbers = #tpu.dot_dimension_numbers<[1], [0], [0], [1], [0, 0, 1, 1], [], []>} : vector<8x64xbf16>, vector<64x32xbf16>, vector<8x32xf32> -> vector<8x32xf32>
    %473 = vector.broadcast %48 : vector<1x32xf32> to vector<8x32xf32>
    %474 = arith.addf %472, %473 : vector<8x32xf32>
    %475 = arith.extf %376 : vector<8x32xbf16> to vector<8x32xf32>
    %cst_281 = arith.constant 1.000000e+00 : f32
    %476 = vector.broadcast %cst_281 : f32 to vector<8x32xf32>
    %477 = arith.subf %476, %475 : vector<8x32xf32>
    %cst_282 = arith.constant 2.000000e-01 : f32
    %478 = vector.broadcast %cst_282 : f32 to vector<8x32xf32>
    %479 = arith.mulf %478, %477 : vector<8x32xf32>
    %480 = arith.mulf %371, %479 : vector<8x32xf32>
    %481 = arith.addf %480, %474 : vector<8x32xf32>
    %cst_283 = arith.constant 5.000000e-01 : f32
    %482 = vector.broadcast %cst_283 : f32 to vector<8x32xf32>
    %483 = arith.cmpf ogt, %481, %482 : vector<8x32xf32>
    %484 = arith.extui %483 : vector<8x32xi1> to vector<8x32xi32>
    %485 = arith.sitofp %484 : vector<8x32xi32> to vector<8x32xf32>
    %486 = arith.truncf %485 : vector<8x32xf32> to vector<8x32xbf16>
    %c1_284 = arith.constant 1 : index
    %c0_285 = arith.constant 0 : index
    %c0_286 = arith.constant 0 : index
    %487 = vector.load %arg4[%c1_284, %c0_285, %c0_286] : memref<6x32x32xbf16, #tpu.memory_space<vmem>>, vector<1x32x32xbf16>
    %488 = vector.shape_cast %487 : vector<1x32x32xbf16> to vector<32x32xbf16>
    %cst_287 = arith.constant dense<0.000000e+00> : vector<8x32xf32>
    %489 = tpu.matmul %486, %488, %cst_287 {dimension_numbers = #tpu.dot_dimension_numbers<[1], [0], [0], [1], [0, 0, 1, 1], [], []>} : vector<8x32xbf16>, vector<32x32xbf16>, vector<8x32xf32> -> vector<8x32xf32>
    %490 = vector.broadcast %52 : vector<1x32xf32> to vector<8x32xf32>
    %491 = arith.addf %489, %490 : vector<8x32xf32>
    %492 = arith.extf %173 : vector<8x32xbf16> to vector<8x32xf32>
    %cst_288 = arith.constant 1.000000e+00 : f32
    %493 = vector.broadcast %cst_288 : f32 to vector<8x32xf32>
    %494 = arith.subf %493, %492 : vector<8x32xf32>
    %cst_289 = arith.constant 2.000000e-01 : f32
    %495 = vector.broadcast %cst_289 : f32 to vector<8x32xf32>
    %496 = arith.mulf %495, %494 : vector<8x32xf32>
    %497 = arith.mulf %168, %496 : vector<8x32xf32>
    %498 = arith.addf %497, %491 : vector<8x32xf32>
    %cst_290 = arith.constant 5.000000e-01 : f32
    %499 = vector.broadcast %cst_290 : f32 to vector<8x32xf32>
    %500 = arith.cmpf ogt, %498, %499 : vector<8x32xf32>
    %501 = arith.extui %500 : vector<8x32xi1> to vector<8x32xi32>
    %502 = arith.sitofp %501 : vector<8x32xi32> to vector<8x32xf32>
    %503 = arith.truncf %502 : vector<8x32xf32> to vector<8x32xbf16>
    %c7_291 = arith.constant 7 : index
    %c0_292 = arith.constant 0 : index
    %c0_293 = arith.constant 0 : index
    %504 = vector.load %arg6[%c7_291, %c0_292, %c0_293] : memref<12x32x32xbf16, #tpu.memory_space<vmem>>, vector<1x32x32xbf16>
    %505 = vector.shape_cast %504 : vector<1x32x32xbf16> to vector<32x32xbf16>
    %cst_294 = arith.constant dense<0.000000e+00> : vector<8x32xf32>
    %506 = tpu.matmul %503, %505, %cst_294 {dimension_numbers = #tpu.dot_dimension_numbers<[1], [0], [0], [1], [0, 0, 1, 1], [], []>} : vector<8x32xbf16>, vector<32x32xbf16>, vector<8x32xf32> -> vector<8x32xf32>
    %507 = vector.broadcast %76 : vector<1x32xf32> to vector<8x32xf32>
    %508 = arith.addf %506, %507 : vector<8x32xf32>
    %509 = arith.extf %35 : vector<8x32xbf16> to vector<8x32xf32>
    %cst_295 = arith.constant 1.000000e+00 : f32
    %510 = vector.broadcast %cst_295 : f32 to vector<8x32xf32>
    %511 = arith.subf %510, %509 : vector<8x32xf32>
    %cst_296 = arith.constant 2.000000e-01 : f32
    %512 = vector.broadcast %cst_296 : f32 to vector<8x32xf32>
    %513 = arith.mulf %512, %511 : vector<8x32xf32>
    %514 = arith.mulf %23, %513 : vector<8x32xf32>
    %515 = arith.addf %514, %508 : vector<8x32xf32>
    %cst_297 = arith.constant 5.000000e-01 : f32
    %516 = vector.broadcast %cst_297 : f32 to vector<8x32xf32>
    %517 = arith.cmpf ogt, %515, %516 : vector<8x32xf32>
    %518 = arith.extui %517 : vector<8x32xi1> to vector<8x32xi32>
    %519 = arith.sitofp %518 : vector<8x32xi32> to vector<8x32xf32>
    %520 = arith.truncf %519 : vector<8x32xf32> to vector<8x32xbf16>
    %c7_298 = arith.constant 7 : index
    %c0_299 = arith.constant 0 : index
    %c0_300 = arith.constant 0 : index
    %521 = vector.load %arg8[%c7_298, %c0_299, %c0_300] : memref<12x32x128xbf16, #tpu.memory_space<vmem>>, vector<1x32x128xbf16>
    %522 = vector.shape_cast %521 : vector<1x32x128xbf16> to vector<32x128xbf16>
    %cst_301 = arith.constant dense<0.000000e+00> : vector<8x128xf32>
    %523 = tpu.matmul %520, %522, %cst_301 {dimension_numbers = #tpu.dot_dimension_numbers<[1], [0], [0], [1], [0, 0, 1, 1], [], []>} : vector<8x32xbf16>, vector<32x128xbf16>, vector<8x128xf32> -> vector<8x128xf32>
    %524 = arith.addf %469, %523 : vector<8x128xf32>
    %c0_302 = arith.constant 0 : index
    %c8_303 = arith.constant 8 : index
    %c0_304 = arith.constant 0 : index
    %c0_305 = arith.constant 0 : index
    %525 = vector.load %arg1[%c0_302, %c8_303, %c0_304, %c0_305] : memref<1x16x8x64xbf16, #tpu.memory_space<vmem>>, vector<1x1x8x64xbf16>
    %526 = vector.shape_cast %525 : vector<1x1x8x64xbf16> to vector<8x64xbf16>
    %cst_306 = arith.constant dense<0.000000e+00> : vector<8x32xf32>
    %527 = tpu.matmul %526, %42, %cst_306 {dimension_numbers = #tpu.dot_dimension_numbers<[1], [0], [0], [1], [0, 0, 1, 1], [], []>} : vector<8x64xbf16>, vector<64x32xbf16>, vector<8x32xf32> -> vector<8x32xf32>
    %528 = vector.broadcast %46 : vector<1x32xf32> to vector<8x32xf32>
    %529 = arith.addf %527, %528 : vector<8x32xf32>
    %530 = arith.extf %431 : vector<8x32xbf16> to vector<8x32xf32>
    %cst_307 = arith.constant 1.000000e+00 : f32
    %531 = vector.broadcast %cst_307 : f32 to vector<8x32xf32>
    %532 = arith.subf %531, %530 : vector<8x32xf32>
    %cst_308 = arith.constant 2.000000e-01 : f32
    %533 = vector.broadcast %cst_308 : f32 to vector<8x32xf32>
    %534 = arith.mulf %533, %532 : vector<8x32xf32>
    %535 = arith.mulf %426, %534 : vector<8x32xf32>
    %536 = arith.addf %535, %529 : vector<8x32xf32>
    %cst_309 = arith.constant 5.000000e-01 : f32
    %537 = vector.broadcast %cst_309 : f32 to vector<8x32xf32>
    %538 = arith.cmpf ogt, %536, %537 : vector<8x32xf32>
    %539 = arith.extui %538 : vector<8x32xi1> to vector<8x32xi32>
    %540 = arith.sitofp %539 : vector<8x32xi32> to vector<8x32xf32>
    %541 = arith.truncf %540 : vector<8x32xf32> to vector<8x32xbf16>
    %c2_310 = arith.constant 2 : index
    %c0_311 = arith.constant 0 : index
    %c0_312 = arith.constant 0 : index
    %542 = vector.load %arg4[%c2_310, %c0_311, %c0_312] : memref<6x32x32xbf16, #tpu.memory_space<vmem>>, vector<1x32x32xbf16>
    %543 = vector.shape_cast %542 : vector<1x32x32xbf16> to vector<32x32xbf16>
    %cst_313 = arith.constant dense<0.000000e+00> : vector<8x32xf32>
    %544 = tpu.matmul %541, %543, %cst_313 {dimension_numbers = #tpu.dot_dimension_numbers<[1], [0], [0], [1], [0, 0, 1, 1], [], []>} : vector<8x32xbf16>, vector<32x32xbf16>, vector<8x32xf32> -> vector<8x32xf32>
    %545 = vector.broadcast %54 : vector<1x32xf32> to vector<8x32xf32>
    %546 = arith.addf %544, %545 : vector<8x32xf32>
    %547 = arith.extf %228 : vector<8x32xbf16> to vector<8x32xf32>
    %cst_314 = arith.constant 1.000000e+00 : f32
    %548 = vector.broadcast %cst_314 : f32 to vector<8x32xf32>
    %549 = arith.subf %548, %547 : vector<8x32xf32>
    %cst_315 = arith.constant 2.000000e-01 : f32
    %550 = vector.broadcast %cst_315 : f32 to vector<8x32xf32>
    %551 = arith.mulf %550, %549 : vector<8x32xf32>
    %552 = arith.mulf %223, %551 : vector<8x32xf32>
    %553 = arith.addf %552, %546 : vector<8x32xf32>
    %cst_316 = arith.constant 5.000000e-01 : f32
    %554 = vector.broadcast %cst_316 : f32 to vector<8x32xf32>
    %555 = arith.cmpf ogt, %553, %554 : vector<8x32xf32>
    %556 = arith.extui %555 : vector<8x32xi1> to vector<8x32xi32>
    %557 = arith.sitofp %556 : vector<8x32xi32> to vector<8x32xf32>
    %558 = arith.truncf %557 : vector<8x32xf32> to vector<8x32xbf16>
    %c8_317 = arith.constant 8 : index
    %c0_318 = arith.constant 0 : index
    %c0_319 = arith.constant 0 : index
    %559 = vector.load %arg6[%c8_317, %c0_318, %c0_319] : memref<12x32x32xbf16, #tpu.memory_space<vmem>>, vector<1x32x32xbf16>
    %560 = vector.shape_cast %559 : vector<1x32x32xbf16> to vector<32x32xbf16>
    %cst_320 = arith.constant dense<0.000000e+00> : vector<8x32xf32>
    %561 = tpu.matmul %558, %560, %cst_320 {dimension_numbers = #tpu.dot_dimension_numbers<[1], [0], [0], [1], [0, 0, 1, 1], [], []>} : vector<8x32xbf16>, vector<32x32xbf16>, vector<8x32xf32> -> vector<8x32xf32>
    %562 = vector.broadcast %78 : vector<1x32xf32> to vector<8x32xf32>
    %563 = arith.addf %561, %562 : vector<8x32xf32>
    %564 = arith.extf %36 : vector<8x32xbf16> to vector<8x32xf32>
    %cst_321 = arith.constant 1.000000e+00 : f32
    %565 = vector.broadcast %cst_321 : f32 to vector<8x32xf32>
    %566 = arith.subf %565, %564 : vector<8x32xf32>
    %cst_322 = arith.constant 2.000000e-01 : f32
    %567 = vector.broadcast %cst_322 : f32 to vector<8x32xf32>
    %568 = arith.mulf %567, %566 : vector<8x32xf32>
    %569 = arith.mulf %24, %568 : vector<8x32xf32>
    %570 = arith.addf %569, %563 : vector<8x32xf32>
    %cst_323 = arith.constant 5.000000e-01 : f32
    %571 = vector.broadcast %cst_323 : f32 to vector<8x32xf32>
    %572 = arith.cmpf ogt, %570, %571 : vector<8x32xf32>
    %573 = arith.extui %572 : vector<8x32xi1> to vector<8x32xi32>
    %574 = arith.sitofp %573 : vector<8x32xi32> to vector<8x32xf32>
    %575 = arith.truncf %574 : vector<8x32xf32> to vector<8x32xbf16>
    %c8_324 = arith.constant 8 : index
    %c0_325 = arith.constant 0 : index
    %c0_326 = arith.constant 0 : index
    %576 = vector.load %arg8[%c8_324, %c0_325, %c0_326] : memref<12x32x128xbf16, #tpu.memory_space<vmem>>, vector<1x32x128xbf16>
    %577 = vector.shape_cast %576 : vector<1x32x128xbf16> to vector<32x128xbf16>
    %cst_327 = arith.constant dense<0.000000e+00> : vector<8x128xf32>
    %578 = tpu.matmul %575, %577, %cst_327 {dimension_numbers = #tpu.dot_dimension_numbers<[1], [0], [0], [1], [0, 0, 1, 1], [], []>} : vector<8x32xbf16>, vector<32x128xbf16>, vector<8x128xf32> -> vector<8x128xf32>
    %579 = arith.addf %524, %578 : vector<8x128xf32>
    %c0_328 = arith.constant 0 : index
    %c9_329 = arith.constant 9 : index
    %c0_330 = arith.constant 0 : index
    %c0_331 = arith.constant 0 : index
    %580 = vector.load %arg1[%c0_328, %c9_329, %c0_330, %c0_331] : memref<1x16x8x64xbf16, #tpu.memory_space<vmem>>, vector<1x1x8x64xbf16>
    %581 = vector.shape_cast %580 : vector<1x1x8x64xbf16> to vector<8x64xbf16>
    %cst_332 = arith.constant dense<0.000000e+00> : vector<8x32xf32>
    %582 = tpu.matmul %581, %44, %cst_332 {dimension_numbers = #tpu.dot_dimension_numbers<[1], [0], [0], [1], [0, 0, 1, 1], [], []>} : vector<8x64xbf16>, vector<64x32xbf16>, vector<8x32xf32> -> vector<8x32xf32>
    %583 = vector.broadcast %48 : vector<1x32xf32> to vector<8x32xf32>
    %584 = arith.addf %582, %583 : vector<8x32xf32>
    %585 = arith.extf %486 : vector<8x32xbf16> to vector<8x32xf32>
    %cst_333 = arith.constant 1.000000e+00 : f32
    %586 = vector.broadcast %cst_333 : f32 to vector<8x32xf32>
    %587 = arith.subf %586, %585 : vector<8x32xf32>
    %cst_334 = arith.constant 2.000000e-01 : f32
    %588 = vector.broadcast %cst_334 : f32 to vector<8x32xf32>
    %589 = arith.mulf %588, %587 : vector<8x32xf32>
    %590 = arith.mulf %481, %589 : vector<8x32xf32>
    %591 = arith.addf %590, %584 : vector<8x32xf32>
    %cst_335 = arith.constant 5.000000e-01 : f32
    %592 = vector.broadcast %cst_335 : f32 to vector<8x32xf32>
    %593 = arith.cmpf ogt, %591, %592 : vector<8x32xf32>
    %594 = arith.extui %593 : vector<8x32xi1> to vector<8x32xi32>
    %595 = arith.sitofp %594 : vector<8x32xi32> to vector<8x32xf32>
    %596 = arith.truncf %595 : vector<8x32xf32> to vector<8x32xbf16>
    %c3_336 = arith.constant 3 : index
    %c0_337 = arith.constant 0 : index
    %c0_338 = arith.constant 0 : index
    %597 = vector.load %arg4[%c3_336, %c0_337, %c0_338] : memref<6x32x32xbf16, #tpu.memory_space<vmem>>, vector<1x32x32xbf16>
    %598 = vector.shape_cast %597 : vector<1x32x32xbf16> to vector<32x32xbf16>
    %cst_339 = arith.constant dense<0.000000e+00> : vector<8x32xf32>
    %599 = tpu.matmul %596, %598, %cst_339 {dimension_numbers = #tpu.dot_dimension_numbers<[1], [0], [0], [1], [0, 0, 1, 1], [], []>} : vector<8x32xbf16>, vector<32x32xbf16>, vector<8x32xf32> -> vector<8x32xf32>
    %600 = vector.broadcast %56 : vector<1x32xf32> to vector<8x32xf32>
    %601 = arith.addf %599, %600 : vector<8x32xf32>
    %602 = arith.extf %283 : vector<8x32xbf16> to vector<8x32xf32>
    %cst_340 = arith.constant 1.000000e+00 : f32
    %603 = vector.broadcast %cst_340 : f32 to vector<8x32xf32>
    %604 = arith.subf %603, %602 : vector<8x32xf32>
    %cst_341 = arith.constant 2.000000e-01 : f32
    %605 = vector.broadcast %cst_341 : f32 to vector<8x32xf32>
    %606 = arith.mulf %605, %604 : vector<8x32xf32>
    %607 = arith.mulf %278, %606 : vector<8x32xf32>
    %608 = arith.addf %607, %601 : vector<8x32xf32>
    %cst_342 = arith.constant 5.000000e-01 : f32
    %609 = vector.broadcast %cst_342 : f32 to vector<8x32xf32>
    %610 = arith.cmpf ogt, %608, %609 : vector<8x32xf32>
    %611 = arith.extui %610 : vector<8x32xi1> to vector<8x32xi32>
    %612 = arith.sitofp %611 : vector<8x32xi32> to vector<8x32xf32>
    %613 = arith.truncf %612 : vector<8x32xf32> to vector<8x32xbf16>
    %c9_343 = arith.constant 9 : index
    %c0_344 = arith.constant 0 : index
    %c0_345 = arith.constant 0 : index
    %614 = vector.load %arg6[%c9_343, %c0_344, %c0_345] : memref<12x32x32xbf16, #tpu.memory_space<vmem>>, vector<1x32x32xbf16>
    %615 = vector.shape_cast %614 : vector<1x32x32xbf16> to vector<32x32xbf16>
    %cst_346 = arith.constant dense<0.000000e+00> : vector<8x32xf32>
    %616 = tpu.matmul %613, %615, %cst_346 {dimension_numbers = #tpu.dot_dimension_numbers<[1], [0], [0], [1], [0, 0, 1, 1], [], []>} : vector<8x32xbf16>, vector<32x32xbf16>, vector<8x32xf32> -> vector<8x32xf32>
    %617 = vector.broadcast %80 : vector<1x32xf32> to vector<8x32xf32>
    %618 = arith.addf %616, %617 : vector<8x32xf32>
    %619 = arith.extf %37 : vector<8x32xbf16> to vector<8x32xf32>
    %cst_347 = arith.constant 1.000000e+00 : f32
    %620 = vector.broadcast %cst_347 : f32 to vector<8x32xf32>
    %621 = arith.subf %620, %619 : vector<8x32xf32>
    %cst_348 = arith.constant 2.000000e-01 : f32
    %622 = vector.broadcast %cst_348 : f32 to vector<8x32xf32>
    %623 = arith.mulf %622, %621 : vector<8x32xf32>
    %624 = arith.mulf %25, %623 : vector<8x32xf32>
    %625 = arith.addf %624, %618 : vector<8x32xf32>
    %cst_349 = arith.constant 5.000000e-01 : f32
    %626 = vector.broadcast %cst_349 : f32 to vector<8x32xf32>
    %627 = arith.cmpf ogt, %625, %626 : vector<8x32xf32>
    %628 = arith.extui %627 : vector<8x32xi1> to vector<8x32xi32>
    %629 = arith.sitofp %628 : vector<8x32xi32> to vector<8x32xf32>
    %630 = arith.truncf %629 : vector<8x32xf32> to vector<8x32xbf16>
    %c9_350 = arith.constant 9 : index
    %c0_351 = arith.constant 0 : index
    %c0_352 = arith.constant 0 : index
    %631 = vector.load %arg8[%c9_350, %c0_351, %c0_352] : memref<12x32x128xbf16, #tpu.memory_space<vmem>>, vector<1x32x128xbf16>
    %632 = vector.shape_cast %631 : vector<1x32x128xbf16> to vector<32x128xbf16>
    %cst_353 = arith.constant dense<0.000000e+00> : vector<8x128xf32>
    %633 = tpu.matmul %630, %632, %cst_353 {dimension_numbers = #tpu.dot_dimension_numbers<[1], [0], [0], [1], [0, 0, 1, 1], [], []>} : vector<8x32xbf16>, vector<32x128xbf16>, vector<8x128xf32> -> vector<8x128xf32>
    %634 = arith.addf %579, %633 : vector<8x128xf32>
    %c0_354 = arith.constant 0 : index
    %c10_355 = arith.constant 10 : index
    %c0_356 = arith.constant 0 : index
    %c0_357 = arith.constant 0 : index
    %635 = vector.load %arg1[%c0_354, %c10_355, %c0_356, %c0_357] : memref<1x16x8x64xbf16, #tpu.memory_space<vmem>>, vector<1x1x8x64xbf16>
    %636 = vector.shape_cast %635 : vector<1x1x8x64xbf16> to vector<8x64xbf16>
    %cst_358 = arith.constant dense<0.000000e+00> : vector<8x32xf32>
    %637 = tpu.matmul %636, %42, %cst_358 {dimension_numbers = #tpu.dot_dimension_numbers<[1], [0], [0], [1], [0, 0, 1, 1], [], []>} : vector<8x64xbf16>, vector<64x32xbf16>, vector<8x32xf32> -> vector<8x32xf32>
    %638 = vector.broadcast %46 : vector<1x32xf32> to vector<8x32xf32>
    %639 = arith.addf %637, %638 : vector<8x32xf32>
    %640 = arith.extf %541 : vector<8x32xbf16> to vector<8x32xf32>
    %cst_359 = arith.constant 1.000000e+00 : f32
    %641 = vector.broadcast %cst_359 : f32 to vector<8x32xf32>
    %642 = arith.subf %641, %640 : vector<8x32xf32>
    %cst_360 = arith.constant 2.000000e-01 : f32
    %643 = vector.broadcast %cst_360 : f32 to vector<8x32xf32>
    %644 = arith.mulf %643, %642 : vector<8x32xf32>
    %645 = arith.mulf %536, %644 : vector<8x32xf32>
    %646 = arith.addf %645, %639 : vector<8x32xf32>
    %cst_361 = arith.constant 5.000000e-01 : f32
    %647 = vector.broadcast %cst_361 : f32 to vector<8x32xf32>
    %648 = arith.cmpf ogt, %646, %647 : vector<8x32xf32>
    %649 = arith.extui %648 : vector<8x32xi1> to vector<8x32xi32>
    %650 = arith.sitofp %649 : vector<8x32xi32> to vector<8x32xf32>
    %651 = arith.truncf %650 : vector<8x32xf32> to vector<8x32xbf16>
    %c4_362 = arith.constant 4 : index
    %c0_363 = arith.constant 0 : index
    %c0_364 = arith.constant 0 : index
    %652 = vector.load %arg4[%c4_362, %c0_363, %c0_364] : memref<6x32x32xbf16, #tpu.memory_space<vmem>>, vector<1x32x32xbf16>
    %653 = vector.shape_cast %652 : vector<1x32x32xbf16> to vector<32x32xbf16>
    %cst_365 = arith.constant dense<0.000000e+00> : vector<8x32xf32>
    %654 = tpu.matmul %651, %653, %cst_365 {dimension_numbers = #tpu.dot_dimension_numbers<[1], [0], [0], [1], [0, 0, 1, 1], [], []>} : vector<8x32xbf16>, vector<32x32xbf16>, vector<8x32xf32> -> vector<8x32xf32>
    %655 = vector.broadcast %58 : vector<1x32xf32> to vector<8x32xf32>
    %656 = arith.addf %654, %655 : vector<8x32xf32>
    %657 = arith.extf %338 : vector<8x32xbf16> to vector<8x32xf32>
    %cst_366 = arith.constant 1.000000e+00 : f32
    %658 = vector.broadcast %cst_366 : f32 to vector<8x32xf32>
    %659 = arith.subf %658, %657 : vector<8x32xf32>
    %cst_367 = arith.constant 2.000000e-01 : f32
    %660 = vector.broadcast %cst_367 : f32 to vector<8x32xf32>
    %661 = arith.mulf %660, %659 : vector<8x32xf32>
    %662 = arith.mulf %333, %661 : vector<8x32xf32>
    %663 = arith.addf %662, %656 : vector<8x32xf32>
    %cst_368 = arith.constant 5.000000e-01 : f32
    %664 = vector.broadcast %cst_368 : f32 to vector<8x32xf32>
    %665 = arith.cmpf ogt, %663, %664 : vector<8x32xf32>
    %666 = arith.extui %665 : vector<8x32xi1> to vector<8x32xi32>
    %667 = arith.sitofp %666 : vector<8x32xi32> to vector<8x32xf32>
    %668 = arith.truncf %667 : vector<8x32xf32> to vector<8x32xbf16>
    %c10_369 = arith.constant 10 : index
    %c0_370 = arith.constant 0 : index
    %c0_371 = arith.constant 0 : index
    %669 = vector.load %arg6[%c10_369, %c0_370, %c0_371] : memref<12x32x32xbf16, #tpu.memory_space<vmem>>, vector<1x32x32xbf16>
    %670 = vector.shape_cast %669 : vector<1x32x32xbf16> to vector<32x32xbf16>
    %cst_372 = arith.constant dense<0.000000e+00> : vector<8x32xf32>
    %671 = tpu.matmul %668, %670, %cst_372 {dimension_numbers = #tpu.dot_dimension_numbers<[1], [0], [0], [1], [0, 0, 1, 1], [], []>} : vector<8x32xbf16>, vector<32x32xbf16>, vector<8x32xf32> -> vector<8x32xf32>
    %672 = vector.broadcast %82 : vector<1x32xf32> to vector<8x32xf32>
    %673 = arith.addf %671, %672 : vector<8x32xf32>
    %674 = arith.extf %38 : vector<8x32xbf16> to vector<8x32xf32>
    %cst_373 = arith.constant 1.000000e+00 : f32
    %675 = vector.broadcast %cst_373 : f32 to vector<8x32xf32>
    %676 = arith.subf %675, %674 : vector<8x32xf32>
    %cst_374 = arith.constant 2.000000e-01 : f32
    %677 = vector.broadcast %cst_374 : f32 to vector<8x32xf32>
    %678 = arith.mulf %677, %676 : vector<8x32xf32>
    %679 = arith.mulf %26, %678 : vector<8x32xf32>
    %680 = arith.addf %679, %673 : vector<8x32xf32>
    %cst_375 = arith.constant 5.000000e-01 : f32
    %681 = vector.broadcast %cst_375 : f32 to vector<8x32xf32>
    %682 = arith.cmpf ogt, %680, %681 : vector<8x32xf32>
    %683 = arith.extui %682 : vector<8x32xi1> to vector<8x32xi32>
    %684 = arith.sitofp %683 : vector<8x32xi32> to vector<8x32xf32>
    %685 = arith.truncf %684 : vector<8x32xf32> to vector<8x32xbf16>
    %c10_376 = arith.constant 10 : index
    %c0_377 = arith.constant 0 : index
    %c0_378 = arith.constant 0 : index
    %686 = vector.load %arg8[%c10_376, %c0_377, %c0_378] : memref<12x32x128xbf16, #tpu.memory_space<vmem>>, vector<1x32x128xbf16>
    %687 = vector.shape_cast %686 : vector<1x32x128xbf16> to vector<32x128xbf16>
    %cst_379 = arith.constant dense<0.000000e+00> : vector<8x128xf32>
    %688 = tpu.matmul %685, %687, %cst_379 {dimension_numbers = #tpu.dot_dimension_numbers<[1], [0], [0], [1], [0, 0, 1, 1], [], []>} : vector<8x32xbf16>, vector<32x128xbf16>, vector<8x128xf32> -> vector<8x128xf32>
    %689 = arith.addf %634, %688 : vector<8x128xf32>
    %c0_380 = arith.constant 0 : index
    %c11_381 = arith.constant 11 : index
    %c0_382 = arith.constant 0 : index
    %c0_383 = arith.constant 0 : index
    %690 = vector.load %arg1[%c0_380, %c11_381, %c0_382, %c0_383] : memref<1x16x8x64xbf16, #tpu.memory_space<vmem>>, vector<1x1x8x64xbf16>
    %691 = vector.shape_cast %690 : vector<1x1x8x64xbf16> to vector<8x64xbf16>
    %cst_384 = arith.constant dense<0.000000e+00> : vector<8x32xf32>
    %692 = tpu.matmul %691, %44, %cst_384 {dimension_numbers = #tpu.dot_dimension_numbers<[1], [0], [0], [1], [0, 0, 1, 1], [], []>} : vector<8x64xbf16>, vector<64x32xbf16>, vector<8x32xf32> -> vector<8x32xf32>
    %693 = vector.broadcast %48 : vector<1x32xf32> to vector<8x32xf32>
    %694 = arith.addf %692, %693 : vector<8x32xf32>
    %695 = arith.extf %596 : vector<8x32xbf16> to vector<8x32xf32>
    %cst_385 = arith.constant 1.000000e+00 : f32
    %696 = vector.broadcast %cst_385 : f32 to vector<8x32xf32>
    %697 = arith.subf %696, %695 : vector<8x32xf32>
    %cst_386 = arith.constant 2.000000e-01 : f32
    %698 = vector.broadcast %cst_386 : f32 to vector<8x32xf32>
    %699 = arith.mulf %698, %697 : vector<8x32xf32>
    %700 = arith.mulf %591, %699 : vector<8x32xf32>
    %701 = arith.addf %700, %694 : vector<8x32xf32>
    %cst_387 = arith.constant 5.000000e-01 : f32
    %702 = vector.broadcast %cst_387 : f32 to vector<8x32xf32>
    %703 = arith.cmpf ogt, %701, %702 : vector<8x32xf32>
    %704 = arith.extui %703 : vector<8x32xi1> to vector<8x32xi32>
    %705 = arith.sitofp %704 : vector<8x32xi32> to vector<8x32xf32>
    %706 = arith.truncf %705 : vector<8x32xf32> to vector<8x32xbf16>
    %c5_388 = arith.constant 5 : index
    %c0_389 = arith.constant 0 : index
    %c0_390 = arith.constant 0 : index
    %707 = vector.load %arg4[%c5_388, %c0_389, %c0_390] : memref<6x32x32xbf16, #tpu.memory_space<vmem>>, vector<1x32x32xbf16>
    %708 = vector.shape_cast %707 : vector<1x32x32xbf16> to vector<32x32xbf16>
    %cst_391 = arith.constant dense<0.000000e+00> : vector<8x32xf32>
    %709 = tpu.matmul %706, %708, %cst_391 {dimension_numbers = #tpu.dot_dimension_numbers<[1], [0], [0], [1], [0, 0, 1, 1], [], []>} : vector<8x32xbf16>, vector<32x32xbf16>, vector<8x32xf32> -> vector<8x32xf32>
    %710 = vector.broadcast %60 : vector<1x32xf32> to vector<8x32xf32>
    %711 = arith.addf %709, %710 : vector<8x32xf32>
    %712 = arith.extf %393 : vector<8x32xbf16> to vector<8x32xf32>
    %cst_392 = arith.constant 1.000000e+00 : f32
    %713 = vector.broadcast %cst_392 : f32 to vector<8x32xf32>
    %714 = arith.subf %713, %712 : vector<8x32xf32>
    %cst_393 = arith.constant 2.000000e-01 : f32
    %715 = vector.broadcast %cst_393 : f32 to vector<8x32xf32>
    %716 = arith.mulf %715, %714 : vector<8x32xf32>
    %717 = arith.mulf %388, %716 : vector<8x32xf32>
    %718 = arith.addf %717, %711 : vector<8x32xf32>
    %cst_394 = arith.constant 5.000000e-01 : f32
    %719 = vector.broadcast %cst_394 : f32 to vector<8x32xf32>
    %720 = arith.cmpf ogt, %718, %719 : vector<8x32xf32>
    %721 = arith.extui %720 : vector<8x32xi1> to vector<8x32xi32>
    %722 = arith.sitofp %721 : vector<8x32xi32> to vector<8x32xf32>
    %723 = arith.truncf %722 : vector<8x32xf32> to vector<8x32xbf16>
    %c11_395 = arith.constant 11 : index
    %c0_396 = arith.constant 0 : index
    %c0_397 = arith.constant 0 : index
    %724 = vector.load %arg6[%c11_395, %c0_396, %c0_397] : memref<12x32x32xbf16, #tpu.memory_space<vmem>>, vector<1x32x32xbf16>
    %725 = vector.shape_cast %724 : vector<1x32x32xbf16> to vector<32x32xbf16>
    %cst_398 = arith.constant dense<0.000000e+00> : vector<8x32xf32>
    %726 = tpu.matmul %723, %725, %cst_398 {dimension_numbers = #tpu.dot_dimension_numbers<[1], [0], [0], [1], [0, 0, 1, 1], [], []>} : vector<8x32xbf16>, vector<32x32xbf16>, vector<8x32xf32> -> vector<8x32xf32>
    %727 = vector.broadcast %84 : vector<1x32xf32> to vector<8x32xf32>
    %728 = arith.addf %726, %727 : vector<8x32xf32>
    %729 = arith.extf %39 : vector<8x32xbf16> to vector<8x32xf32>
    %cst_399 = arith.constant 1.000000e+00 : f32
    %730 = vector.broadcast %cst_399 : f32 to vector<8x32xf32>
    %731 = arith.subf %730, %729 : vector<8x32xf32>
    %cst_400 = arith.constant 2.000000e-01 : f32
    %732 = vector.broadcast %cst_400 : f32 to vector<8x32xf32>
    %733 = arith.mulf %732, %731 : vector<8x32xf32>
    %734 = arith.mulf %27, %733 : vector<8x32xf32>
    %735 = arith.addf %734, %728 : vector<8x32xf32>
    %cst_401 = arith.constant 5.000000e-01 : f32
    %736 = vector.broadcast %cst_401 : f32 to vector<8x32xf32>
    %737 = arith.cmpf ogt, %735, %736 : vector<8x32xf32>
    %738 = arith.extui %737 : vector<8x32xi1> to vector<8x32xi32>
    %739 = arith.sitofp %738 : vector<8x32xi32> to vector<8x32xf32>
    %740 = arith.truncf %739 : vector<8x32xf32> to vector<8x32xbf16>
    %c11_402 = arith.constant 11 : index
    %c0_403 = arith.constant 0 : index
    %c0_404 = arith.constant 0 : index
    %741 = vector.load %arg8[%c11_402, %c0_403, %c0_404] : memref<12x32x128xbf16, #tpu.memory_space<vmem>>, vector<1x32x128xbf16>
    %742 = vector.shape_cast %741 : vector<1x32x128xbf16> to vector<32x128xbf16>
    %cst_405 = arith.constant dense<0.000000e+00> : vector<8x128xf32>
    %743 = tpu.matmul %740, %742, %cst_405 {dimension_numbers = #tpu.dot_dimension_numbers<[1], [0], [0], [1], [0, 0, 1, 1], [], []>} : vector<8x32xbf16>, vector<32x128xbf16>, vector<8x128xf32> -> vector<8x128xf32>
    %744 = arith.addf %689, %743 : vector<8x128xf32>
    %c0_406 = arith.constant 0 : index
    %c12 = arith.constant 12 : index
    %c0_407 = arith.constant 0 : index
    %c0_408 = arith.constant 0 : index
    %745 = vector.load %arg1[%c0_406, %c12, %c0_407, %c0_408] : memref<1x16x8x64xbf16, #tpu.memory_space<vmem>>, vector<1x1x8x64xbf16>
    %746 = vector.shape_cast %745 : vector<1x1x8x64xbf16> to vector<8x64xbf16>
    %cst_409 = arith.constant dense<0.000000e+00> : vector<8x32xf32>
    %747 = tpu.matmul %746, %42, %cst_409 {dimension_numbers = #tpu.dot_dimension_numbers<[1], [0], [0], [1], [0, 0, 1, 1], [], []>} : vector<8x64xbf16>, vector<64x32xbf16>, vector<8x32xf32> -> vector<8x32xf32>
    %748 = vector.broadcast %46 : vector<1x32xf32> to vector<8x32xf32>
    %749 = arith.addf %747, %748 : vector<8x32xf32>
    %750 = arith.extf %651 : vector<8x32xbf16> to vector<8x32xf32>
    %cst_410 = arith.constant 1.000000e+00 : f32
    %751 = vector.broadcast %cst_410 : f32 to vector<8x32xf32>
    %752 = arith.subf %751, %750 : vector<8x32xf32>
    %cst_411 = arith.constant 2.000000e-01 : f32
    %753 = vector.broadcast %cst_411 : f32 to vector<8x32xf32>
    %754 = arith.mulf %753, %752 : vector<8x32xf32>
    %755 = arith.mulf %646, %754 : vector<8x32xf32>
    %756 = arith.addf %755, %749 : vector<8x32xf32>
    %cst_412 = arith.constant 5.000000e-01 : f32
    %757 = vector.broadcast %cst_412 : f32 to vector<8x32xf32>
    %758 = arith.cmpf ogt, %756, %757 : vector<8x32xf32>
    %759 = arith.extui %758 : vector<8x32xi1> to vector<8x32xi32>
    %760 = arith.sitofp %759 : vector<8x32xi32> to vector<8x32xf32>
    %761 = arith.truncf %760 : vector<8x32xf32> to vector<8x32xbf16>
    %c0_413 = arith.constant 0 : index
    %c0_414 = arith.constant 0 : index
    %c0_415 = arith.constant 0 : index
    %762 = vector.load %arg4[%c0_413, %c0_414, %c0_415] : memref<6x32x32xbf16, #tpu.memory_space<vmem>>, vector<1x32x32xbf16>
    %763 = vector.shape_cast %762 : vector<1x32x32xbf16> to vector<32x32xbf16>
    %cst_416 = arith.constant dense<0.000000e+00> : vector<8x32xf32>
    %764 = tpu.matmul %761, %763, %cst_416 {dimension_numbers = #tpu.dot_dimension_numbers<[1], [0], [0], [1], [0, 0, 1, 1], [], []>} : vector<8x32xbf16>, vector<32x32xbf16>, vector<8x32xf32> -> vector<8x32xf32>
    %765 = vector.broadcast %50 : vector<1x32xf32> to vector<8x32xf32>
    %766 = arith.addf %764, %765 : vector<8x32xf32>
    %767 = arith.extf %448 : vector<8x32xbf16> to vector<8x32xf32>
    %cst_417 = arith.constant 1.000000e+00 : f32
    %768 = vector.broadcast %cst_417 : f32 to vector<8x32xf32>
    %769 = arith.subf %768, %767 : vector<8x32xf32>
    %cst_418 = arith.constant 2.000000e-01 : f32
    %770 = vector.broadcast %cst_418 : f32 to vector<8x32xf32>
    %771 = arith.mulf %770, %769 : vector<8x32xf32>
    %772 = arith.mulf %443, %771 : vector<8x32xf32>
    %773 = arith.addf %772, %766 : vector<8x32xf32>
    %cst_419 = arith.constant 5.000000e-01 : f32
    %774 = vector.broadcast %cst_419 : f32 to vector<8x32xf32>
    %775 = arith.cmpf ogt, %773, %774 : vector<8x32xf32>
    %776 = arith.extui %775 : vector<8x32xi1> to vector<8x32xi32>
    %777 = arith.sitofp %776 : vector<8x32xi32> to vector<8x32xf32>
    %778 = arith.truncf %777 : vector<8x32xf32> to vector<8x32xbf16>
    %c0_420 = arith.constant 0 : index
    %c0_421 = arith.constant 0 : index
    %c0_422 = arith.constant 0 : index
    %779 = vector.load %arg6[%c0_420, %c0_421, %c0_422] : memref<12x32x32xbf16, #tpu.memory_space<vmem>>, vector<1x32x32xbf16>
    %780 = vector.shape_cast %779 : vector<1x32x32xbf16> to vector<32x32xbf16>
    %cst_423 = arith.constant dense<0.000000e+00> : vector<8x32xf32>
    %781 = tpu.matmul %778, %780, %cst_423 {dimension_numbers = #tpu.dot_dimension_numbers<[1], [0], [0], [1], [0, 0, 1, 1], [], []>} : vector<8x32xbf16>, vector<32x32xbf16>, vector<8x32xf32> -> vector<8x32xf32>
    %782 = vector.broadcast %62 : vector<1x32xf32> to vector<8x32xf32>
    %783 = arith.addf %781, %782 : vector<8x32xf32>
    %784 = arith.extf %135 : vector<8x32xbf16> to vector<8x32xf32>
    %cst_424 = arith.constant 1.000000e+00 : f32
    %785 = vector.broadcast %cst_424 : f32 to vector<8x32xf32>
    %786 = arith.subf %785, %784 : vector<8x32xf32>
    %cst_425 = arith.constant 2.000000e-01 : f32
    %787 = vector.broadcast %cst_425 : f32 to vector<8x32xf32>
    %788 = arith.mulf %787, %786 : vector<8x32xf32>
    %789 = arith.mulf %130, %788 : vector<8x32xf32>
    %790 = arith.addf %789, %783 : vector<8x32xf32>
    %cst_426 = arith.constant 5.000000e-01 : f32
    %791 = vector.broadcast %cst_426 : f32 to vector<8x32xf32>
    %792 = arith.cmpf ogt, %790, %791 : vector<8x32xf32>
    %793 = arith.extui %792 : vector<8x32xi1> to vector<8x32xi32>
    %794 = arith.sitofp %793 : vector<8x32xi32> to vector<8x32xf32>
    %795 = arith.truncf %794 : vector<8x32xf32> to vector<8x32xbf16>
    %c0_427 = arith.constant 0 : index
    %c0_428 = arith.constant 0 : index
    %c0_429 = arith.constant 0 : index
    %796 = vector.load %arg8[%c0_427, %c0_428, %c0_429] : memref<12x32x128xbf16, #tpu.memory_space<vmem>>, vector<1x32x128xbf16>
    %797 = vector.shape_cast %796 : vector<1x32x128xbf16> to vector<32x128xbf16>
    %cst_430 = arith.constant dense<0.000000e+00> : vector<8x128xf32>
    %798 = tpu.matmul %795, %797, %cst_430 {dimension_numbers = #tpu.dot_dimension_numbers<[1], [0], [0], [1], [0, 0, 1, 1], [], []>} : vector<8x32xbf16>, vector<32x128xbf16>, vector<8x128xf32> -> vector<8x128xf32>
    %799 = arith.addf %744, %798 : vector<8x128xf32>
    %c0_431 = arith.constant 0 : index
    %c13 = arith.constant 13 : index
    %c0_432 = arith.constant 0 : index
    %c0_433 = arith.constant 0 : index
    %800 = vector.load %arg1[%c0_431, %c13, %c0_432, %c0_433] : memref<1x16x8x64xbf16, #tpu.memory_space<vmem>>, vector<1x1x8x64xbf16>
    %801 = vector.shape_cast %800 : vector<1x1x8x64xbf16> to vector<8x64xbf16>
    %cst_434 = arith.constant dense<0.000000e+00> : vector<8x32xf32>
    %802 = tpu.matmul %801, %44, %cst_434 {dimension_numbers = #tpu.dot_dimension_numbers<[1], [0], [0], [1], [0, 0, 1, 1], [], []>} : vector<8x64xbf16>, vector<64x32xbf16>, vector<8x32xf32> -> vector<8x32xf32>
    %803 = vector.broadcast %48 : vector<1x32xf32> to vector<8x32xf32>
    %804 = arith.addf %802, %803 : vector<8x32xf32>
    %805 = arith.extf %706 : vector<8x32xbf16> to vector<8x32xf32>
    %cst_435 = arith.constant 1.000000e+00 : f32
    %806 = vector.broadcast %cst_435 : f32 to vector<8x32xf32>
    %807 = arith.subf %806, %805 : vector<8x32xf32>
    %cst_436 = arith.constant 2.000000e-01 : f32
    %808 = vector.broadcast %cst_436 : f32 to vector<8x32xf32>
    %809 = arith.mulf %808, %807 : vector<8x32xf32>
    %810 = arith.mulf %701, %809 : vector<8x32xf32>
    %811 = arith.addf %810, %804 : vector<8x32xf32>
    %cst_437 = arith.constant 5.000000e-01 : f32
    %812 = vector.broadcast %cst_437 : f32 to vector<8x32xf32>
    %813 = arith.cmpf ogt, %811, %812 : vector<8x32xf32>
    %814 = arith.extui %813 : vector<8x32xi1> to vector<8x32xi32>
    %815 = arith.sitofp %814 : vector<8x32xi32> to vector<8x32xf32>
    %816 = arith.truncf %815 : vector<8x32xf32> to vector<8x32xbf16>
    %c1_438 = arith.constant 1 : index
    %c0_439 = arith.constant 0 : index
    %c0_440 = arith.constant 0 : index
    %817 = vector.load %arg4[%c1_438, %c0_439, %c0_440] : memref<6x32x32xbf16, #tpu.memory_space<vmem>>, vector<1x32x32xbf16>
    %818 = vector.shape_cast %817 : vector<1x32x32xbf16> to vector<32x32xbf16>
    %cst_441 = arith.constant dense<0.000000e+00> : vector<8x32xf32>
    %819 = tpu.matmul %816, %818, %cst_441 {dimension_numbers = #tpu.dot_dimension_numbers<[1], [0], [0], [1], [0, 0, 1, 1], [], []>} : vector<8x32xbf16>, vector<32x32xbf16>, vector<8x32xf32> -> vector<8x32xf32>
    %820 = vector.broadcast %52 : vector<1x32xf32> to vector<8x32xf32>
    %821 = arith.addf %819, %820 : vector<8x32xf32>
    %822 = arith.extf %503 : vector<8x32xbf16> to vector<8x32xf32>
    %cst_442 = arith.constant 1.000000e+00 : f32
    %823 = vector.broadcast %cst_442 : f32 to vector<8x32xf32>
    %824 = arith.subf %823, %822 : vector<8x32xf32>
    %cst_443 = arith.constant 2.000000e-01 : f32
    %825 = vector.broadcast %cst_443 : f32 to vector<8x32xf32>
    %826 = arith.mulf %825, %824 : vector<8x32xf32>
    %827 = arith.mulf %498, %826 : vector<8x32xf32>
    %828 = arith.addf %827, %821 : vector<8x32xf32>
    %cst_444 = arith.constant 5.000000e-01 : f32
    %829 = vector.broadcast %cst_444 : f32 to vector<8x32xf32>
    %830 = arith.cmpf ogt, %828, %829 : vector<8x32xf32>
    %831 = arith.extui %830 : vector<8x32xi1> to vector<8x32xi32>
    %832 = arith.sitofp %831 : vector<8x32xi32> to vector<8x32xf32>
    %833 = arith.truncf %832 : vector<8x32xf32> to vector<8x32xbf16>
    %c1_445 = arith.constant 1 : index
    %c0_446 = arith.constant 0 : index
    %c0_447 = arith.constant 0 : index
    %834 = vector.load %arg6[%c1_445, %c0_446, %c0_447] : memref<12x32x32xbf16, #tpu.memory_space<vmem>>, vector<1x32x32xbf16>
    %835 = vector.shape_cast %834 : vector<1x32x32xbf16> to vector<32x32xbf16>
    %cst_448 = arith.constant dense<0.000000e+00> : vector<8x32xf32>
    %836 = tpu.matmul %833, %835, %cst_448 {dimension_numbers = #tpu.dot_dimension_numbers<[1], [0], [0], [1], [0, 0, 1, 1], [], []>} : vector<8x32xbf16>, vector<32x32xbf16>, vector<8x32xf32> -> vector<8x32xf32>
    %837 = vector.broadcast %64 : vector<1x32xf32> to vector<8x32xf32>
    %838 = arith.addf %836, %837 : vector<8x32xf32>
    %839 = arith.extf %190 : vector<8x32xbf16> to vector<8x32xf32>
    %cst_449 = arith.constant 1.000000e+00 : f32
    %840 = vector.broadcast %cst_449 : f32 to vector<8x32xf32>
    %841 = arith.subf %840, %839 : vector<8x32xf32>
    %cst_450 = arith.constant 2.000000e-01 : f32
    %842 = vector.broadcast %cst_450 : f32 to vector<8x32xf32>
    %843 = arith.mulf %842, %841 : vector<8x32xf32>
    %844 = arith.mulf %185, %843 : vector<8x32xf32>
    %845 = arith.addf %844, %838 : vector<8x32xf32>
    %cst_451 = arith.constant 5.000000e-01 : f32
    %846 = vector.broadcast %cst_451 : f32 to vector<8x32xf32>
    %847 = arith.cmpf ogt, %845, %846 : vector<8x32xf32>
    %848 = arith.extui %847 : vector<8x32xi1> to vector<8x32xi32>
    %849 = arith.sitofp %848 : vector<8x32xi32> to vector<8x32xf32>
    %850 = arith.truncf %849 : vector<8x32xf32> to vector<8x32xbf16>
    %c1_452 = arith.constant 1 : index
    %c0_453 = arith.constant 0 : index
    %c0_454 = arith.constant 0 : index
    %851 = vector.load %arg8[%c1_452, %c0_453, %c0_454] : memref<12x32x128xbf16, #tpu.memory_space<vmem>>, vector<1x32x128xbf16>
    %852 = vector.shape_cast %851 : vector<1x32x128xbf16> to vector<32x128xbf16>
    %cst_455 = arith.constant dense<0.000000e+00> : vector<8x128xf32>
    %853 = tpu.matmul %850, %852, %cst_455 {dimension_numbers = #tpu.dot_dimension_numbers<[1], [0], [0], [1], [0, 0, 1, 1], [], []>} : vector<8x32xbf16>, vector<32x128xbf16>, vector<8x128xf32> -> vector<8x128xf32>
    %854 = arith.addf %799, %853 : vector<8x128xf32>
    %c0_456 = arith.constant 0 : index
    %c14 = arith.constant 14 : index
    %c0_457 = arith.constant 0 : index
    %c0_458 = arith.constant 0 : index
    %855 = vector.load %arg1[%c0_456, %c14, %c0_457, %c0_458] : memref<1x16x8x64xbf16, #tpu.memory_space<vmem>>, vector<1x1x8x64xbf16>
    %856 = vector.shape_cast %855 : vector<1x1x8x64xbf16> to vector<8x64xbf16>
    %cst_459 = arith.constant dense<0.000000e+00> : vector<8x32xf32>
    %857 = tpu.matmul %856, %42, %cst_459 {dimension_numbers = #tpu.dot_dimension_numbers<[1], [0], [0], [1], [0, 0, 1, 1], [], []>} : vector<8x64xbf16>, vector<64x32xbf16>, vector<8x32xf32> -> vector<8x32xf32>
    %858 = vector.broadcast %46 : vector<1x32xf32> to vector<8x32xf32>
    %859 = arith.addf %857, %858 : vector<8x32xf32>
    %860 = arith.extf %761 : vector<8x32xbf16> to vector<8x32xf32>
    %cst_460 = arith.constant 1.000000e+00 : f32
    %861 = vector.broadcast %cst_460 : f32 to vector<8x32xf32>
    %862 = arith.subf %861, %860 : vector<8x32xf32>
    %cst_461 = arith.constant 2.000000e-01 : f32
    %863 = vector.broadcast %cst_461 : f32 to vector<8x32xf32>
    %864 = arith.mulf %863, %862 : vector<8x32xf32>
    %865 = arith.mulf %756, %864 : vector<8x32xf32>
    %866 = arith.addf %865, %859 : vector<8x32xf32>
    %cst_462 = arith.constant 5.000000e-01 : f32
    %867 = vector.broadcast %cst_462 : f32 to vector<8x32xf32>
    %868 = arith.cmpf ogt, %866, %867 : vector<8x32xf32>
    %869 = arith.extui %868 : vector<8x32xi1> to vector<8x32xi32>
    %870 = arith.sitofp %869 : vector<8x32xi32> to vector<8x32xf32>
    %871 = arith.truncf %870 : vector<8x32xf32> to vector<8x32xbf16>
    %c2_463 = arith.constant 2 : index
    %c0_464 = arith.constant 0 : index
    %c0_465 = arith.constant 0 : index
    %872 = vector.load %arg4[%c2_463, %c0_464, %c0_465] : memref<6x32x32xbf16, #tpu.memory_space<vmem>>, vector<1x32x32xbf16>
    %873 = vector.shape_cast %872 : vector<1x32x32xbf16> to vector<32x32xbf16>
    %cst_466 = arith.constant dense<0.000000e+00> : vector<8x32xf32>
    %874 = tpu.matmul %871, %873, %cst_466 {dimension_numbers = #tpu.dot_dimension_numbers<[1], [0], [0], [1], [0, 0, 1, 1], [], []>} : vector<8x32xbf16>, vector<32x32xbf16>, vector<8x32xf32> -> vector<8x32xf32>
    %875 = vector.broadcast %54 : vector<1x32xf32> to vector<8x32xf32>
    %876 = arith.addf %874, %875 : vector<8x32xf32>
    %877 = arith.extf %558 : vector<8x32xbf16> to vector<8x32xf32>
    %cst_467 = arith.constant 1.000000e+00 : f32
    %878 = vector.broadcast %cst_467 : f32 to vector<8x32xf32>
    %879 = arith.subf %878, %877 : vector<8x32xf32>
    %cst_468 = arith.constant 2.000000e-01 : f32
    %880 = vector.broadcast %cst_468 : f32 to vector<8x32xf32>
    %881 = arith.mulf %880, %879 : vector<8x32xf32>
    %882 = arith.mulf %553, %881 : vector<8x32xf32>
    %883 = arith.addf %882, %876 : vector<8x32xf32>
    %cst_469 = arith.constant 5.000000e-01 : f32
    %884 = vector.broadcast %cst_469 : f32 to vector<8x32xf32>
    %885 = arith.cmpf ogt, %883, %884 : vector<8x32xf32>
    %886 = arith.extui %885 : vector<8x32xi1> to vector<8x32xi32>
    %887 = arith.sitofp %886 : vector<8x32xi32> to vector<8x32xf32>
    %888 = arith.truncf %887 : vector<8x32xf32> to vector<8x32xbf16>
    %c2_470 = arith.constant 2 : index
    %c0_471 = arith.constant 0 : index
    %c0_472 = arith.constant 0 : index
    %889 = vector.load %arg6[%c2_470, %c0_471, %c0_472] : memref<12x32x32xbf16, #tpu.memory_space<vmem>>, vector<1x32x32xbf16>
    %890 = vector.shape_cast %889 : vector<1x32x32xbf16> to vector<32x32xbf16>
    %cst_473 = arith.constant dense<0.000000e+00> : vector<8x32xf32>
    %891 = tpu.matmul %888, %890, %cst_473 {dimension_numbers = #tpu.dot_dimension_numbers<[1], [0], [0], [1], [0, 0, 1, 1], [], []>} : vector<8x32xbf16>, vector<32x32xbf16>, vector<8x32xf32> -> vector<8x32xf32>
    %892 = vector.broadcast %66 : vector<1x32xf32> to vector<8x32xf32>
    %893 = arith.addf %891, %892 : vector<8x32xf32>
    %894 = arith.extf %245 : vector<8x32xbf16> to vector<8x32xf32>
    %cst_474 = arith.constant 1.000000e+00 : f32
    %895 = vector.broadcast %cst_474 : f32 to vector<8x32xf32>
    %896 = arith.subf %895, %894 : vector<8x32xf32>
    %cst_475 = arith.constant 2.000000e-01 : f32
    %897 = vector.broadcast %cst_475 : f32 to vector<8x32xf32>
    %898 = arith.mulf %897, %896 : vector<8x32xf32>
    %899 = arith.mulf %240, %898 : vector<8x32xf32>
    %900 = arith.addf %899, %893 : vector<8x32xf32>
    %cst_476 = arith.constant 5.000000e-01 : f32
    %901 = vector.broadcast %cst_476 : f32 to vector<8x32xf32>
    %902 = arith.cmpf ogt, %900, %901 : vector<8x32xf32>
    %903 = arith.extui %902 : vector<8x32xi1> to vector<8x32xi32>
    %904 = arith.sitofp %903 : vector<8x32xi32> to vector<8x32xf32>
    %905 = arith.truncf %904 : vector<8x32xf32> to vector<8x32xbf16>
    %c2_477 = arith.constant 2 : index
    %c0_478 = arith.constant 0 : index
    %c0_479 = arith.constant 0 : index
    %906 = vector.load %arg8[%c2_477, %c0_478, %c0_479] : memref<12x32x128xbf16, #tpu.memory_space<vmem>>, vector<1x32x128xbf16>
    %907 = vector.shape_cast %906 : vector<1x32x128xbf16> to vector<32x128xbf16>
    %cst_480 = arith.constant dense<0.000000e+00> : vector<8x128xf32>
    %908 = tpu.matmul %905, %907, %cst_480 {dimension_numbers = #tpu.dot_dimension_numbers<[1], [0], [0], [1], [0, 0, 1, 1], [], []>} : vector<8x32xbf16>, vector<32x128xbf16>, vector<8x128xf32> -> vector<8x128xf32>
    %909 = arith.addf %854, %908 : vector<8x128xf32>
    %c0_481 = arith.constant 0 : index
    %c15 = arith.constant 15 : index
    %c0_482 = arith.constant 0 : index
    %c0_483 = arith.constant 0 : index
    %910 = vector.load %arg1[%c0_481, %c15, %c0_482, %c0_483] : memref<1x16x8x64xbf16, #tpu.memory_space<vmem>>, vector<1x1x8x64xbf16>
    %911 = vector.shape_cast %910 : vector<1x1x8x64xbf16> to vector<8x64xbf16>
    %cst_484 = arith.constant dense<0.000000e+00> : vector<8x32xf32>
    %912 = tpu.matmul %911, %44, %cst_484 {dimension_numbers = #tpu.dot_dimension_numbers<[1], [0], [0], [1], [0, 0, 1, 1], [], []>} : vector<8x64xbf16>, vector<64x32xbf16>, vector<8x32xf32> -> vector<8x32xf32>
    %913 = vector.broadcast %48 : vector<1x32xf32> to vector<8x32xf32>
    %914 = arith.addf %912, %913 : vector<8x32xf32>
    %915 = arith.extf %816 : vector<8x32xbf16> to vector<8x32xf32>
    %cst_485 = arith.constant 1.000000e+00 : f32
    %916 = vector.broadcast %cst_485 : f32 to vector<8x32xf32>
    %917 = arith.subf %916, %915 : vector<8x32xf32>
    %cst_486 = arith.constant 2.000000e-01 : f32
    %918 = vector.broadcast %cst_486 : f32 to vector<8x32xf32>
    %919 = arith.mulf %918, %917 : vector<8x32xf32>
    %920 = arith.mulf %811, %919 : vector<8x32xf32>
    %921 = arith.addf %920, %914 : vector<8x32xf32>
    %cst_487 = arith.constant 5.000000e-01 : f32
    %922 = vector.broadcast %cst_487 : f32 to vector<8x32xf32>
    %923 = arith.cmpf ogt, %921, %922 : vector<8x32xf32>
    %924 = arith.extui %923 : vector<8x32xi1> to vector<8x32xi32>
    %925 = arith.sitofp %924 : vector<8x32xi32> to vector<8x32xf32>
    %926 = arith.truncf %925 : vector<8x32xf32> to vector<8x32xbf16>
    %c3_488 = arith.constant 3 : index
    %c0_489 = arith.constant 0 : index
    %c0_490 = arith.constant 0 : index
    %927 = vector.load %arg4[%c3_488, %c0_489, %c0_490] : memref<6x32x32xbf16, #tpu.memory_space<vmem>>, vector<1x32x32xbf16>
    %928 = vector.shape_cast %927 : vector<1x32x32xbf16> to vector<32x32xbf16>
    %cst_491 = arith.constant dense<0.000000e+00> : vector<8x32xf32>
    %929 = tpu.matmul %926, %928, %cst_491 {dimension_numbers = #tpu.dot_dimension_numbers<[1], [0], [0], [1], [0, 0, 1, 1], [], []>} : vector<8x32xbf16>, vector<32x32xbf16>, vector<8x32xf32> -> vector<8x32xf32>
    %930 = vector.broadcast %56 : vector<1x32xf32> to vector<8x32xf32>
    %931 = arith.addf %929, %930 : vector<8x32xf32>
    %932 = arith.extf %613 : vector<8x32xbf16> to vector<8x32xf32>
    %cst_492 = arith.constant 1.000000e+00 : f32
    %933 = vector.broadcast %cst_492 : f32 to vector<8x32xf32>
    %934 = arith.subf %933, %932 : vector<8x32xf32>
    %cst_493 = arith.constant 2.000000e-01 : f32
    %935 = vector.broadcast %cst_493 : f32 to vector<8x32xf32>
    %936 = arith.mulf %935, %934 : vector<8x32xf32>
    %937 = arith.mulf %608, %936 : vector<8x32xf32>
    %938 = arith.addf %937, %931 : vector<8x32xf32>
    %cst_494 = arith.constant 5.000000e-01 : f32
    %939 = vector.broadcast %cst_494 : f32 to vector<8x32xf32>
    %940 = arith.cmpf ogt, %938, %939 : vector<8x32xf32>
    %941 = arith.extui %940 : vector<8x32xi1> to vector<8x32xi32>
    %942 = arith.sitofp %941 : vector<8x32xi32> to vector<8x32xf32>
    %943 = arith.truncf %942 : vector<8x32xf32> to vector<8x32xbf16>
    %c3_495 = arith.constant 3 : index
    %c0_496 = arith.constant 0 : index
    %c0_497 = arith.constant 0 : index
    %944 = vector.load %arg6[%c3_495, %c0_496, %c0_497] : memref<12x32x32xbf16, #tpu.memory_space<vmem>>, vector<1x32x32xbf16>
    %945 = vector.shape_cast %944 : vector<1x32x32xbf16> to vector<32x32xbf16>
    %cst_498 = arith.constant dense<0.000000e+00> : vector<8x32xf32>
    %946 = tpu.matmul %943, %945, %cst_498 {dimension_numbers = #tpu.dot_dimension_numbers<[1], [0], [0], [1], [0, 0, 1, 1], [], []>} : vector<8x32xbf16>, vector<32x32xbf16>, vector<8x32xf32> -> vector<8x32xf32>
    %947 = vector.broadcast %68 : vector<1x32xf32> to vector<8x32xf32>
    %948 = arith.addf %946, %947 : vector<8x32xf32>
    %949 = arith.extf %300 : vector<8x32xbf16> to vector<8x32xf32>
    %cst_499 = arith.constant 1.000000e+00 : f32
    %950 = vector.broadcast %cst_499 : f32 to vector<8x32xf32>
    %951 = arith.subf %950, %949 : vector<8x32xf32>
    %cst_500 = arith.constant 2.000000e-01 : f32
    %952 = vector.broadcast %cst_500 : f32 to vector<8x32xf32>
    %953 = arith.mulf %952, %951 : vector<8x32xf32>
    %954 = arith.mulf %295, %953 : vector<8x32xf32>
    %955 = arith.addf %954, %948 : vector<8x32xf32>
    %cst_501 = arith.constant 5.000000e-01 : f32
    %956 = vector.broadcast %cst_501 : f32 to vector<8x32xf32>
    %957 = arith.cmpf ogt, %955, %956 : vector<8x32xf32>
    %958 = arith.extui %957 : vector<8x32xi1> to vector<8x32xi32>
    %959 = arith.sitofp %958 : vector<8x32xi32> to vector<8x32xf32>
    %960 = arith.truncf %959 : vector<8x32xf32> to vector<8x32xbf16>
    %c3_502 = arith.constant 3 : index
    %c0_503 = arith.constant 0 : index
    %c0_504 = arith.constant 0 : index
    %961 = vector.load %arg8[%c3_502, %c0_503, %c0_504] : memref<12x32x128xbf16, #tpu.memory_space<vmem>>, vector<1x32x128xbf16>
    %962 = vector.shape_cast %961 : vector<1x32x128xbf16> to vector<32x128xbf16>
    %cst_505 = arith.constant dense<0.000000e+00> : vector<8x128xf32>
    %963 = tpu.matmul %960, %962, %cst_505 {dimension_numbers = #tpu.dot_dimension_numbers<[1], [0], [0], [1], [0, 0, 1, 1], [], []>} : vector<8x32xbf16>, vector<32x128xbf16>, vector<8x128xf32> -> vector<8x128xf32>
    %964 = arith.addf %909, %963 : vector<8x128xf32>
    %cst_506 = arith.constant 6.250000e-02 : f32
    %965 = vector.broadcast %cst_506 : f32 to vector<8x128xf32>
    %966 = arith.mulf %964, %965 : vector<8x128xf32>
    %c0_507 = arith.constant 0 : index
    %c0_508 = arith.constant 0 : index
    %967 = vector.load %arg9[%c0_507, %c0_508] : memref<1x128xf32, #tpu.memory_space<vmem>>, vector<1x128xf32>
    %968 = vector.broadcast %967 : vector<1x128xf32> to vector<8x128xf32>
    %969 = arith.addf %966, %968 : vector<8x128xf32>
    %c0_509 = arith.constant 0 : index
    %c0_510 = arith.constant 0 : index
    %970 = vector.load %arg10[%c0_509, %c0_510] : memref<8x128xf32, #tpu.memory_space<vmem>>, vector<8x128xf32>
    tpu.vector_store %arg10[%c0_509, %c0_510], %969 {strides = array<i32>} : memref<8x128xf32, #tpu.memory_space<vmem>>, vector<8x128xf32>,
    return
  }
  func.func @transform_0(%arg0: i32) -> (i32, i32, i32, i32) {
    %c0_i32 = arith.constant 0 : i32
    %c0_i32_0 = arith.constant 0 : i32
    %c0_i32_1 = arith.constant 0 : i32
    %c0_i32_2 = arith.constant 0 : i32
    return %arg0, %c0_i32, %c0_i32_0, %c0_i32_1 : i32, i32, i32, i32
  }
  func.func @transform_1(%arg0: i32) -> (i32, i32, i32) {
    %c0_i32 = arith.constant 0 : i32
    %c0_i32_0 = arith.constant 0 : i32
    %c0_i32_1 = arith.constant 0 : i32
    %c0_i32_2 = arith.constant 0 : i32
    return %c0_i32, %c0_i32_0, %c0_i32_1 : i32, i32, i32
  }
  func.func @transform_2(%arg0: i32) -> (i32, i32, i32) {
    %c0_i32 = arith.constant 0 : i32
    %c0_i32_0 = arith.constant 0 : i32
    %c0_i32_1 = arith.constant 0 : i32
    %c0_i32_2 = arith.constant 0 : i32
    return %c0_i32, %c0_i32_0, %c0_i32_1 : i32, i32, i32
  }
  func.func @transform_3(%arg0: i32) -> (i32, i32, i32) {
    %c0_i32 = arith.constant 0 : i32
    %c0_i32_0 = arith.constant 0 : i32
    %c0_i32_1 = arith.constant 0 : i32
    %c0_i32_2 = arith.constant 0 : i32
    return %c0_i32, %c0_i32_0, %c0_i32_1 : i32, i32, i32
  }
  func.func @transform_4(%arg0: i32) -> (i32, i32, i32) {
    %c0_i32 = arith.constant 0 : i32
    %c0_i32_0 = arith.constant 0 : i32
    %c0_i32_1 = arith.constant 0 : i32
    %c0_i32_2 = arith.constant 0 : i32
    return %c0_i32, %c0_i32_0, %c0_i32_1 : i32, i32, i32
  }
  func.func @transform_5(%arg0: i32) -> (i32, i32, i32) {
    %c0_i32 = arith.constant 0 : i32
    %c0_i32_0 = arith.constant 0 : i32
    %c0_i32_1 = arith.constant 0 : i32
    %c0_i32_2 = arith.constant 0 : i32
    return %c0_i32, %c0_i32_0, %c0_i32_1 : i32, i32, i32
  }
  func.func @transform_6(%arg0: i32) -> (i32, i32, i32) {
    %c0_i32 = arith.constant 0 : i32
    %c0_i32_0 = arith.constant 0 : i32
    %c0_i32_1 = arith.constant 0 : i32
    %c0_i32_2 = arith.constant 0 : i32
    return %c0_i32, %c0_i32_0, %c0_i32_1 : i32, i32, i32
  }
  func.func @transform_7(%arg0: i32) -> (i32, i32, i32) {
    %c0_i32 = arith.constant 0 : i32
    %c0_i32_0 = arith.constant 0 : i32
    %c0_i32_1 = arith.constant 0 : i32
    %c0_i32_2 = arith.constant 0 : i32
    return %c0_i32, %c0_i32_0, %c0_i32_1 : i32, i32, i32
  }
  func.func @transform_8(%arg0: i32) -> (i32, i32) {
    %c0_i32 = arith.constant 0 : i32
    %c0_i32_0 = arith.constant 0 : i32
    %c0_i32_1 = arith.constant 0 : i32
    return %c0_i32, %c0_i32_0 : i32, i32
  }
  func.func @transform_9(%arg0: i32) -> (i32, i32) {
    %c0_i32 = arith.constant 0 : i32
    %c0_i32_0 = arith.constant 0 : i32
    return %arg0, %c0_i32 : i32, i32
  }
}

</mosaic_0001>

<bundles_post_ra>
// kernel: ffsnn_grp_234_forward.1
= control target key start
LH: loop header
LB: loop body
LE: loop exit
PB: predicated region body
PF: predicated region fallthrough
CT: control target
= control target key end

     0   :  { %v5245_v0 = vmov 0.0   ;;  %vm5246_vm0 = vmmov 0   ;;  %vm118_vm1 = vcmask 523264   ;;  %vm189_vm3 = vcmask 261120   ;;  %s6420_s1 = inlined_call_operand.vmem [shape: bf16[2,64,32], index: 1, kind: input, shape index: {}]   ;;  %s6421_s0 = inlined_call_operand.vmem [shape: bf16[1,16,8,64], index: 0, kind: input, shape index: {}]   ;;  %s6422_s3 = inlined_call_operand.vmem [shape: bf16[6,32,32], index: 3, kind: input, shape index: {}]   ;;  %s6423_s5 = inlined_call_operand.vmem [shape: bf16[12,32,32], index: 5, kind: input, shape index: {}]   ;;  %s6424_s2 = inlined_call_operand.vmem [shape: f32[2,1,32], index: 2, kind: input, shape index: {}]   ;;  %s6425_s4 = inlined_call_operand.vmem [shape: f32[6,1,32], index: 4, kind: input, shape index: {}]   ;;  %s6426_s7 = inlined_call_operand.vmem [shape: bf16[12,32,128], index: 7, kind: input, shape index: {}]   ;;  %s6427_s6 = inlined_call_operand.vmem [shape: f32[12,1,32], index: 6, kind: input, shape index: {}]   ;;  %s6428_s8 = inlined_call_operand.vmem [shape: f32[1,128], index: 8, kind: input, shape index: {}]   ;;  %s6429_s9 = inlined_call_operand.vmem [shape: f32[8,128], index: 9, kind: output, shape index: {}]  }
   0x1   :  { %4500 = vmatprep.subr.bf16.mxu0 %v5245_v0  ;;  %v5301_v1 = vld [vmem:[%s6420_s1] sm:$0xff]   ;;  %4508 = vmatprep.mubr.msk.bf16.mxu0 %vm5246_vm0, %v5245_v0  ;;  %v5312_v2 = vld [vmem:[%s6420_s1 + $0x8] sm:$0xff]   ;;  %v5319_v3 = vld [vmem:[%s6420_s1 + $0x10] sm:$0xff]  }
   0x2   :  { %4512 = vmatprep.subr.bf16.mxu1 %v5245_v0  ;;  %4516 = vmatprep.mubr.msk.bf16.mxu1 %vm5246_vm0, %v5245_v0  ;;  %v5326_v4 = vld [vmem:[%s6420_s1 + $0x18] sm:$0xff]   ;;  %v87_v5 = vld [vmem:[%s6421_s0] sm:$0xf]  ;;  %v5344_v7 = vld [vmem:[%s6420_s1 + $0x28] sm:$0xff]  }
   0x3   :  { %4501 = vmatpush3.bf16.msra.mxu0 %v5301_v1  ;;  %v5336_v6 = vld [vmem:[%s6420_s1 + $0x20] sm:$0xff]   ;;  %v5357_v9 = vld [vmem:[%s6420_s1 + $0x30] sm:$0xff]   ;;  %v5143_v10 = vld [vmem:[%s6422_s3 + $0x8] sm:$0xff]  }
   0x4   :  { %4502 = vmatprep.subr.bf16.mxu0 %v5245_v0  ;;  %v5141_v8 = vld [vmem:[%s6422_s3] sm:$0xff]   ;;  %v5368_v11 = vld [vmem:[%s6420_s1 + $0x38] sm:$0xff]   ;;  %v5146_v27 = vld [vmem:[%s6423_s5 + $0x8] sm:$0xff]  }
   0x5   :  { %4513 = vmatpush3.bf16.msra.mxu1 %v5141_v8  ;;  %v3969_v12 = vld [vmem:[%s6421_s0 + $0x4] sm:$0xf]  ;;  %v5382_v13 = vld [vmem:[%s6424_s2] ss:$0 sm:$0xff]  ;;  %v5398_v25 = vld [vmem:[%s6424_s2 + $0x1] ss:$0 sm:$0xff] }
   0x6   :  { %4514 = vmatprep.subr.bf16.mxu1 %v5245_v0  ;;  %v5145_v20 = vld [vmem:[%s6423_s5] sm:$0xff]   ;;  %v5418_v43 = vld [vmem:[%s6422_s3 + $0x10] sm:$0xff]   ;;  %v5425_v47 = vld [vmem:[%s6422_s3 + $0x18] sm:$0xff]  }
   0x7   :  { %4503 = vmatpush3.bf16.msra.mxu0 %v5312_v2  ;;  %v5411_v36 = vld [vmem:[%s6425_s4] ss:$0 sm:$0xff]  ;;  %v5150_v51 = vld [vmem:[%s6426_s7 + $0x8] sm:$0xff]   ;;  %v5151_v52 = vld [vmem:[%s6423_s5 + $0x10] sm:$0xff]  }
   0x8   :  { %4504 = vmatprep.subr.bf16.mxu0 %v5245_v0  ;;  %v5149_v50 = vld [vmem:[%s6426_s7] sm:$0xff]   ;;  %v5152_v53 = vld [vmem:[%s6423_s5 + $0x18] sm:$0xff]  }
   0x9   :  { %4515 = vmatpush3.bf16.msra.mxu1 %v5143_v10  ;;  %v3964_v54 = vld [vmem:[%s6427_s6] ss:$0 sm:$0xff]  ;;  %v5460_v63 = vld [vmem:[%s6425_s4 + $0x1] ss:$0 sm:$0xff] }
   0xa   :  { %4520 = vmatprep.subr.bf16.mxu1 %v5245_v0 }
   0xb   :  { %4505 = vmatpush3.bf16.msra.mxu0 %v5319_v3 }
   0xc   :  { %4506 = vmatprep.subr.bf16.mxu0 %v5245_v0 }
   0xf   :  { %4507 = vmatpush3.bf16.msra.mxu0 %v5326_v4 }
  0x10   :  { %4528 = vmatprep.subr.bf16.mxu0 %v5245_v0 }
  0x12   :  { %4509 = vmatmul.mubr.msk.bf16.vlgmr.msra.gmra.mrb[0].mxu0 %vm118_vm1, %v87_v5 }
  0x13   :  { %4529 = vmatpush3.bf16.msra.mxu0 %v5336_v6  ;;  %4536 = vmatprep.mubr.msk.bf16.mxu0 %vm5246_vm0, %v5245_v0 }
  0x14   :  { %4530 = vmatprep.subr.bf16.mxu0 %v5245_v0 }
  0x17   :  { %4531 = vmatpush3.bf16.msra.mxu0 %v5344_v7 }
  0x18   :  { %4532 = vmatprep.subr.bf16.mxu0 %v5245_v0 }
  0x1b   :  { %4533 = vmatpush3.bf16.msra.mxu0 %v5357_v9 }
  0x1c   :  { %4534 = vmatprep.subr.bf16.mxu0 %v5245_v0 }
  0x1f   :  { %4535 = vmatpush3.bf16.msra.mxu0 %v5368_v11 }
  0x20   :  { %4564 = vmatprep.subr.bf16.mxu0 %v5245_v0 }
  0x22   :  { %4537 = vmatmul.mubr.msk.bf16.vlgmr.msra.gmra.mrb[4].mxu0 %vm118_vm1, %v3969_v12 }
  0x23   :  { %4568 = vmatprep.mubr.msk.bf16.mxu0 %vm5246_vm0, %v5245_v0  ;;  %4565 = vmatpush3.bf16.msra.mxu0 %v5149_v50 }
  0x24   :  { %4566 = vmatprep.subr.bf16.mxu0 %v5245_v0 }
  0x27   :  { %4567 = vmatpush3.bf16.msra.mxu0 %v5150_v51 }
  0x28   :  { %4584 = vmatprep.subr.bf16.mxu0 %v5245_v0 }
  0xe5   :  { %v156_v14 = vpop.f32.mrb[0].mxu0 }
  0xe6   :  { %v157_v15 = vadd.f32 %v5382_v13, %v156_v14  ;;  %v4510_v16 = vpop.f32.mrb[1].mxu0 }
  0xe7   :  { %v159_v17 = vpop.f32.mrb[2].mxu0 }
  0xe8   :  { %vm163_vm2 = vcmp.gt.f32.partialorder %v157_v15, 0.5  ;;  %v4511_v18 = vpop.f32.mrb[3].mxu0 }
  0xe9   :  { %v3958_v19 = vsel %vm163_vm2, 1.0, %v5245_v0  ;;  %v5153_v18 = vld [vmem:[%s6426_s7 + $0x10] sm:$0xff]  }
  0xea   :  { %v166_v21 = vpack.c.bf16 %v3958_v19, %v3958_v19  ;;  %v695_v22 = vsub.f32 1.0, %v3958_v19 }
  0xec   :  { %v696_v23 = vmul.f32 0.2, %v695_v22  ;;  %4517 = vmatmul.mubr.msk.bf16.vlgmr.msra.gmra.mrb[0].mxu1 %vm189_vm3, %v166_v21 }
  0xed   :  { %4521 = vmatpush3.bf16.msra.mxu1 %v5145_v20  ;;  %4524 = vmatprep.mubr.msk.bf16.mxu1 %vm5246_vm0, %v5245_v0 }
  0xee   :  { %v5392_v24 = vmul.f32 %v696_v23, %v157_v15  ;;  %4522 = vmatprep.subr.bf16.mxu1 %v5245_v0  ;;  %v5154_v23 = vld [vmem:[%s6426_s7 + $0x18] sm:$0xff]  }
  0xf1   :  { %4523 = vmatpush3.bf16.msra.mxu1 %v5146_v27 }
  0xf2   :  { %4540 = vmatprep.subr.bf16.mxu1 %v5245_v0 }
  0xf5   :  { %v381_v26 = vpop.f32.mrb[4].mxu0 }
  0xf6   :  { %v382_v28 = vadd.f32 %v5398_v25, %v381_v26  ;;  %v4538_v29 = vpop.f32.mrb[5].mxu0  ;;  %v3990_v26 = vld [vmem:[%s6427_s6 + $0x1] ss:$0 sm:$0xff] }
  0xf7   :  { %v384_v30 = vpop.f32.mrb[6].mxu0 }
  0xf8   :  { %vm388_vm4 = vcmp.gt.f32.partialorder %v382_v28, 0.5  ;;  %v4539_v31 = vpop.f32.mrb[7].mxu0 }
  0xf9   :  { %v3976_v32 = vsel %vm388_vm4, 1.0, %v5245_v0 }
  0xfa   :  { %v952_v33 = vsub.f32 1.0, %v3976_v32  ;;  %v391_v49 = vpack.c.bf16 %v3976_v32, %v3976_v32 }
  0xfc   :  { %v953_v34 = vmul.f32 0.2, %v952_v33 }
  0xfe   :  { %v5406_v35 = vmul.f32 %v953_v34, %v382_v28 }
 0x1bf   :  { %v227_v37 = vpop.f32.mrb[0].mxu1 }
 0x1c0   :  { %v228_v38 = vadd.f32 %v5411_v36, %v227_v37  ;;  %v4518_v39 = vpop.f32.mrb[1].mxu1 }
 0x1c1   :  { %v230_v40 = vpop.f32.mrb[2].mxu1  ;;  %v4005_v39 = vld [vmem:[%s6421_s0 + $0x8] sm:$0xf] }
 0x1c2   :  { %vm234_vm5 = vcmp.gt.f32.partialorder %v228_v38, 0.5  ;;  %v4519_v41 = vpop.f32.mrb[3].mxu1  ;;  %v5508_v40 = vld [vmem:[%s6422_s3 + $0x20] sm:$0xff]  }
 0x1c3   :  { %v3963_v42 = vsel %vm234_vm5, 1.0, %v5245_v0  ;;  %v5515_v41 = vld [vmem:[%s6422_s3 + $0x28] sm:$0xff]  }
 0x1c4   :  { %v237_v44 = vpack.c.bf16 %v3963_v42, %v3963_v42  ;;  %v1775_v45 = vsub.f32 1.0, %v3963_v42  ;;  %v5157_v42 = vld [vmem:[%s6423_s5 + $0x20] sm:$0xff]  }
 0x1c6   :  { %v1776_v46 = vmul.f32 0.2, %v1775_v45  ;;  %4525 = vmatmul.mubr.msk.bf16.vlgmr.msra.gmra.mrb[4].mxu1 %vm189_vm3, %v237_v44 }
 0x1c7   :  { %4541 = vmatpush3.bf16.msra.mxu1 %v5418_v43  ;;  %4544 = vmatprep.mubr.msk.bf16.mxu1 %vm5246_vm0, %v5245_v0 }
 0x1c8   :  { %v5429_v48 = vmul.f32 %v1776_v46, %v228_v38  ;;  %4542 = vmatprep.subr.bf16.mxu1 %v5245_v0 }
 0x1cb   :  { %4543 = vmatpush3.bf16.msra.mxu1 %v5425_v47 }
 0x1cc   :  { %4548 = vmatprep.subr.bf16.mxu1 %v5245_v0 }
 0x1ce   :  { %4545 = vmatmul.mubr.msk.bf16.vlgmr.msra.gmra.mrb[8].mxu1 %vm189_vm3, %v391_v49 }
 0x1cf   :  { %4552 = vmatprep.mubr.msk.bf16.mxu1 %vm5246_vm0, %v5245_v0  ;;  %4549 = vmatpush3.bf16.msra.mxu1 %v5151_v52 }
 0x1d0   :  { %4550 = vmatprep.subr.bf16.mxu1 %v5245_v0 }
 0x1d3   :  { %4551 = vmatpush3.bf16.msra.mxu1 %v5152_v53 }
 0x1d4   :  { %4556 = vmatprep.subr.bf16.mxu1 %v5245_v0 }
 0x299   :  { %v297_v55 = vpop.f32.mrb[4].mxu1 }
 0x29a   :  { %v298_v56 = vadd.f32 %v3964_v54, %v297_v55  ;;  %v4526_v57 = vpop.f32.mrb[5].mxu1 }
 0x29b   :  { %v300_v58 = vpop.f32.mrb[6].mxu1 }
 0x29c   :  { %vm304_vm6 = vcmp.gt.f32.partialorder %v298_v56, 0.5  ;;  %v4527_v59 = vpop.f32.mrb[7].mxu1 }
 0x29d   :  { %v3968_v60 = vsel %vm304_vm6, 1.0, %v5245_v0 }
 0x29e   :  { %v307_v61 = vpack.c.bf16 %v3968_v60, %v3968_v60  ;;  %v3255_v62 = vsub.f32 1.0, %v3968_v60 }
 0x2a0   :  { %v3256_v5 = vmul.f32 0.2, %v3255_v62  ;;  %4569 = vmatmul.mubr.msk.bf16.vlgmr.msra.gmra.mrb[8].mxu0 %vm189_vm3, %v307_v61  ;;  %v5158_v61 = vld [vmem:[%s6423_s5 + $0x28] sm:$0xff]  }
 0x2a1   :  { %v452_v8 = vpop.f32.mrb[8].mxu1  ;;  %4588 = vmatprep.mubr.msk.bf16.mxu0 %vm5246_vm0, %v5245_v0  ;;  %4585 = vmatpush3.bf16.msra.mxu0 %v5508_v40 }
 0x2a2   :  { %v5465_v10 = vmul.f32 %v3256_v5, %v298_v56  ;;  %v453_v12 = vadd.f32 %v5460_v63, %v452_v8  ;;  %v4546_v14 = vpop.f32.mrb[9].mxu1  ;;  %4586 = vmatprep.subr.bf16.mxu0 %v5245_v0 }
 0x2a3   :  { %v455_v15 = vpop.f32.mrb[10].mxu1 }
 0x2a4   :  { %vm459_vm7 = vcmp.gt.f32.partialorder %v453_v12, 0.5  ;;  %v4547_v16 = vpop.f32.mrb[11].mxu1 }
 0x2a5   :  { %v3985_v17 = vsel %vm459_vm7, 1.0, %v5245_v0  ;;  %4587 = vmatpush3.bf16.msra.mxu0 %v5515_v41 }
 0x2a6   :  { %v462_v19 = vpack.c.bf16 %v3985_v17, %v3985_v17  ;;  %v2013_v20 = vsub.f32 1.0, %v3985_v17  ;;  %4600 = vmatprep.subr.bf16.mxu0 %v5245_v0 }
 0x2a8   :  { %v2014_v21 = vmul.f32 0.2, %v2013_v20  ;;  %4553 = vmatmul.mubr.msk.bf16.vlgmr.msra.gmra.mrb[12].mxu1 %vm189_vm3, %v462_v19  ;;  %v4033_v20 = vld [vmem:[%s6421_s0 + $0xc] sm:$0xf] }
 0x2a9   :  { %4557 = vmatpush3.bf16.msra.mxu1 %v5153_v18  ;;  %4560 = vmatprep.mubr.msk.bf16.mxu1 %vm5246_vm0, %v5245_v0 }
 0x2aa   :  { %v5475_v22 = vmul.f32 %v2014_v21, %v453_v12  ;;  %4558 = vmatprep.subr.bf16.mxu1 %v5245_v0  ;;  %v4061_v21 = vld [vmem:[%s6421_s0 + $0x10] sm:$0xf] }
 0x2ad   :  { %4559 = vmatpush3.bf16.msra.mxu1 %v5154_v23  ;;  %v5159_v23 = vld [vmem:[%s6426_s7 + $0x20] sm:$0xff]  }
 0x2ae   :  { %4572 = vmatprep.subr.bf16.mxu1 %v5245_v0 }
 0x37b   :  { %v523_v27 = vpop.f32.mrb[12].mxu1 }
 0x37c   :  { %v524_v28 = vadd.f32 %v3990_v26, %v523_v27  ;;  %v4554_v29 = vpop.f32.mrb[13].mxu1  ;;  %v5160_v26 = vld [vmem:[%s6426_s7 + $0x28] sm:$0xff]   ;;  %v4021_v27 = vld [vmem:[%s6427_s6 + $0x2] ss:$0 sm:$0xff] }
 0x37d   :  { %v526_v30 = vpop.f32.mrb[14].mxu1 }
 0x37e   :  { %vm530_vm8 = vcmp.gt.f32.partialorder %v524_v28, 0.5  ;;  %v4555_v31 = vpop.f32.mrb[15].mxu1 }
 0x37f   :  { %v3994_v32 = vsel %vm530_vm8, 1.0, %v5245_v0 }
 0x380   :  { %v533_v33 = vpack.c.bf16 %v3994_v32, %v3994_v32  ;;  %v3457_v34 = vsub.f32 1.0, %v3994_v32 }
 0x382   :  { %v3458_v37 = vmul.f32 0.2, %v3457_v34  ;;  %4561 = vmatmul.mubr.msk.bf16.vlgmr.msra.gmra.mrb[16].mxu1 %vm189_vm3, %v533_v33  ;;  %v5592_v34 = vld [vmem:[%s6422_s3 + $0x30] sm:$0xff]  }
 0x383   :  { %4573 = vmatpush3.bf16.msra.mxu1 %v5301_v1  ;;  %4580 = vmatprep.mubr.msk.bf16.mxu1 %vm5246_vm0, %v5245_v0 }
 0x384   :  { %v5490_v38 = vmul.f32 %v3458_v37, %v524_v28  ;;  %4574 = vmatprep.subr.bf16.mxu1 %v5245_v0 }
 0x387   :  { %4575 = vmatpush3.bf16.msra.mxu1 %v5312_v2 }
 0x388   :  { %4576 = vmatprep.subr.bf16.mxu1 %v5245_v0 }
 0x38b   :  { %4577 = vmatpush3.bf16.msra.mxu1 %v5319_v3 }
 0x38c   :  { %4578 = vmatprep.subr.bf16.mxu1 %v5245_v0 }
 0x38f   :  { %4579 = vmatpush3.bf16.msra.mxu1 %v5326_v4 }
 0x390   :  { %4592 = vmatprep.subr.bf16.mxu1 %v5245_v0 }
 0x392   :  { %4581 = vmatmul.mubr.msk.bf16.vlgmr.msra.gmra.mrb[20].mxu1 %vm118_vm1, %v4005_v39 }
 0x393   :  { %4596 = vmatprep.mubr.msk.bf16.mxu1 %vm5246_vm0, %v5245_v0  ;;  %4593 = vmatpush3.bf16.msra.mxu1 %v5157_v42 }
 0x394   :  { %4594 = vmatprep.subr.bf16.mxu1 %v5245_v0 }
 0x397   :  { %4595 = vmatpush3.bf16.msra.mxu1 %v5158_v61 }
 0x398   :  { %4608 = vmatprep.subr.bf16.mxu1 %v5245_v0 }
 0x455   :  { %v5523_v44 = vpop.f32.mrb[16].mxu1 }
 0x456   :  { %v4562_v45 = vpop.f32.mrb[17].mxu1 }
 0x457   :  { %v591_v46 = vpop.f32.mrb[18].mxu1  ;;  %v5599_v45 = vld [vmem:[%s6422_s3 + $0x38] sm:$0xff]  }
 0x458   :  { %v4563_v49 = vpop.f32.mrb[19].mxu1 }
 0x465   :  { %v688_v50 = vpop.f32.mrb[20].mxu1 }
 0x466   :  { %v689_v51 = vadd.f32 %v5382_v13, %v688_v50  ;;  %v4582_v52 = vpop.f32.mrb[21].mxu1 }
 0x467   :  { %v691_v53 = vpop.f32.mrb[22].mxu1 }
 0x468   :  { %v698_v54 = vadd.f32 %v5392_v24, %v689_v51  ;;  %v4583_v55 = vpop.f32.mrb[23].mxu1  ;;  %v5540_v24 = vld [vmem:[%s6425_s4 + $0x2] ss:$0 sm:$0xff] }
 0x46a   :  { %vm699_vm9 = vcmp.gt.f32.partialorder %v698_v54, 0.5 }
 0x46b   :  { %v4007_v56 = vsel %vm699_vm9, 1.0, %v5245_v0 }
 0x46c   :  { %v702_v57 = vpack.c.bf16 %v4007_v56, %v4007_v56  ;;  %v1209_v58 = vsub.f32 1.0, %v4007_v56  ;;  %v5163_v56 = vld [vmem:[%s6423_s5 + $0x30] sm:$0xff]  }
 0x46e   :  { %4589 = vmatmul.mubr.msk.bf16.vlgmr.msra.gmra.mrb[12].mxu0 %vm189_vm3, %v702_v57  ;;  %v1210_v59 = vmul.f32 0.2, %v1209_v58 }
 0x46f   :  { %4604 = vmatprep.mubr.msk.bf16.mxu0 %vm5246_vm0, %v5245_v0  ;;  %4601 = vmatpush3.bf16.msra.mxu0 %v5159_v23 }
 0x470   :  { %v5531_v60 = vmul.f32 %v1210_v59, %v698_v54  ;;  %4602 = vmatprep.subr.bf16.mxu0 %v5245_v0 }
 0x473   :  { %4603 = vmatpush3.bf16.msra.mxu0 %v5160_v26 }
 0x474   :  { %4620 = vmatprep.subr.bf16.mxu0 %v5245_v0 }
 0x541   :  { %v763_v62 = vpop.f32.mrb[12].mxu0 }
 0x542   :  { %v764_v5 = vadd.f32 %v5540_v24, %v763_v62  ;;  %v4590_v8 = vpop.f32.mrb[13].mxu0 }
 0x543   :  { %v766_v12 = vpop.f32.mrb[14].mxu0 }
 0x544   :  { %vm770_vm10 = vcmp.gt.f32.partialorder %v764_v5, 0.5  ;;  %v4591_v14 = vpop.f32.mrb[15].mxu0 }
 0x545   :  { %v4016_v15 = vsel %vm770_vm10, 1.0, %v5245_v0 }
 0x546   :  { %v773_v16 = vpack.c.bf16 %v4016_v15, %v4016_v15  ;;  %v2251_v17 = vsub.f32 1.0, %v4016_v15 }
 0x548   :  { %v2252_v18 = vmul.f32 0.2, %v2251_v17  ;;  %4597 = vmatmul.mubr.msk.bf16.vlgmr.msra.gmra.mrb[24].mxu1 %vm189_vm3, %v773_v16 }
 0x549   :  { %4609 = vmatpush3.bf16.msra.mxu1 %v5336_v6  ;;  %4616 = vmatprep.mubr.msk.bf16.mxu1 %vm5246_vm0, %v5245_v0 }
 0x54a   :  { %v5548_v19 = vmul.f32 %v2252_v18, %v764_v5  ;;  %4610 = vmatprep.subr.bf16.mxu1 %v5245_v0 }
 0x54d   :  { %4611 = vmatpush3.bf16.msra.mxu1 %v5344_v7 }
 0x54e   :  { %4612 = vmatprep.subr.bf16.mxu1 %v5245_v0 }
 0x551   :  { %4613 = vmatpush3.bf16.msra.mxu1 %v5357_v9 }
 0x552   :  { %4614 = vmatprep.subr.bf16.mxu1 %v5245_v0 }
 0x555   :  { %4615 = vmatpush3.bf16.msra.mxu1 %v5368_v11 }
 0x556   :  { %4644 = vmatprep.subr.bf16.mxu1 %v5245_v0 }
 0x558   :  { %4617 = vmatmul.mubr.msk.bf16.vlgmr.msra.gmra.mrb[28].mxu1 %vm118_vm1, %v4033_v20  ;;  %v5164_v20 = vld [vmem:[%s6423_s5 + $0x38] sm:$0xff]  }
 0x559   :  { %4645 = vmatpush3.bf16.msra.mxu1 %v5301_v1  ;;  %4652 = vmatprep.mubr.msk.bf16.mxu1 %vm5246_vm0, %v5245_v0 }
 0x55a   :  { %4646 = vmatprep.subr.bf16.mxu1 %v5245_v0 }
 0x55d   :  { %4647 = vmatpush3.bf16.msra.mxu1 %v5312_v2 }
 0x55e   :  { %4648 = vmatprep.subr.bf16.mxu1 %v5245_v0 }
 0x561   :  { %4649 = vmatpush3.bf16.msra.mxu1 %v5319_v3 }
 0x562   :  { %4650 = vmatprep.subr.bf16.mxu1 %v5245_v0 }
 0x565   :  { %4651 = vmatpush3.bf16.msra.mxu1 %v5326_v4 }
 0x566   :  { %4664 = vmatprep.subr.bf16.mxu1 %v5245_v0 }
 0x568   :  { %4653 = vmatmul.mubr.msk.bf16.vlgmr.msra.gmra.mrb[32].mxu1 %vm118_vm1, %v4061_v21  ;;  %v5632_v21 = vld [vmem:[%s6425_s4 + $0x3] ss:$0 sm:$0xff] }
 0x569   :  { %4668 = vmatprep.mubr.msk.bf16.mxu1 %vm5246_vm0, %v5245_v0 }
 0x61b   :  { %v834_v28 = vpop.f32.mrb[24].mxu1 }
 0x61c   :  { %v835_v29 = vadd.f32 %v4021_v27, %v834_v28  ;;  %v4598_v30 = vpop.f32.mrb[25].mxu1 }
 0x61d   :  { %v837_v31 = vpop.f32.mrb[26].mxu1  ;;  %v5165_v30 = vld [vmem:[%s6426_s7 + $0x30] sm:$0xff]  }
 0x61e   :  { %vm841_vm11 = vcmp.gt.f32.partialorder %v835_v29, 0.5  ;;  %v4599_v32 = vpop.f32.mrb[27].mxu1 }
 0x61f   :  { %v4025_v33 = vsel %vm841_vm11, 1.0, %v5245_v0 }
 0x620   :  { %v844_v37 = vpack.c.bf16 %v4025_v33, %v4025_v33  ;;  %v3659_v39 = vsub.f32 1.0, %v4025_v33 }
 0x622   :  { %v3660_v42 = vmul.f32 0.2, %v3659_v39  ;;  %4605 = vmatmul.mubr.msk.bf16.vlgmr.msra.gmra.mrb[8].mxu0 %vm189_vm3, %v844_v37  ;;  %v5166_v39 = vld [vmem:[%s6426_s7 + $0x38] sm:$0xff]  }
 0x623   :  { %4621 = vmatpush3.bf16.msra.mxu0 %v5592_v34  ;;  %4624 = vmatprep.mubr.msk.bf16.mxu0 %vm5246_vm0, %v5245_v0 }
 0x624   :  { %v5603_v46 = vmul.f32 %v3660_v42, %v835_v29  ;;  %4622 = vmatprep.subr.bf16.mxu0 %v5245_v0  ;;  %v5169_v42 = vld [vmem:[%s6423_s5 + $0x40] sm:$0xff]  }
 0x625   :  { %4665 = vmatpush3.bf16.msra.mxu1 %v5169_v42 }
 0x626   :  { %4666 = vmatprep.subr.bf16.mxu1 %v5245_v0 }
 0x627   :  { %4623 = vmatpush3.bf16.msra.mxu0 %v5599_v45 }
 0x628   :  { %4628 = vmatprep.subr.bf16.mxu0 %v5245_v0 }
 0x62b   :  { %v945_v49 = vpop.f32.mrb[28].mxu1 }
 0x62c   :  { %v946_v50 = vadd.f32 %v5398_v25, %v945_v49  ;;  %v4618_v51 = vpop.f32.mrb[29].mxu1  ;;  %v4049_v49 = vld [vmem:[%s6427_s6 + $0x3] ss:$0 sm:$0xff] }
 0x62d   :  { %v948_v52 = vpop.f32.mrb[30].mxu1 }
 0x62e   :  { %v955_v53 = vadd.f32 %v5406_v35, %v946_v50  ;;  %v4619_v54 = vpop.f32.mrb[31].mxu1 }
 0x630   :  { %vm956_vm12 = vcmp.gt.f32.partialorder %v955_v53, 0.5 }
 0x631   :  { %v4035_v55 = vsel %vm956_vm12, 1.0, %v5245_v0 }
 0x632   :  { %v959_v57 = vpack.c.bf16 %v4035_v55, %v4035_v55  ;;  %v1466_v58 = vsub.f32 1.0, %v4035_v55 }
 0x634   :  { %4625 = vmatmul.mubr.msk.bf16.vlgmr.msra.gmra.mrb[16].mxu0 %vm189_vm3, %v959_v57  ;;  %v1467_v59 = vmul.f32 0.2, %v1466_v58 }
 0x635   :  { %4629 = vmatpush3.bf16.msra.mxu0 %v5163_v56  ;;  %4632 = vmatprep.mubr.msk.bf16.mxu0 %vm5246_vm0, %v5245_v0  ;;  %v5660_v56 = vld [vmem:[%s6422_s3 + $0x40] sm:$0xff]  }
 0x636   :  { %4630 = vmatprep.subr.bf16.mxu0 %v5245_v0  ;;  %v5618_v35 = vmul.f32 %v1467_v59, %v955_v53 }
 0x639   :  { %4631 = vmatpush3.bf16.msra.mxu0 %v5164_v20 }
 0x63a   :  { %4636 = vmatprep.subr.bf16.mxu0 %v5245_v0 }
 0x63b   :  { %v1202_v61 = vpop.f32.mrb[32].mxu1 }
 0x63c   :  { %v1203_v62 = vadd.f32 %v5382_v13, %v1202_v61  ;;  %v4654_v5 = vpop.f32.mrb[33].mxu1  ;;  %v5667_v61 = vld [vmem:[%s6422_s3 + $0x48] sm:$0xff]  }
 0x63d   :  { %v1205_v8 = vpop.f32.mrb[34].mxu1 }
 0x63e   :  { %v1212_v12 = vadd.f32 %v5531_v60, %v1203_v62  ;;  %v4655_v14 = vpop.f32.mrb[35].mxu1  ;;  %v5170_v8 = vld [vmem:[%s6423_s5 + $0x48] sm:$0xff]  }
 0x63f   :  { %4667 = vmatpush3.bf16.msra.mxu1 %v5170_v8 }
 0x640   :  { %vm1213_vm13 = vcmp.gt.f32.partialorder %v1212_v12, 0.5  ;;  %4680 = vmatprep.subr.bf16.mxu1 %v5245_v0 }
 0x641   :  { %v4063_v15 = vsel %vm1213_vm13, 1.0, %v5245_v0 }
 0x642   :  { %v1723_v16 = vsub.f32 1.0, %v4063_v15  ;;  %v1216_v5 = vpack.c.bf16 %v4063_v15, %v4063_v15 }
 0x644   :  { %v1724_v17 = vmul.f32 0.2, %v1723_v16 }
 0x646   :  { %v5623_v18 = vmul.f32 %v1724_v17, %v1212_v12  ;;  %v5686_v12 = vld [vmem:[%s6425_s4 + $0x4] ss:$0 sm:$0xff] }
 0x707   :  { %v1020_v60 = vpop.f32.mrb[16].mxu0 }
 0x708   :  { %v1021_v23 = vadd.f32 %v5632_v21, %v1020_v60  ;;  %v4626_v26 = vpop.f32.mrb[17].mxu0 }
 0x709   :  { %v1023_v27 = vpop.f32.mrb[18].mxu0 }
 0x70a   :  { %vm1027_vm14 = vcmp.gt.f32.partialorder %v1021_v23, 0.5  ;;  %v4627_v28 = vpop.f32.mrb[19].mxu0 }
 0x70b   :  { %v4044_v29 = vsel %vm1027_vm14, 1.0, %v5245_v0 }
 0x70c   :  { %v1030_v31 = vpack.c.bf16 %v4044_v29, %v4044_v29  ;;  %v2489_v32 = vsub.f32 1.0, %v4044_v29 }
 0x70e   :  { %v2490_v33 = vmul.f32 0.2, %v2489_v32  ;;  %4633 = vmatmul.mubr.msk.bf16.vlgmr.msra.gmra.mrb[20].mxu0 %vm189_vm3, %v1030_v31  ;;  %v5738_v32 = vld [vmem:[%s6422_s3 + $0x50] sm:$0xff]  }
 0x70f   :  { %4637 = vmatpush3.bf16.msra.mxu0 %v5165_v30  ;;  %4640 = vmatprep.mubr.msk.bf16.mxu0 %vm5246_vm0, %v5245_v0 }
 0x710   :  { %v5642_v37 = vmul.f32 %v2490_v33, %v1021_v23  ;;  %4638 = vmatprep.subr.bf16.mxu0 %v5245_v0 }
 0x713   :  { %4639 = vmatpush3.bf16.msra.mxu0 %v5166_v39  ;;  %v5745_v39 = vld [vmem:[%s6422_s3 + $0x58] sm:$0xff]  }
 0x714   :  { %4656 = vmatprep.subr.bf16.mxu0 %v5245_v0 }
 0x7e1   :  { %v1091_v50 = vpop.f32.mrb[20].mxu0 }
 0x7e2   :  { %v1092_v51 = vadd.f32 %v4049_v49, %v1091_v50  ;;  %v4634_v52 = vpop.f32.mrb[21].mxu0 }
 0x7e3   :  { %v1094_v53 = vpop.f32.mrb[22].mxu0 }
 0x7e4   :  { %vm1098_vm15 = vcmp.gt.f32.partialorder %v1092_v51, 0.5  ;;  %v4635_v54 = vpop.f32.mrb[23].mxu0 }
 0x7e5   :  { %v4053_v55 = vsel %vm1098_vm15, 1.0, %v5245_v0 }
 0x7e6   :  { %v1101_v57 = vpack.c.bf16 %v4053_v55, %v4053_v55  ;;  %v3861_v58 = vsub.f32 1.0, %v4053_v55  ;;  %v5175_v55 = vld [vmem:[%s6423_s5 + $0x50] sm:$0xff]  }
 0x7e8   :  { %v3862_v59 = vmul.f32 0.2, %v3861_v58  ;;  %4641 = vmatmul.mubr.msk.bf16.vlgmr.msra.gmra.mrb[8].mxu0 %vm189_vm3, %v1101_v57 }
 0x7e9   :  { %4657 = vmatpush3.bf16.msra.mxu0 %v5660_v56  ;;  %4660 = vmatprep.mubr.msk.bf16.mxu0 %vm5246_vm0, %v5245_v0 }
 0x7ea   :  { %v5671_v62 = vmul.f32 %v3862_v59, %v1092_v51  ;;  %4658 = vmatprep.subr.bf16.mxu0 %v5245_v0 }
 0x7ed   :  { %4659 = vmatpush3.bf16.msra.mxu0 %v5667_v61 }
 0x7ee   :  { %4672 = vmatprep.subr.bf16.mxu0 %v5245_v0 }
 0x7f0   :  { %4661 = vmatmul.mubr.msk.bf16.vlgmr.msra.gmra.mrb[24].mxu0 %vm189_vm3, %v1216_v5 }
 0x7f1   :  { %4676 = vmatprep.mubr.msk.bf16.mxu0 %vm5246_vm0, %v5245_v0 }
 0x8c3   :  { %v1277_v14 = vpop.f32.mrb[24].mxu0 }
 0x8c4   :  { %v1278_v15 = vadd.f32 %v5686_v12, %v1277_v14  ;;  %v4662_v16 = vpop.f32.mrb[25].mxu0 }
 0x8c5   :  { %v1280_v17 = vpop.f32.mrb[26].mxu0 }
 0x8c6   :  { %vm1284_vm2 = vcmp.gt.f32.partialorder %v1278_v15, 0.5  ;;  %v4663_v20 = vpop.f32.mrb[27].mxu0 }
 0x8c7   :  { %v4072_v60 = vsel %vm1284_vm2, 1.0, %v5245_v0 }
 0x8c8   :  { %v1287_v23 = vpack.c.bf16 %v4072_v60, %v4072_v60  ;;  %v2727_v26 = vsub.f32 1.0, %v4072_v60 }
 0x8ca   :  { %v2728_v27 = vmul.f32 0.2, %v2727_v26  ;;  %4669 = vmatmul.mubr.msk.bf16.vlgmr.msra.gmra.mrb[36].mxu1 %vm189_vm3, %v1287_v23  ;;  %v5176_v26 = vld [vmem:[%s6423_s5 + $0x58] sm:$0xff]  }
 0x8cb   :  { %4681 = vmatpush3.bf16.msra.mxu1 %v5336_v6  ;;  %4688 = vmatprep.mubr.msk.bf16.mxu1 %vm5246_vm0, %v5245_v0  ;;  %v4089_v6 = vld [vmem:[%s6421_s0 + $0x14] sm:$0xf] }
 0x8cc   :  { %v5694_v28 = vmul.f32 %v2728_v27, %v1278_v15  ;;  %4682 = vmatprep.subr.bf16.mxu1 %v5245_v0 }
 0x8cf   :  { %4683 = vmatpush3.bf16.msra.mxu1 %v5344_v7  ;;  %v4117_v7 = vld [vmem:[%s6421_s0 + $0x18] sm:$0xf] }
 0x8d0   :  { %4684 = vmatprep.subr.bf16.mxu1 %v5245_v0 }
 0x8d3   :  { %4685 = vmatpush3.bf16.msra.mxu1 %v5357_v9 }
 0x8d4   :  { %4686 = vmatprep.subr.bf16.mxu1 %v5245_v0 }
 0x8d7   :  { %4687 = vmatpush3.bf16.msra.mxu1 %v5368_v11 }
 0x8d8   :  { %4716 = vmatprep.subr.bf16.mxu1 %v5245_v0 }
 0x8da   :  { %4689 = vmatmul.mubr.msk.bf16.vlgmr.msra.gmra.mrb[40].mxu1 %vm118_vm1, %v4089_v6 }
 0x8db   :  { %4717 = vmatpush3.bf16.msra.mxu1 %v5301_v1  ;;  %4724 = vmatprep.mubr.msk.bf16.mxu1 %vm5246_vm0, %v5245_v0  ;;  %v5171_v1 = vld [vmem:[%s6426_s7 + $0x40] sm:$0xff]  }
 0x8dc   :  { %4718 = vmatprep.subr.bf16.mxu1 %v5245_v0  ;;  %4673 = vmatpush3.bf16.msra.mxu0 %v5171_v1 }
 0x8dd   :  { %4674 = vmatprep.subr.bf16.mxu0 %v5245_v0 }
 0x8df   :  { %4719 = vmatpush3.bf16.msra.mxu1 %v5312_v2  ;;  %v5172_v2 = vld [vmem:[%s6426_s7 + $0x48] sm:$0xff]  }
 0x8e0   :  { %4720 = vmatprep.subr.bf16.mxu1 %v5245_v0  ;;  %4675 = vmatpush3.bf16.msra.mxu0 %v5172_v2 }
 0x8e1   :  { %4692 = vmatprep.subr.bf16.mxu0 %v5245_v0 }
 0x8e3   :  { %4721 = vmatpush3.bf16.msra.mxu1 %v5319_v3  ;;  %v4077_v3 = vld [vmem:[%s6427_s6 + $0x4] ss:$0 sm:$0xff] }
 0x8e4   :  { %4722 = vmatprep.subr.bf16.mxu1 %v5245_v0 }
 0x8e7   :  { %4723 = vmatpush3.bf16.msra.mxu1 %v5326_v4 }
 0x8e8   :  { %4736 = vmatprep.subr.bf16.mxu1 %v5245_v0 }
 0x8ea   :  { %4725 = vmatmul.mubr.msk.bf16.vlgmr.msra.gmra.mrb[44].mxu1 %vm118_vm1, %v4117_v7 }
 0x8eb   :  { %4740 = vmatprep.mubr.msk.bf16.mxu1 %vm5246_vm0, %v5245_v0 }
 0x99d   :  { %v1348_v4 = vpop.f32.mrb[36].mxu1 }
 0x99e   :  { %v1349_v9 = vadd.f32 %v4077_v3, %v1348_v4  ;;  %v4670_v11 = vpop.f32.mrb[37].mxu1  ;;  %v5177_v3 = vld [vmem:[%s6426_s7 + $0x50] sm:$0xff]  }
 0x99f   :  { %v1351_v29 = vpop.f32.mrb[38].mxu1 }
 0x9a0   :  { %vm1355_vm4 = vcmp.gt.f32.partialorder %v1349_v9, 0.5  ;;  %v4671_v30 = vpop.f32.mrb[39].mxu1 }
 0x9a1   :  { %v4081_v31 = vsel %vm1355_vm4, 1.0, %v5245_v0  ;;  %v5178_v30 = vld [vmem:[%s6426_s7 + $0x58] sm:$0xff]  }
 0x9a2   :  { %v1358_v33 = vpack.c.bf16 %v4081_v31, %v4081_v31  ;;  %v4105_v31 = vld [vmem:[%s6427_s6 + $0x5] ss:$0 sm:$0xff] }
 0x9a4   :  { %4677 = vmatmul.mubr.msk.bf16.vlgmr.msra.gmra.mrb[8].mxu0 %vm189_vm3, %v1358_v33 }
 0x9a5   :  { %4693 = vmatpush3.bf16.msra.mxu0 %v5738_v32  ;;  %4696 = vmatprep.mubr.msk.bf16.mxu0 %vm5246_vm0, %v5245_v0 }
 0x9a6   :  { %4694 = vmatprep.subr.bf16.mxu0 %v5245_v0 }
 0x9a9   :  { %4695 = vmatpush3.bf16.msra.mxu0 %v5745_v39 }
 0x9aa   :  { %4700 = vmatprep.subr.bf16.mxu0 %v5245_v0 }
 0x9ad   :  { %v1459_v42 = vpop.f32.mrb[40].mxu1 }
 0x9ae   :  { %v1460_v49 = vadd.f32 %v5398_v25, %v1459_v42  ;;  %v4690_v50 = vpop.f32.mrb[41].mxu1 }
 0x9af   :  { %v1462_v51 = vpop.f32.mrb[42].mxu1 }
 0x9b0   :  { %v1469_v52 = vadd.f32 %v5618_v35, %v1460_v49  ;;  %v4691_v53 = vpop.f32.mrb[43].mxu1 }
 0x9b2   :  { %vm1470_vm5 = vcmp.gt.f32.partialorder %v1469_v52, 0.5 }
 0x9b3   :  { %v4091_v54 = vsel %vm1470_vm5, 1.0, %v5245_v0 }
 0x9b4   :  { %v1473_v57 = vpack.c.bf16 %v4091_v54, %v4091_v54  ;;  %v1961_v58 = vsub.f32 1.0, %v4091_v54  ;;  %v5801_v54 = vld [vmem:[%s6422_s3] sm:$0xff]  }
 0x9b6   :  { %4697 = vmatmul.mubr.msk.bf16.vlgmr.msra.gmra.mrb[28].mxu0 %vm189_vm3, %v1473_v57  ;;  %v1962_v59 = vmul.f32 0.2, %v1961_v58  ;;  %v5179_v58 = vld [vmem:[%s6423_s5 + $0x60] sm:$0xff]  }
 0x9b7   :  { %4701 = vmatpush3.bf16.msra.mxu0 %v5175_v55  ;;  %4704 = vmatprep.mubr.msk.bf16.mxu0 %vm5246_vm0, %v5245_v0  ;;  %v5810_v55 = vld [vmem:[%s6422_s3 + $0x8] sm:$0xff]  }
 0x9b8   :  { %4702 = vmatprep.subr.bf16.mxu0 %v5245_v0  ;;  %v5762_v25 = vmul.f32 %v1962_v59, %v1469_v52  ;;  %4737 = vmatpush3.bf16.msra.mxu1 %v5179_v58  ;;  %v5180_v59 = vld [vmem:[%s6423_s5 + $0x68] sm:$0xff]   ;;  %v5923_v58 = vld [vmem:[%s6424_s2 + $0x1] ss:$0 sm:$0xff] }
 0x9b9   :  { %4738 = vmatprep.subr.bf16.mxu1 %v5245_v0 }
 0x9bb   :  { %4703 = vmatpush3.bf16.msra.mxu0 %v5176_v26 }
 0x9bc   :  { %4708 = vmatprep.subr.bf16.mxu0 %v5245_v0  ;;  %4739 = vmatpush3.bf16.msra.mxu1 %v5180_v59 }
 0x9bd   :  { %v1716_v35 = vpop.f32.mrb[44].mxu1  ;;  %4752 = vmatprep.subr.bf16.mxu1 %v5245_v0 }
 0x9be   :  { %v1717_v5 = vadd.f32 %v5382_v13, %v1716_v35  ;;  %v4726_v8 = vpop.f32.mrb[45].mxu1  ;;  %v5776_v13 = vld [vmem:[%s6425_s4 + $0x5] ss:$0 sm:$0xff] }
 0x9bf   :  { %v1719_v14 = vpop.f32.mrb[46].mxu1 }
 0x9c0   :  { %v1726_v15 = vadd.f32 %v5623_v18, %v1717_v5  ;;  %v4727_v16 = vpop.f32.mrb[47].mxu1 }
 0x9c2   :  { %vm1727_vm6 = vcmp.gt.f32.partialorder %v1726_v15, 0.5 }
 0x9c3   :  { %v4119_v17 = vsel %vm1727_vm6, 1.0, %v5245_v0 }
 0x9c4   :  { %v2199_v20 = vsub.f32 1.0, %v4119_v17  ;;  %v1730_v57 = vpack.c.bf16 %v4119_v17, %v4119_v17 }
 0x9c6   :  { %v2200_v60 = vmul.f32 0.2, %v2199_v20 }
 0x9c8   :  { %v5767_v23 = vmul.f32 %v2200_v60, %v1726_v15 }
 0xa89   :  { %v1534_v18 = vpop.f32.mrb[28].mxu0 }
 0xa8a   :  { %v1535_v27 = vadd.f32 %v5776_v13, %v1534_v18  ;;  %v4698_v6 = vpop.f32.mrb[29].mxu0  ;;  %v5832_v18 = vld [vmem:[%s6420_s1 + $0x20] sm:$0xff]  }
 0xa8b   :  { %v1537_v7 = vpop.f32.mrb[30].mxu0  ;;  %v5857_v6 = vld [vmem:[%s6420_s1 + $0x38] sm:$0xff]  }
 0xa8c   :  { %vm1541_vm7 = vcmp.gt.f32.partialorder %v1535_v27, 0.5  ;;  %v4699_v1 = vpop.f32.mrb[31].mxu0  ;;  %v4138_v7 = vld [vmem:[%s6421_s0 + $0x1c] sm:$0xf] }
 0xa8d   :  { %v4100_v2 = vsel %vm1541_vm7, 1.0, %v5245_v0  ;;  %v5868_v1 = vld [vmem:[%s6420_s1] sm:$0xff]  }
 0xa8e   :  { %v1544_v4 = vpack.c.bf16 %v4100_v2, %v4100_v2  ;;  %v2965_v9 = vsub.f32 1.0, %v4100_v2  ;;  %v5877_v2 = vld [vmem:[%s6420_s1 + $0x8] sm:$0xff]  }
 0xa90   :  { %v2966_v11 = vmul.f32 0.2, %v2965_v9  ;;  %4705 = vmatmul.mubr.msk.bf16.vlgmr.msra.gmra.mrb[32].mxu0 %vm189_vm3, %v1544_v4  ;;  %v5891_v4 = vld [vmem:[%s6420_s1 + $0x18] sm:$0xff]   ;;  %v4159_v9 = vld [vmem:[%s6421_s0 + $0x20] sm:$0xf] }
 0xa91   :  { %4709 = vmatpush3.bf16.msra.mxu0 %v5177_v3  ;;  %4712 = vmatprep.mubr.msk.bf16.mxu0 %vm5246_vm0, %v5245_v0  ;;  %v5884_v3 = vld [vmem:[%s6420_s1 + $0x10] sm:$0xff]  }
 0xa92   :  { %v5786_v29 = vmul.f32 %v2966_v11, %v1535_v27  ;;  %4710 = vmatprep.subr.bf16.mxu0 %v5245_v0  ;;  %v5850_v27 = vld [vmem:[%s6420_s1 + $0x30] sm:$0xff]   ;;  %v5181_v11 = vld [vmem:[%s6426_s7 + $0x60] sm:$0xff]  }
 0xa95   :  { %4711 = vmatpush3.bf16.msra.mxu0 %v5178_v30  ;;  %v5182_v30 = vld [vmem:[%s6426_s7 + $0x68] sm:$0xff]  }
 0xa96   :  { %4728 = vmatprep.subr.bf16.mxu0 %v5245_v0 }
 0xb63   :  { %v1605_v33 = vpop.f32.mrb[32].mxu0 }
 0xb64   :  { %v1606_v42 = vadd.f32 %v4105_v31, %v1605_v33  ;;  %v4706_v49 = vpop.f32.mrb[33].mxu0  ;;  %v4126_v31 = vld [vmem:[%s6427_s6 + $0x6] ss:$0 sm:$0xff] }
 0xb65   :  { %v1608_v50 = vpop.f32.mrb[34].mxu0 }
 0xb66   :  { %vm1612_vm8 = vcmp.gt.f32.partialorder %v1606_v42, 0.5  ;;  %v4707_v51 = vpop.f32.mrb[35].mxu0 }
 0xb67   :  { %v4109_v52 = vsel %vm1612_vm8, 1.0, %v5245_v0 }
 0xb68   :  { %v1615_v53 = vpack.c.bf16 %v4109_v52, %v4109_v52 }
 0xb6a   :  { %4713 = vmatmul.mubr.msk.bf16.vlgmr.msra.gmra.mrb[8].mxu0 %vm189_vm3, %v1615_v53 }
 0xb6b   :  { %4729 = vmatpush3.bf16.msra.mxu0 %v5801_v54  ;;  %4732 = vmatprep.mubr.msk.bf16.mxu0 %vm5246_vm0, %v5245_v0 }
 0xb6c   :  { %4730 = vmatprep.subr.bf16.mxu0 %v5245_v0 }
 0xb6f   :  { %4731 = vmatpush3.bf16.msra.mxu0 %v5810_v55 }
 0xb70   :  { %4744 = vmatprep.subr.bf16.mxu0 %v5245_v0 }
 0xb72   :  { %4733 = vmatmul.mubr.msk.bf16.vlgmr.msra.gmra.mrb[36].mxu0 %vm189_vm3, %v1730_v57 }
 0xb73   :  { %4748 = vmatprep.mubr.msk.bf16.mxu0 %vm5246_vm0, %v5245_v0  ;;  %4745 = vmatpush3.bf16.msra.mxu0 %v5181_v11 }
 0xb74   :  { %4746 = vmatprep.subr.bf16.mxu0 %v5245_v0 }
 0xb77   :  { %4747 = vmatpush3.bf16.msra.mxu0 %v5182_v30 }
 0xb78   :  { %4764 = vmatprep.subr.bf16.mxu0 %v5245_v0 }
 0xc45   :  { %v1768_v35 = vpop.f32.mrb[36].mxu0 }
 0xc46   :  { %v1769_v5 = vadd.f32 %v5411_v36, %v1768_v35  ;;  %v4734_v8 = vpop.f32.mrb[37].mxu0 }
 0xc47   :  { %v1771_v14 = vpop.f32.mrb[38].mxu0 }
 0xc48   :  { %v1778_v15 = vadd.f32 %v5429_v48, %v1769_v5  ;;  %v4735_v16 = vpop.f32.mrb[39].mxu0  ;;  %v5843_v48 = vld [vmem:[%s6420_s1 + $0x28] sm:$0xff]  }
 0xc4a   :  { %vm1779_vm9 = vcmp.gt.f32.partialorder %v1778_v15, 0.5 }
 0xc4b   :  { %v4121_v17 = vsel %vm1779_vm9, 1.0, %v5245_v0 }
 0xc4c   :  { %v1782_v20 = vpack.c.bf16 %v4121_v17, %v4121_v17  ;;  %v3203_v60 = vsub.f32 1.0, %v4121_v17 }
 0xc4e   :  { %4741 = vmatmul.mubr.msk.bf16.vlgmr.msra.gmra.mrb[48].mxu1 %vm189_vm3, %v1782_v20  ;;  %v3204_v26 = vmul.f32 0.2, %v3203_v60  ;;  %v5936_v60 = vld [vmem:[%s6424_s2] ss:$0 sm:$0xff] }
 0xc4f   :  { %4753 = vmatpush3.bf16.msra.mxu1 %v5832_v18  ;;  %4760 = vmatprep.mubr.msk.bf16.mxu1 %vm5246_vm0, %v5245_v0 }
 0xc50   :  { %4754 = vmatprep.subr.bf16.mxu1 %v5245_v0  ;;  %v5838_v36 = vmul.f32 %v3204_v26, %v1778_v15 }
 0xc53   :  { %4755 = vmatpush3.bf16.msra.mxu1 %v5843_v48 }
 0xc54   :  { %4756 = vmatprep.subr.bf16.mxu1 %v5245_v0 }
 0xc57   :  { %4757 = vmatpush3.bf16.msra.mxu1 %v5850_v27 }
 0xc58   :  { %4758 = vmatprep.subr.bf16.mxu1 %v5245_v0 }
 0xc5b   :  { %4759 = vmatpush3.bf16.msra.mxu1 %v5857_v6 }
 0xc5c   :  { %4788 = vmatprep.subr.bf16.mxu1 %v5245_v0 }
 0xc5e   :  { %4761 = vmatmul.mubr.msk.bf16.vlgmr.msra.gmra.mrb[52].mxu1 %vm118_vm1, %v4138_v7 }
 0xc5f   :  { %4789 = vmatpush3.bf16.msra.mxu1 %v5868_v1  ;;  %4796 = vmatprep.mubr.msk.bf16.mxu1 %vm5246_vm0, %v5245_v0 }
 0xc60   :  { %4790 = vmatprep.subr.bf16.mxu1 %v5245_v0 }
 0xc63   :  { %4791 = vmatpush3.bf16.msra.mxu1 %v5877_v2 }
 0xc64   :  { %4792 = vmatprep.subr.bf16.mxu1 %v5245_v0 }
 0xc67   :  { %4793 = vmatpush3.bf16.msra.mxu1 %v5884_v3 }
 0xc68   :  { %4794 = vmatprep.subr.bf16.mxu1 %v5245_v0 }
 0xc6b   :  { %4795 = vmatpush3.bf16.msra.mxu1 %v5891_v4 }
 0xc6c   :  { %4808 = vmatprep.subr.bf16.mxu1 %v5245_v0 }
 0xc6e   :  { %4797 = vmatmul.mubr.msk.bf16.vlgmr.msra.gmra.mrb[56].mxu1 %vm118_vm1, %v4159_v9 }
 0xc6f   :  { %4812 = vmatprep.mubr.msk.bf16.mxu1 %vm5246_vm0, %v5245_v0 }
 0xd21   :  { %v1843_v33 = vpop.f32.mrb[48].mxu1 }
 0xd22   :  { %v1844_v42 = vadd.f32 %v4126_v31, %v1843_v33  ;;  %v4742_v49 = vpop.f32.mrb[49].mxu1 }
 0xd23   :  { %v1846_v50 = vpop.f32.mrb[50].mxu1  ;;  %v5183_v49 = vld [vmem:[%s6423_s5 + $0x70] sm:$0xff]  }
 0xd24   :  { %vm1850_vm10 = vcmp.gt.f32.partialorder %v1844_v42, 0.5  ;;  %v4743_v51 = vpop.f32.mrb[51].mxu1  ;;  %v5184_v50 = vld [vmem:[%s6423_s5 + $0x78] sm:$0xff]  }
 0xd25   :  { %v4130_v52 = vsel %vm1850_vm10, 1.0, %v5245_v0 }
 0xd26   :  { %v1853_v53 = vpack.c.bf16 %v4130_v52, %v4130_v52 }
 0xd28   :  { %4749 = vmatmul.mubr.msk.bf16.vlgmr.msra.gmra.mrb[8].mxu0 %vm189_vm3, %v1853_v53 }
 0xd29   :  { %4765 = vmatpush3.bf16.msra.mxu0 %v5418_v43  ;;  %4768 = vmatprep.mubr.msk.bf16.mxu0 %vm5246_vm0, %v5245_v0 }
 0xd2a   :  { %4766 = vmatprep.subr.bf16.mxu0 %v5245_v0 }
 0xd2d   :  { %4767 = vmatpush3.bf16.msra.mxu0 %v5425_v47 }
 0xd2e   :  { %4772 = vmatprep.subr.bf16.mxu0 %v5245_v0 }
 0xd31   :  { %v1954_v57 = vpop.f32.mrb[52].mxu1 }
 0xd32   :  { %v1955_v59 = vadd.f32 %v5923_v58, %v1954_v57  ;;  %v4762_v35 = vpop.f32.mrb[53].mxu1 }
 0xd33   :  { %v1957_v5 = vpop.f32.mrb[54].mxu1 }
 0xd34   :  { %v1964_v43 = vadd.f32 %v5762_v25, %v1955_v59  ;;  %v4763_v8 = vpop.f32.mrb[55].mxu1  ;;  %v5185_v5 = vld [vmem:[%s6426_s7 + $0x70] sm:$0xff]  }
 0xd36   :  { %vm1965_vm11 = vcmp.gt.f32.partialorder %v1964_v43, 0.5 }
 0xd37   :  { %v4140_v14 = vsel %vm1965_vm11, 1.0, %v5245_v0 }
 0xd38   :  { %v1968_v15 = vpack.c.bf16 %v4140_v14, %v4140_v14  ;;  %v2437_v47 = vsub.f32 1.0, %v4140_v14 }
 0xd3a   :  { %4769 = vmatmul.mubr.msk.bf16.vlgmr.msra.gmra.mrb[40].mxu0 %vm189_vm3, %v1968_v15  ;;  %v2438_v16 = vmul.f32 0.2, %v2437_v47  ;;  %v4147_v15 = vld [vmem:[%s6427_s6 + $0x7] ss:$0 sm:$0xff] }
 0xd3b   :  { %4776 = vmatprep.mubr.msk.bf16.mxu0 %vm5246_vm0, %v5245_v0  ;;  %4773 = vmatpush3.bf16.msra.mxu0 %v5183_v49 }
 0xd3c   :  { %v5931_v17 = vmul.f32 %v2438_v16, %v1964_v43  ;;  %4774 = vmatprep.subr.bf16.mxu0 %v5245_v0 }
 0xd3f   :  { %4775 = vmatpush3.bf16.msra.mxu0 %v5184_v50 }
 0xd40   :  { %4780 = vmatprep.subr.bf16.mxu0 %v5245_v0 }
 0xd41   :  { %v2192_v20 = vpop.f32.mrb[56].mxu1 }
 0xd42   :  { %v2193_v25 = vadd.f32 %v5936_v60, %v2192_v20  ;;  %v4798_v26 = vpop.f32.mrb[57].mxu1 }
 0xd43   :  { %v2195_v7 = vpop.f32.mrb[58].mxu1 }
 0xd44   :  { %v2202_v9 = vadd.f32 %v5767_v23, %v2193_v25  ;;  %v4799_v11 = vpop.f32.mrb[59].mxu1 }
 0xd46   :  { %vm2203_vm12 = vcmp.gt.f32.partialorder %v2202_v9, 0.5 }
 0xd47   :  { %v4161_v30 = vsel %vm2203_vm12, 1.0, %v5245_v0 }
 0xd48   :  { %v2675_v31 = vsub.f32 1.0, %v4161_v30  ;;  %v2206_v11 = vpack.c.bf16 %v4161_v30, %v4161_v30 }
 0xd4a   :  { %v2676_v33 = vmul.f32 0.2, %v2675_v31  ;;  %v5187_v31 = vld [vmem:[%s6423_s5 + $0x80] sm:$0xff]  }
 0xd4b   :  { %4809 = vmatpush3.bf16.msra.mxu1 %v5187_v31 }
 0xd4c   :  { %v5941_v42 = vmul.f32 %v2676_v33, %v2202_v9  ;;  %4810 = vmatprep.subr.bf16.mxu1 %v5245_v0 }
 0xe0d   :  { %v2006_v23 = vpop.f32.mrb[40].mxu0 }
 0xe0e   :  { %v2007_v51 = vadd.f32 %v5460_v63, %v2006_v23  ;;  %v4770_v52 = vpop.f32.mrb[41].mxu0 }
 0xe0f   :  { %v2009_v53 = vpop.f32.mrb[42].mxu0 }
 0xe10   :  { %v2016_v57 = vadd.f32 %v5475_v22, %v2007_v51  ;;  %v4771_v59 = vpop.f32.mrb[43].mxu0  ;;  %v5186_v22 = vld [vmem:[%s6426_s7 + $0x78] sm:$0xff]  }
 0xe11   :  { %v4201_v59 = vld [vmem:[%s6421_s0 + $0x28] sm:$0xf] }
 0xe12   :  { %vm2017_vm13 = vcmp.gt.f32.partialorder %v2016_v57, 0.5 }
 0xe13   :  { %v4142_v35 = vsel %vm2017_vm13, 1.0, %v5245_v0 }
 0xe14   :  { %v2020_v43 = vpack.c.bf16 %v4142_v35, %v4142_v35  ;;  %v3405_v8 = vsub.f32 1.0, %v4142_v35  ;;  %v5189_v35 = vld [vmem:[%s6426_s7 + $0x80] sm:$0xff]  }
 0xe16   :  { %4777 = vmatmul.mubr.msk.bf16.vlgmr.msra.gmra.mrb[44].mxu0 %vm189_vm3, %v2020_v43  ;;  %v3406_v14 = vmul.f32 0.2, %v3405_v8  ;;  %v4168_v43 = vld [vmem:[%s6427_s6 + $0x8] ss:$0 sm:$0xff] }
 0xe17   :  { %4781 = vmatpush3.bf16.msra.mxu0 %v5185_v5  ;;  %4784 = vmatprep.mubr.msk.bf16.mxu0 %vm5246_vm0, %v5245_v0  ;;  %v5190_v5 = vld [vmem:[%s6426_s7 + $0x88] sm:$0xff]  }
 0xe18   :  { %4782 = vmatprep.subr.bf16.mxu0 %v5245_v0  ;;  %v5961_v63 = vmul.f32 %v3406_v14, %v2016_v57 }
 0xe1b   :  { %4783 = vmatpush3.bf16.msra.mxu0 %v5186_v22 }
 0xe1c   :  { %4800 = vmatprep.subr.bf16.mxu0 %v5245_v0 }
 0xee9   :  { %v2081_v47 = vpop.f32.mrb[44].mxu0 }
 0xeea   :  { %v2082_v16 = vadd.f32 %v4147_v15, %v2081_v47  ;;  %v4778_v20 = vpop.f32.mrb[45].mxu0 }
 0xeeb   :  { %v2084_v25 = vpop.f32.mrb[46].mxu0 }
 0xeec   :  { %vm2088_vm14 = vcmp.gt.f32.partialorder %v2082_v16, 0.5  ;;  %v4779_v26 = vpop.f32.mrb[47].mxu0 }
 0xeed   :  { %v4151_v7 = vsel %vm2088_vm14, 1.0, %v5245_v0 }
 0xeee   :  { %v2091_v9 = vpack.c.bf16 %v4151_v7, %v4151_v7 }
 0xef0   :  { %4785 = vmatmul.mubr.msk.bf16.vlgmr.msra.gmra.mrb[8].mxu0 %vm189_vm3, %v2091_v9 }
 0xef1   :  { %4801 = vmatpush3.bf16.msra.mxu0 %v5508_v40  ;;  %4804 = vmatprep.mubr.msk.bf16.mxu0 %vm5246_vm0, %v5245_v0  ;;  %v5188_v40 = vld [vmem:[%s6423_s5 + $0x88] sm:$0xff]  }
 0xef2   :  { %4802 = vmatprep.subr.bf16.mxu0 %v5245_v0  ;;  %4811 = vmatpush3.bf16.msra.mxu1 %v5188_v40 }
 0xef3   :  { %4824 = vmatprep.subr.bf16.mxu1 %v5245_v0 }
 0xef5   :  { %4803 = vmatpush3.bf16.msra.mxu0 %v5515_v41 }
 0xef6   :  { %4816 = vmatprep.subr.bf16.mxu0 %v5245_v0 }
 0xef8   :  { %4805 = vmatmul.mubr.msk.bf16.vlgmr.msra.gmra.mrb[48].mxu0 %vm189_vm3, %v2206_v11 }
 0xef9   :  { %4820 = vmatprep.mubr.msk.bf16.mxu0 %vm5246_vm0, %v5245_v0  ;;  %4817 = vmatpush3.bf16.msra.mxu0 %v5189_v35  ;;  %v5192_v35 = vld [vmem:[%s6423_s5 + $0x98] sm:$0xff]  }
 0xefa   :  { %4818 = vmatprep.subr.bf16.mxu0 %v5245_v0 }
 0xefd   :  { %4819 = vmatpush3.bf16.msra.mxu0 %v5190_v5 }
 0xefe   :  { %4836 = vmatprep.subr.bf16.mxu0 %v5245_v0 }
 0xfcb   :  { %v2244_v41 = vpop.f32.mrb[48].mxu0 }
 0xfcc   :  { %v2245_v30 = vadd.f32 %v5540_v24, %v2244_v41  ;;  %v4806_v33 = vpop.f32.mrb[49].mxu0 }
 0xfcd   :  { %v2247_v49 = vpop.f32.mrb[50].mxu0 }
 0xfce   :  { %v2254_v50 = vadd.f32 %v5548_v19, %v2245_v30  ;;  %v4807_v23 = vpop.f32.mrb[51].mxu0  ;;  %v4180_v19 = vld [vmem:[%s6421_s0 + $0x24] sm:$0xf] }
 0xfd0   :  { %vm2255_vm15 = vcmp.gt.f32.partialorder %v2254_v50, 0.5 }
 0xfd1   :  { %v4163_v51 = vsel %vm2255_vm15, 1.0, %v5245_v0 }
 0xfd2   :  { %v2258_v52 = vpack.c.bf16 %v4163_v51, %v4163_v51  ;;  %v3607_v53 = vsub.f32 1.0, %v4163_v51 }
 0xfd4   :  { %4813 = vmatmul.mubr.msk.bf16.vlgmr.msra.gmra.mrb[60].mxu1 %vm189_vm3, %v2258_v52  ;;  %v3608_v57 = vmul.f32 0.2, %v3607_v53 }
 0xfd5   :  { %4825 = vmatpush3.bf16.msra.mxu1 %v5832_v18  ;;  %4832 = vmatprep.mubr.msk.bf16.mxu1 %vm5246_vm0, %v5245_v0 }
 0xfd6   :  { %4826 = vmatprep.subr.bf16.mxu1 %v5245_v0  ;;  %v5997_v24 = vmul.f32 %v3608_v57, %v2254_v50 }
 0xfd9   :  { %4827 = vmatpush3.bf16.msra.mxu1 %v5843_v48 }
 0xfda   :  { %4828 = vmatprep.subr.bf16.mxu1 %v5245_v0 }
 0xfdd   :  { %4829 = vmatpush3.bf16.msra.mxu1 %v5850_v27 }
 0xfde   :  { %4830 = vmatprep.subr.bf16.mxu1 %v5245_v0 }
 0xfe1   :  { %4831 = vmatpush3.bf16.msra.mxu1 %v5857_v6 }
 0xfe2   :  { %4860 = vmatprep.subr.bf16.mxu1 %v5245_v0 }
 0xfe4   :  { %4833 = vmatmul.mubr.msk.bf16.vlgmr.msra.gmra.mrb[64].mxu1 %vm118_vm1, %v4180_v19 }
 0xfe5   :  { %4861 = vmatpush3.bf16.msra.mxu1 %v5868_v1  ;;  %4868 = vmatprep.mubr.msk.bf16.mxu1 %vm5246_vm0, %v5245_v0 }
 0xfe6   :  { %4862 = vmatprep.subr.bf16.mxu1 %v5245_v0 }
 0xfe9   :  { %4863 = vmatpush3.bf16.msra.mxu1 %v5877_v2 }
 0xfea   :  { %4864 = vmatprep.subr.bf16.mxu1 %v5245_v0 }
 0xfed   :  { %4865 = vmatpush3.bf16.msra.mxu1 %v5884_v3 }
 0xfee   :  { %4866 = vmatprep.subr.bf16.mxu1 %v5245_v0 }
 0xff1   :  { %4867 = vmatpush3.bf16.msra.mxu1 %v5891_v4 }
 0xff2   :  { %4880 = vmatprep.subr.bf16.mxu1 %v5245_v0 }
 0xff4   :  { %4869 = vmatmul.mubr.msk.bf16.vlgmr.msra.gmra.mrb[68].mxu1 %vm118_vm1, %v4201_v59  ;;  %v5191_v59 = vld [vmem:[%s6423_s5 + $0x90] sm:$0xff]  }
 0xff5   :  { %4884 = vmatprep.mubr.msk.bf16.mxu1 %vm5246_vm0, %v5245_v0 }
0x10a7   :  { %v2319_v8 = vpop.f32.mrb[60].mxu1 }
0x10a8   :  { %v2320_v14 = vadd.f32 %v4168_v43, %v2319_v8  ;;  %v4814_v22 = vpop.f32.mrb[61].mxu1 }
0x10a9   :  { %v2322_v15 = vpop.f32.mrb[62].mxu1 }
0x10aa   :  { %vm2326_vm2 = vcmp.gt.f32.partialorder %v2320_v14, 0.5  ;;  %v4815_v47 = vpop.f32.mrb[63].mxu1 }
0x10ab   :  { %v4172_v16 = vsel %vm2326_vm2, 1.0, %v5245_v0  ;;  %v5193_v47 = vld [vmem:[%s6426_s7 + $0x90] sm:$0xff]  }
0x10ac   :  { %v2329_v20 = vpack.c.bf16 %v4172_v16, %v4172_v16 }
0x10ae   :  { %4821 = vmatmul.mubr.msk.bf16.vlgmr.msra.gmra.mrb[8].mxu0 %vm189_vm3, %v2329_v20 }
0x10af   :  { %4837 = vmatpush3.bf16.msra.mxu0 %v5592_v34  ;;  %4840 = vmatprep.mubr.msk.bf16.mxu0 %vm5246_vm0, %v5245_v0 }
0x10b0   :  { %4838 = vmatprep.subr.bf16.mxu0 %v5245_v0 }
0x10b3   :  { %4839 = vmatpush3.bf16.msra.mxu0 %v5599_v45 }
0x10b4   :  { %4844 = vmatprep.subr.bf16.mxu0 %v5245_v0 }
0x10b7   :  { %v2430_v25 = vpop.f32.mrb[64].mxu1 }
0x10b8   :  { %v2431_v26 = vadd.f32 %v5923_v58, %v2430_v25  ;;  %v4834_v7 = vpop.f32.mrb[65].mxu1 }
0x10b9   :  { %v2433_v9 = vpop.f32.mrb[66].mxu1 }
0x10ba   :  { %v2440_v11 = vadd.f32 %v5931_v17, %v2431_v26  ;;  %v4835_v31 = vpop.f32.mrb[67].mxu1  ;;  %v4189_v26 = vld [vmem:[%s6427_s6 + $0x9] ss:$0 sm:$0xff] }
0x10bc   :  { %vm2441_vm4 = vcmp.gt.f32.partialorder %v2440_v11, 0.5 }
0x10bd   :  { %v4182_v34 = vsel %vm2441_vm4, 1.0, %v5245_v0 }
0x10be   :  { %v2444_v40 = vpack.c.bf16 %v4182_v34, %v4182_v34  ;;  %v2913_v41 = vsub.f32 1.0, %v4182_v34 }
0x10c0   :  { %4841 = vmatmul.mubr.msk.bf16.vlgmr.msra.gmra.mrb[52].mxu0 %vm189_vm3, %v2444_v40  ;;  %v2914_v30 = vmul.f32 0.2, %v2913_v41 }
0x10c1   :  { %4848 = vmatprep.mubr.msk.bf16.mxu0 %vm5246_vm0, %v5245_v0  ;;  %4845 = vmatpush3.bf16.msra.mxu0 %v5191_v59  ;;  %v5216_v59 = vld [vmem:[%s6423_s5 + $0x8] sm:$0xff]  }
0x10c2   :  { %v6050_v45 = vmul.f32 %v2914_v30, %v2440_v11  ;;  %4846 = vmatprep.subr.bf16.mxu0 %v5245_v0 }
0x10c5   :  { %4847 = vmatpush3.bf16.msra.mxu0 %v5192_v35  ;;  %v5197_v35 = vld [vmem:[%s6426_s7 + $0xa0] sm:$0xff]  }
0x10c6   :  { %4852 = vmatprep.subr.bf16.mxu0 %v5245_v0 }
0x10c7   :  { %v2668_v33 = vpop.f32.mrb[68].mxu1 }
0x10c8   :  { %v2669_v49 = vadd.f32 %v5936_v60, %v2668_v33  ;;  %v4870_v50 = vpop.f32.mrb[69].mxu1  ;;  %v5195_v33 = vld [vmem:[%s6423_s5 + $0xa0] sm:$0xff]  }
0x10c9   :  { %v2671_v23 = vpop.f32.mrb[70].mxu1  ;;  %4881 = vmatpush3.bf16.msra.mxu1 %v5195_v33 }
0x10ca   :  { %v2678_v17 = vadd.f32 %v5941_v42, %v2669_v49  ;;  %v4871_v51 = vpop.f32.mrb[71].mxu1  ;;  %4882 = vmatprep.subr.bf16.mxu1 %v5245_v0 }
0x10cc   :  { %vm2679_vm5 = vcmp.gt.f32.partialorder %v2678_v17, 0.5 }
0x10cd   :  { %v4203_v52 = vsel %vm2679_vm5, 1.0, %v5245_v0 }
0x10ce   :  { %v3151_v53 = vsub.f32 1.0, %v4203_v52  ;;  %v2682_v30 = vpack.c.bf16 %v4203_v52, %v4203_v52 }
0x10d0   :  { %v3152_v57 = vmul.f32 0.2, %v3151_v53 }
0x10d2   :  { %v6055_v19 = vmul.f32 %v3152_v57, %v2678_v17  ;;  %v5215_v57 = vld [vmem:[%s6423_s5] sm:$0xff]  }
0x1193   :  { %v2482_v42 = vpop.f32.mrb[52].mxu0 }
0x1194   :  { %v2483_v5 = vadd.f32 %v5632_v21, %v2482_v42  ;;  %v4842_v43 = vpop.f32.mrb[53].mxu0  ;;  %v5198_v42 = vld [vmem:[%s6426_s7 + $0xa8] sm:$0xff]  }
0x1195   :  { %v2485_v8 = vpop.f32.mrb[54].mxu0 }
0x1196   :  { %v2492_v14 = vadd.f32 %v5642_v37, %v2483_v5  ;;  %v4843_v22 = vpop.f32.mrb[55].mxu0  ;;  %v5194_v37 = vld [vmem:[%s6426_s7 + $0x98] sm:$0xff]   ;;  %v4210_v5 = vld [vmem:[%s6427_s6 + $0xa] ss:$0 sm:$0xff] }
0x1198   :  { %vm2493_vm6 = vcmp.gt.f32.partialorder %v2492_v14, 0.5 }
0x1199   :  { %v4184_v15 = vsel %vm2493_vm6, 1.0, %v5245_v0 }
0x119a   :  { %v2496_v16 = vpack.c.bf16 %v4184_v15, %v4184_v15  ;;  %v3809_v20 = vsub.f32 1.0, %v4184_v15 }
0x119c   :  { %4849 = vmatmul.mubr.msk.bf16.vlgmr.msra.gmra.mrb[56].mxu0 %vm189_vm3, %v2496_v16  ;;  %v3810_v25 = vmul.f32 0.2, %v3809_v20 }
0x119d   :  { %4853 = vmatpush3.bf16.msra.mxu0 %v5193_v47  ;;  %4856 = vmatprep.mubr.msk.bf16.mxu0 %vm5246_vm0, %v5245_v0 }
0x119e   :  { %4854 = vmatprep.subr.bf16.mxu0 %v5245_v0  ;;  %v6075_v21 = vmul.f32 %v3810_v25, %v2492_v14 }
0x11a1   :  { %4855 = vmatpush3.bf16.msra.mxu0 %v5194_v37 }
0x11a2   :  { %4872 = vmatprep.subr.bf16.mxu0 %v5245_v0 }
0x126f   :  { %v2557_v7 = vpop.f32.mrb[56].mxu0 }
0x1270   :  { %v2558_v9 = vadd.f32 %v4189_v26, %v2557_v7  ;;  %v4850_v11 = vpop.f32.mrb[57].mxu0 }
0x1271   :  { %v2560_v31 = vpop.f32.mrb[58].mxu0 }
0x1272   :  { %vm2564_vm7 = vcmp.gt.f32.partialorder %v2558_v9, 0.5  ;;  %v4851_v34 = vpop.f32.mrb[59].mxu0 }
0x1273   :  { %v4193_v40 = vsel %vm2564_vm7, 1.0, %v5245_v0 }
0x1274   :  { %v2567_v41 = vpack.c.bf16 %v4193_v40, %v4193_v40 }
0x1276   :  { %4857 = vmatmul.mubr.msk.bf16.vlgmr.msra.gmra.mrb[8].mxu0 %vm189_vm3, %v2567_v41 }
0x1277   :  { %4873 = vmatpush3.bf16.msra.mxu0 %v5660_v56  ;;  %4876 = vmatprep.mubr.msk.bf16.mxu0 %vm5246_vm0, %v5245_v0  ;;  %v5196_v56 = vld [vmem:[%s6423_s5 + $0xa8] sm:$0xff]  }
0x1278   :  { %4874 = vmatprep.subr.bf16.mxu0 %v5245_v0  ;;  %4883 = vmatpush3.bf16.msra.mxu1 %v5196_v56 }
0x1279   :  { %4896 = vmatprep.subr.bf16.mxu1 %v5245_v0 }
0x127b   :  { %4875 = vmatpush3.bf16.msra.mxu0 %v5667_v61 }
0x127c   :  { %4888 = vmatprep.subr.bf16.mxu0 %v5245_v0 }
0x127e   :  { %4877 = vmatmul.mubr.msk.bf16.vlgmr.msra.gmra.mrb[60].mxu0 %vm189_vm3, %v2682_v30 }
0x127f   :  { %4892 = vmatprep.mubr.msk.bf16.mxu0 %vm5246_vm0, %v5245_v0  ;;  %4889 = vmatpush3.bf16.msra.mxu0 %v5197_v35  ;;  %v5201_v35 = vld [vmem:[%s6426_s7 + $0xb0] sm:$0xff]  }
0x1280   :  { %4890 = vmatprep.subr.bf16.mxu0 %v5245_v0 }
0x1283   :  { %4891 = vmatpush3.bf16.msra.mxu0 %v5198_v42 }
0x1284   :  { %4908 = vmatprep.subr.bf16.mxu0 %v5245_v0 }
0x1351   :  { %v2720_v61 = vpop.f32.mrb[60].mxu0 }
0x1352   :  { %v2721_v49 = vadd.f32 %v5686_v12, %v2720_v61  ;;  %v4878_v50 = vpop.f32.mrb[61].mxu0  ;;  %v4222_v12 = vld [vmem:[%s6421_s0 + $0x2c] sm:$0xf] }
0x1353   :  { %v2723_v23 = vpop.f32.mrb[62].mxu0 }
0x1354   :  { %v2730_v17 = vadd.f32 %v5694_v28, %v2721_v49  ;;  %v4879_v51 = vpop.f32.mrb[63].mxu0  ;;  %v4243_v28 = vld [vmem:[%s6421_s0 + $0x30] sm:$0xf] }
0x1355   :  { %v5200_v51 = vld [vmem:[%s6423_s5 + $0xb8] sm:$0xff]  }
0x1356   :  { %vm2731_vm8 = vcmp.gt.f32.partialorder %v2730_v17, 0.5  ;;  %v5199_v17 = vld [vmem:[%s6423_s5 + $0xb0] sm:$0xff]  }
0x1357   :  { %v4205_v52 = vsel %vm2731_vm8, 1.0, %v5245_v0 }
0x1358   :  { %v2734_v53 = vpack.c.bf16 %v4205_v52, %v4205_v52 }
0x135a   :  { %4885 = vmatmul.mubr.msk.bf16.vlgmr.msra.gmra.mrb[72].mxu1 %vm189_vm3, %v2734_v53 }
0x135b   :  { %4897 = vmatpush3.bf16.msra.mxu1 %v5832_v18  ;;  %4904 = vmatprep.mubr.msk.bf16.mxu1 %vm5246_vm0, %v5245_v0 }
0x135c   :  { %4898 = vmatprep.subr.bf16.mxu1 %v5245_v0 }
0x135f   :  { %4899 = vmatpush3.bf16.msra.mxu1 %v5843_v48 }
0x1360   :  { %4900 = vmatprep.subr.bf16.mxu1 %v5245_v0 }
0x1363   :  { %4901 = vmatpush3.bf16.msra.mxu1 %v5850_v27 }
0x1364   :  { %4902 = vmatprep.subr.bf16.mxu1 %v5245_v0 }
0x1367   :  { %4903 = vmatpush3.bf16.msra.mxu1 %v5857_v6 }
0x1368   :  { %4932 = vmatprep.subr.bf16.mxu1 %v5245_v0 }
0x136a   :  { %4905 = vmatmul.mubr.msk.bf16.vlgmr.msra.gmra.mrb[76].mxu1 %vm118_vm1, %v4222_v12 }
0x136b   :  { %4933 = vmatpush3.bf16.msra.mxu1 %v5868_v1  ;;  %4940 = vmatprep.mubr.msk.bf16.mxu1 %vm5246_vm0, %v5245_v0 }
0x136c   :  { %4934 = vmatprep.subr.bf16.mxu1 %v5245_v0 }
0x136f   :  { %4935 = vmatpush3.bf16.msra.mxu1 %v5877_v2 }
0x1370   :  { %4936 = vmatprep.subr.bf16.mxu1 %v5245_v0 }
0x1373   :  { %4937 = vmatpush3.bf16.msra.mxu1 %v5884_v3 }
0x1374   :  { %4938 = vmatprep.subr.bf16.mxu1 %v5245_v0 }
0x1377   :  { %4939 = vmatpush3.bf16.msra.mxu1 %v5891_v4 }
0x1378   :  { %4952 = vmatprep.subr.bf16.mxu1 %v5245_v0 }
0x137a   :  { %4941 = vmatmul.mubr.msk.bf16.vlgmr.msra.gmra.mrb[80].mxu1 %vm118_vm1, %v4243_v28 }
0x137b   :  { %4953 = vmatpush3.bf16.msra.mxu1 %v5215_v57  ;;  %4956 = vmatprep.mubr.msk.bf16.mxu1 %vm5246_vm0, %v5245_v0 }
0x137c   :  { %4954 = vmatprep.subr.bf16.mxu1 %v5245_v0 }
0x137f   :  { %4955 = vmatpush3.bf16.msra.mxu1 %v5216_v59 }
0x1380   :  { %4968 = vmatprep.subr.bf16.mxu1 %v5245_v0 }
0x142d   :  { %v2795_v43 = vpop.f32.mrb[72].mxu1 }
0x142e   :  { %v2796_v8 = vadd.f32 %v4210_v5, %v2795_v43  ;;  %v4886_v14 = vpop.f32.mrb[73].mxu1 }
0x142f   :  { %v2798_v22 = vpop.f32.mrb[74].mxu1 }
0x1430   :  { %vm2802_vm9 = vcmp.gt.f32.partialorder %v2796_v8, 0.5  ;;  %v4887_v15 = vpop.f32.mrb[75].mxu1 }
0x1431   :  { %v4214_v47 = vsel %vm2802_vm9, 1.0, %v5245_v0 }
0x1432   :  { %v2805_v16 = vpack.c.bf16 %v4214_v47, %v4214_v47 }
0x1434   :  { %4893 = vmatmul.mubr.msk.bf16.vlgmr.msra.gmra.mrb[8].mxu0 %vm189_vm3, %v2805_v16 }
0x1435   :  { %4909 = vmatpush3.bf16.msra.mxu0 %v5738_v32  ;;  %4912 = vmatprep.mubr.msk.bf16.mxu0 %vm5246_vm0, %v5245_v0 }
0x1436   :  { %4910 = vmatprep.subr.bf16.mxu0 %v5245_v0 }
0x1439   :  { %4911 = vmatpush3.bf16.msra.mxu0 %v5745_v39 }
0x143a   :  { %4916 = vmatprep.subr.bf16.mxu0 %v5245_v0 }
0x143d   :  { %v2906_v20 = vpop.f32.mrb[76].mxu1 }
0x143e   :  { %v2907_v25 = vadd.f32 %v5923_v58, %v2906_v20  ;;  %v4906_v37 = vpop.f32.mrb[77].mxu1  ;;  %v5217_v20 = vld [vmem:[%s6426_s7] sm:$0xff]  }
0x143f   :  { %v2909_v26 = vpop.f32.mrb[78].mxu1 }
0x1440   :  { %v2916_v7 = vadd.f32 %v6050_v45, %v2907_v25  ;;  %v4907_v9 = vpop.f32.mrb[79].mxu1  ;;  %v5219_v25 = vld [vmem:[%s6425_s4] ss:$0 sm:$0xff] }
0x1442   :  { %vm2917_vm10 = vcmp.gt.f32.partialorder %v2916_v7, 0.5 }
0x1443   :  { %v4224_v32 = vsel %vm2917_vm10, 1.0, %v5245_v0 }
0x1444   :  { %v2920_v11 = vpack.c.bf16 %v4224_v32, %v4224_v32  ;;  %v3353_v31 = vsub.f32 1.0, %v4224_v32 }
0x1446   :  { %4913 = vmatmul.mubr.msk.bf16.vlgmr.msra.gmra.mrb[64].mxu0 %vm189_vm3, %v2920_v11  ;;  %v3354_v34 = vmul.f32 0.2, %v3353_v31 }
0x1447   :  { %4920 = vmatprep.mubr.msk.bf16.mxu0 %vm5246_vm0, %v5245_v0  ;;  %4917 = vmatpush3.bf16.msra.mxu0 %v5199_v17 }
0x1448   :  { %v6170_v39 = vmul.f32 %v3354_v34, %v2916_v7  ;;  %4918 = vmatprep.subr.bf16.mxu0 %v5245_v0  ;;  %v4259_v34 = vld [vmem:[%s6421_s0 + $0x38] sm:$0xf] }
0x144b   :  { %4919 = vmatpush3.bf16.msra.mxu0 %v5200_v51 }
0x144c   :  { %4924 = vmatprep.subr.bf16.mxu0 %v5245_v0 }
0x144d   :  { %v3144_v40 = vpop.f32.mrb[80].mxu1 }
0x144e   :  { %v3145_v41 = vadd.f32 %v5936_v60, %v3144_v40  ;;  %v4942_v30 = vpop.f32.mrb[81].mxu1 }
0x144f   :  { %v3147_v33 = vpop.f32.mrb[82].mxu1 }
0x1450   :  { %v3154_v45 = vadd.f32 %v6055_v19, %v3145_v41  ;;  %v4943_v56 = vpop.f32.mrb[83].mxu1 }
0x1452   :  { %vm3155_vm11 = vcmp.gt.f32.partialorder %v3154_v45, 0.5 }
0x1453   :  { %v4245_v61 = vsel %vm3155_vm11, 1.0, %v5245_v0 }
0x1454   :  { %v3555_v49 = vsub.f32 1.0, %v4245_v61  ;;  %v3158_v16 = vpack.c.bf16 %v4245_v61, %v4245_v61 }
0x1456   :  { %v3556_v50 = vmul.f32 0.2, %v3555_v49  ;;  %v5223_v49 = vld [vmem:[%s6422_s3 + $0x10] sm:$0xff]  }
0x1458   :  { %v6175_v23 = vmul.f32 %v3556_v50, %v3154_v45 }
0x1519   :  { %v2958_v19 = vpop.f32.mrb[64].mxu0 }
0x151a   :  { %v2959_v52 = vadd.f32 %v5776_v13, %v2958_v19  ;;  %v4914_v53 = vpop.f32.mrb[65].mxu0  ;;  %v5202_v13 = vld [vmem:[%s6426_s7 + $0xb8] sm:$0xff]  }
0x151b   :  { %v2961_v12 = vpop.f32.mrb[66].mxu0 }
0x151c   :  { %v2968_v28 = vadd.f32 %v5786_v29, %v2959_v52  ;;  %v4915_v57 = vpop.f32.mrb[67].mxu0  ;;  %v4231_v29 = vld [vmem:[%s6427_s6 + $0xb] ss:$0 sm:$0xff] }
0x151e   :  { %vm2969_vm12 = vcmp.gt.f32.partialorder %v2968_v28, 0.5 }
0x151f   :  { %v4226_v59 = vsel %vm2969_vm12, 1.0, %v5245_v0 }
0x1520   :  { %v2972_v42 = vpack.c.bf16 %v4226_v59, %v4226_v59 }
0x1522   :  { %4921 = vmatmul.mubr.msk.bf16.vlgmr.msra.gmra.mrb[68].mxu0 %vm189_vm3, %v2972_v42  ;;  %v5226_v42 = vld [vmem:[%s6423_s5 + $0x18] sm:$0xff]  }
0x1523   :  { %4925 = vmatpush3.bf16.msra.mxu0 %v5201_v35  ;;  %4928 = vmatprep.mubr.msk.bf16.mxu0 %vm5246_vm0, %v5245_v0  ;;  %v5225_v35 = vld [vmem:[%s6423_s5 + $0x10] sm:$0xff]  }
0x1524   :  { %4926 = vmatprep.subr.bf16.mxu0 %v5245_v0 }
0x1527   :  { %4927 = vmatpush3.bf16.msra.mxu0 %v5202_v13 }
0x1528   :  { %4944 = vmatprep.subr.bf16.mxu0 %v5245_v0 }
0x15f5   :  { %v3033_v5 = vpop.f32.mrb[68].mxu0 }
0x15f6   :  { %v3034_v43 = vadd.f32 %v4231_v29, %v3033_v5  ;;  %v4922_v8 = vpop.f32.mrb[69].mxu0 }
0x15f7   :  { %v3036_v14 = vpop.f32.mrb[70].mxu0 }
0x15f8   :  { %vm3040_vm13 = vcmp.gt.f32.partialorder %v3034_v43, 0.5  ;;  %v4923_v22 = vpop.f32.mrb[71].mxu0 }
0x15f9   :  { %v4235_v15 = vsel %vm3040_vm13, 1.0, %v5245_v0 }
0x15fa   :  { %v3043_v47 = vpack.c.bf16 %v4235_v15, %v4235_v15  ;;  %v5227_v15 = vld [vmem:[%s6425_s4 + $0x1] ss:$0 sm:$0xff] }
0x15fc   :  { %4929 = vmatmul.mubr.msk.bf16.vlgmr.msra.gmra.mrb[8].mxu0 %vm189_vm3, %v3043_v47 }
0x15fd   :  { %4945 = vmatpush3.bf16.msra.mxu0 %v5801_v54  ;;  %4948 = vmatprep.mubr.msk.bf16.mxu0 %vm5246_vm0, %v5245_v0  ;;  %v5218_v54 = vld [vmem:[%s6426_s7 + $0x8] sm:$0xff]  }
0x15fe   :  { %4946 = vmatprep.subr.bf16.mxu0 %v5245_v0 }
0x1601   :  { %4947 = vmatpush3.bf16.msra.mxu0 %v5810_v55 }
0x1602   :  { %4960 = vmatprep.subr.bf16.mxu0 %v5245_v0 }
0x1604   :  { %4949 = vmatmul.mubr.msk.bf16.vlgmr.msra.gmra.mrb[72].mxu0 %vm189_vm3, %v3158_v16 }
0x1605   :  { %4961 = vmatpush3.bf16.msra.mxu0 %v5217_v20  ;;  %4964 = vmatprep.mubr.msk.bf16.mxu0 %vm5246_vm0, %v5245_v0 }
0x1606   :  { %4962 = vmatprep.subr.bf16.mxu0 %v5245_v0 }
0x1609   :  { %4963 = vmatpush3.bf16.msra.mxu0 %v5218_v54 }
0x160a   :  { %4980 = vmatprep.subr.bf16.mxu0 %v5245_v0 }
0x16d7   :  { %v3196_v55 = vpop.f32.mrb[72].mxu0 }
0x16d8   :  { %v3197_v37 = vadd.f32 %v5219_v25, %v3196_v55  ;;  %v4950_v26 = vpop.f32.mrb[73].mxu0 }
0x16d9   :  { %v3199_v7 = vpop.f32.mrb[74].mxu0  ;;  %v5230_v26 = vld [vmem:[%s6427_s6 + $0x1] ss:$0 sm:$0xff] }
0x16da   :  { %v3206_v9 = vadd.f32 %v5838_v36, %v3197_v37  ;;  %v4951_v32 = vpop.f32.mrb[75].mxu0  ;;  %v4251_v36 = vld [vmem:[%s6421_s0 + $0x34] sm:$0xf] }
0x16dc   :  { %vm3207_vm14 = vcmp.gt.f32.partialorder %v3206_v9, 0.5 }
0x16dd   :  { %v4247_v11 = vsel %vm3207_vm14, 1.0, %v5245_v0 }
0x16de   :  { %v3210_v31 = vpack.c.bf16 %v4247_v11, %v4247_v11 }
0x16e0   :  { %4957 = vmatmul.mubr.msk.bf16.vlgmr.msra.gmra.mrb[84].mxu1 %vm189_vm3, %v3210_v31 }
0x16e1   :  { %4969 = vmatpush3.bf16.msra.mxu1 %v5832_v18  ;;  %4976 = vmatprep.mubr.msk.bf16.mxu1 %vm5246_vm0, %v5245_v0 }
0x16e2   :  { %4970 = vmatprep.subr.bf16.mxu1 %v5245_v0 }
0x16e5   :  { %4971 = vmatpush3.bf16.msra.mxu1 %v5843_v48 }
0x16e6   :  { %4972 = vmatprep.subr.bf16.mxu1 %v5245_v0 }
0x16e9   :  { %4973 = vmatpush3.bf16.msra.mxu1 %v5850_v27 }
0x16ea   :  { %4974 = vmatprep.subr.bf16.mxu1 %v5245_v0 }
0x16ed   :  { %4975 = vmatpush3.bf16.msra.mxu1 %v5857_v6 }
0x16ee   :  { %5004 = vmatprep.subr.bf16.mxu1 %v5245_v0 }
0x16f0   :  { %4977 = vmatmul.mubr.msk.bf16.vlgmr.msra.gmra.mrb[88].mxu1 %vm118_vm1, %v4251_v36 }
0x16f1   :  { %5005 = vmatpush3.bf16.msra.mxu1 %v5868_v1  ;;  %5012 = vmatprep.mubr.msk.bf16.mxu1 %vm5246_vm0, %v5245_v0  ;;  %v5220_v1 = vld [vmem:[%s6423_s5 + $0x20] sm:$0xff]  }
0x16f2   :  { %5006 = vmatprep.subr.bf16.mxu1 %v5245_v0 }
0x16f5   :  { %5007 = vmatpush3.bf16.msra.mxu1 %v5877_v2  ;;  %v5221_v2 = vld [vmem:[%s6423_s5 + $0x28] sm:$0xff]  }
0x16f6   :  { %5008 = vmatprep.subr.bf16.mxu1 %v5245_v0 }
0x16f9   :  { %5009 = vmatpush3.bf16.msra.mxu1 %v5884_v3 }
0x16fa   :  { %5010 = vmatprep.subr.bf16.mxu1 %v5245_v0 }
0x16fd   :  { %5011 = vmatpush3.bf16.msra.mxu1 %v5891_v4  ;;  %v5222_v4 = vld [vmem:[%s6427_s6] ss:$0 sm:$0xff] }
0x16fe   :  { %5024 = vmatprep.subr.bf16.mxu1 %v5245_v0 }
0x1700   :  { %5013 = vmatmul.mubr.msk.bf16.vlgmr.msra.gmra.mrb[92].mxu1 %vm118_vm1, %v4259_v34 }
0x1701   :  { %5025 = vmatpush3.bf16.msra.mxu1 %v5220_v1  ;;  %5028 = vmatprep.mubr.msk.bf16.mxu1 %vm5246_vm0, %v5245_v0  ;;  %v5231_v1 = vld [vmem:[%s6422_s3 + $0x20] sm:$0xff]  }
0x1702   :  { %5026 = vmatprep.subr.bf16.mxu1 %v5245_v0 }
0x1705   :  { %5027 = vmatpush3.bf16.msra.mxu1 %v5221_v2  ;;  %v5232_v2 = vld [vmem:[%s6422_s3 + $0x28] sm:$0xff]  }
0x1706   :  { %5040 = vmatprep.subr.bf16.mxu1 %v5245_v0 }
0x17b3   :  { %v3248_v3 = vpop.f32.mrb[84].mxu1 }
0x17b4   :  { %v3249_v40 = vadd.f32 %v5222_v4, %v3248_v3  ;;  %v4958_v41 = vpop.f32.mrb[85].mxu1  ;;  %v5233_v4 = vld [vmem:[%s6426_s7 + $0x20] sm:$0xff]  }
0x17b5   :  { %v3251_v30 = vpop.f32.mrb[86].mxu1 }
0x17b6   :  { %v3258_v33 = vadd.f32 %v5465_v10, %v3249_v40  ;;  %v4959_v45 = vpop.f32.mrb[87].mxu1  ;;  %v5224_v10 = vld [vmem:[%s6422_s3 + $0x18] sm:$0xff]   ;;  %v5234_v40 = vld [vmem:[%s6426_s7 + $0x28] sm:$0xff]   ;;  %v5235_v30 = vld [vmem:[%s6425_s4 + $0x2] ss:$0 sm:$0xff] }
0x17b8   :  { %vm3259_vm15 = vcmp.gt.f32.partialorder %v3258_v33, 0.5 }
0x17b9   :  { %v4249_v56 = vsel %vm3259_vm15, 1.0, %v5245_v0 }
0x17ba   :  { %v3262_v61 = vpack.c.bf16 %v4249_v56, %v4249_v56 }
0x17bc   :  { %4965 = vmatmul.mubr.msk.bf16.vlgmr.msra.gmra.mrb[8].mxu0 %vm189_vm3, %v3262_v61 }
0x17bd   :  { %4981 = vmatpush3.bf16.msra.mxu0 %v5223_v49  ;;  %4984 = vmatprep.mubr.msk.bf16.mxu0 %vm5246_vm0, %v5245_v0 }
0x17be   :  { %4982 = vmatprep.subr.bf16.mxu0 %v5245_v0 }
0x17c1   :  { %4983 = vmatpush3.bf16.msra.mxu0 %v5224_v10 }
0x17c2   :  { %4988 = vmatprep.subr.bf16.mxu0 %v5245_v0 }
0x17c3   :  { %v3346_v50 = vpop.f32.mrb[88].mxu1 }
0x17c4   :  { %v3347_v17 = vadd.f32 %v5923_v58, %v3346_v50  ;;  %v4978_v51 = vpop.f32.mrb[89].mxu1 }
0x17c5   :  { %v3349_v19 = vpop.f32.mrb[90].mxu1 }
0x17c6   :  { %v3356_v52 = vadd.f32 %v6170_v39, %v3347_v17  ;;  %v4979_v53 = vpop.f32.mrb[91].mxu1  ;;  %v5236_v17 = vld [vmem:[%s6427_s6 + $0x2] ss:$0 sm:$0xff] }
0x17c8   :  { %vm3357_vm2 = vcmp.gt.f32.partialorder %v3356_v52, 0.5 }
0x17c9   :  { %v4253_v12 = vsel %vm3357_vm2, 1.0, %v5245_v0 }
0x17ca   :  { %v3360_v28 = vpack.c.bf16 %v4253_v12, %v4253_v12  ;;  %v3757_v57 = vsub.f32 1.0, %v4253_v12  ;;  %v5237_v12 = vld [vmem:[%s6422_s3 + $0x30] sm:$0xff]  }
0x17cc   :  { %4985 = vmatmul.mubr.msk.bf16.vlgmr.msra.gmra.mrb[76].mxu0 %vm189_vm3, %v3360_v28  ;;  %v3758_v59 = vmul.f32 0.2, %v3757_v57 }
0x17cd   :  { %4989 = vmatpush3.bf16.msra.mxu0 %v5225_v35  ;;  %4992 = vmatprep.mubr.msk.bf16.mxu0 %vm5246_vm0, %v5245_v0 }
0x17ce   :  { %4990 = vmatprep.subr.bf16.mxu0 %v5245_v0  ;;  %v6291_v39 = vmul.f32 %v3758_v59, %v3356_v52 }
0x17d1   :  { %4991 = vmatpush3.bf16.msra.mxu0 %v5226_v42 }
0x17d2   :  { %4996 = vmatprep.subr.bf16.mxu0 %v5245_v0 }
0x17d3   :  { %v3548_v13 = vpop.f32.mrb[92].mxu1 }
0x17d4   :  { %v3549_v29 = vadd.f32 %v5936_v60, %v3548_v13  ;;  %v5014_v5 = vpop.f32.mrb[93].mxu1 }
0x17d5   :  { %v3551_v43 = vpop.f32.mrb[94].mxu1 }
0x17d6   :  { %v3558_v8 = vadd.f32 %v6175_v23, %v3549_v29  ;;  %v5015_v14 = vpop.f32.mrb[95].mxu1  ;;  %v5228_v23 = vld [vmem:[%s6426_s7 + $0x10] sm:$0xff]  }
0x17d7   :  { %v5239_v43 = vld [vmem:[%s6423_s5 + $0x30] sm:$0xff]  }
0x17d8   :  { %vm3559_vm6 = vcmp.gt.f32.partialorder %v3558_v8, 0.5  ;;  %v5241_v8 = vld [vmem:[%s6425_s4 + $0x3] ss:$0 sm:$0xff] }
0x189f   :  { %v3398_v22 = vpop.f32.mrb[76].mxu0 }
0x18a0   :  { %v3399_v47 = vadd.f32 %v5227_v15, %v3398_v22  ;;  %v4986_v16 = vpop.f32.mrb[77].mxu0 }
0x18a1   :  { %v3401_v20 = vpop.f32.mrb[78].mxu0 }
0x18a2   :  { %v3408_v54 = vadd.f32 %v5961_v63, %v3399_v47  ;;  %v4987_v55 = vpop.f32.mrb[79].mxu0  ;;  %v5229_v63 = vld [vmem:[%s6426_s7 + $0x18] sm:$0xff]  }
0x18a3   :  { %v5242_v55 = vld [vmem:[%s6426_s7 + $0x30] sm:$0xff]  }
0x18a4   :  { %vm3409_vm4 = vcmp.gt.f32.partialorder %v3408_v54, 0.5 }
0x18a5   :  { %v4255_v25 = vsel %vm3409_vm4, 1.0, %v5245_v0 }
0x18a6   :  { %v3412_v60 = vpack.c.bf16 %v4255_v25, %v4255_v25 }
0x18a8   :  { %4993 = vmatmul.mubr.msk.bf16.vlgmr.msra.gmra.mrb[80].mxu0 %vm189_vm3, %v3412_v60  ;;  %v5244_v60 = vld [vmem:[%s6427_s6 + $0x3] ss:$0 sm:$0xff] }
0x18a9   :  { %4997 = vmatpush3.bf16.msra.mxu0 %v5228_v23  ;;  %5000 = vmatprep.mubr.msk.bf16.mxu0 %vm5246_vm0, %v5245_v0 }
0x18aa   :  { %4998 = vmatprep.subr.bf16.mxu0 %v5245_v0 }
0x18ad   :  { %4999 = vmatpush3.bf16.msra.mxu0 %v5229_v63 }
0x18ae   :  { %5016 = vmatprep.subr.bf16.mxu0 %v5245_v0 }
0x197b   :  { %v3450_v37 = vpop.f32.mrb[80].mxu0 }
0x197c   :  { %v3451_v7 = vadd.f32 %v5230_v26, %v3450_v37  ;;  %v4994_v9 = vpop.f32.mrb[81].mxu0 }
0x197d   :  { %v3453_v32 = vpop.f32.mrb[82].mxu0 }
0x197e   :  { %v3460_v11 = vadd.f32 %v5490_v38, %v3451_v7  ;;  %v4995_v31 = vpop.f32.mrb[83].mxu0  ;;  %v4261_v38 = vsel %vm3559_vm6, 1.0, %v5245_v0 }
0x197f   :  { %v3562_v3 = vpack.c.bf16 %v4261_v38, %v4261_v38 }
0x1980   :  { %vm3461_vm5 = vcmp.gt.f32.partialorder %v3460_v11, 0.5 }
0x1981   :  { %v4257_v36 = vsel %vm3461_vm5, 1.0, %v5245_v0 }
0x1982   :  { %v3464_v34 = vpack.c.bf16 %v4257_v36, %v4257_v36 }
0x1984   :  { %5001 = vmatmul.mubr.msk.bf16.vlgmr.msra.gmra.mrb[8].mxu0 %vm189_vm3, %v3464_v34  ;;  %v4275_v34 = vld [vmem:[%s6428_s8] ss:$0 sm:$0xff] }
0x1985   :  { %5017 = vmatpush3.bf16.msra.mxu0 %v5231_v1  ;;  %5020 = vmatprep.mubr.msk.bf16.mxu0 %vm5246_vm0, %v5245_v0 }
0x1986   :  { %5018 = vmatprep.subr.bf16.mxu0 %v5245_v0 }
0x1989   :  { %5019 = vmatpush3.bf16.msra.mxu0 %v5232_v2 }
0x198a   :  { %5032 = vmatprep.subr.bf16.mxu0 %v5245_v0 }
0x198c   :  { %5021 = vmatmul.mubr.msk.bf16.vlgmr.msra.gmra.mrb[84].mxu0 %vm189_vm3, %v3562_v3 }
0x198d   :  { %5033 = vmatpush3.bf16.msra.mxu0 %v5233_v4  ;;  %5036 = vmatprep.mubr.msk.bf16.mxu0 %vm5246_vm0, %v5245_v0 }
0x198e   :  { %5034 = vmatprep.subr.bf16.mxu0 %v5245_v0 }
0x1991   :  { %5035 = vmatpush3.bf16.msra.mxu0 %v5234_v40 }
0x1992   :  { %5052 = vmatprep.subr.bf16.mxu0 %v5245_v0 }
0x1a5f   :  { %v3600_v41 = vpop.f32.mrb[84].mxu0 }
0x1a60   :  { %v3601_v33 = vadd.f32 %v5235_v30, %v3600_v41  ;;  %v5022_v45 = vpop.f32.mrb[85].mxu0 }
0x1a61   :  { %v3603_v56 = vpop.f32.mrb[86].mxu0 }
0x1a62   :  { %v3610_v61 = vadd.f32 %v5997_v24, %v3601_v33  ;;  %v5023_v49 = vpop.f32.mrb[87].mxu0  ;;  %v4267_v24 = vld [vmem:[%s6421_s0 + $0x3c] sm:$0xf] }
0x1a64   :  { %vm3611_vm7 = vcmp.gt.f32.partialorder %v3610_v61, 0.5 }
0x1a65   :  { %v4263_v10 = vsel %vm3611_vm7, 1.0, %v5245_v0 }
0x1a66   :  { %v3614_v50 = vpack.c.bf16 %v4263_v10, %v4263_v10 }
0x1a68   :  { %5029 = vmatmul.mubr.msk.bf16.vlgmr.msra.gmra.mrb[96].mxu1 %vm189_vm3, %v3614_v50 }
0x1a69   :  { %5041 = vmatpush3.bf16.msra.mxu1 %v5832_v18  ;;  %5048 = vmatprep.mubr.msk.bf16.mxu1 %vm5246_vm0, %v5245_v0 }
0x1a6a   :  { %5042 = vmatprep.subr.bf16.mxu1 %v5245_v0 }
0x1a6d   :  { %5043 = vmatpush3.bf16.msra.mxu1 %v5843_v48 }
0x1a6e   :  { %5044 = vmatprep.subr.bf16.mxu1 %v5245_v0 }
0x1a71   :  { %5045 = vmatpush3.bf16.msra.mxu1 %v5850_v27 }
0x1a72   :  { %5046 = vmatprep.subr.bf16.mxu1 %v5245_v0 }
0x1a75   :  { %5047 = vmatpush3.bf16.msra.mxu1 %v5857_v6 }
0x1a78   :  { %5049 = vmatmul.mubr.msk.bf16.vlgmr.msra.gmra.mrb[100].mxu1 %vm118_vm1, %v4267_v24 }
0x1b3b   :  { %v3652_v18 = vpop.f32.mrb[96].mxu1 }
0x1b3c   :  { %v3653_v48 = vadd.f32 %v5236_v17, %v3652_v18  ;;  %v5030_v51 = vpop.f32.mrb[97].mxu1 }
0x1b3d   :  { %v3655_v19 = vpop.f32.mrb[98].mxu1 }
0x1b3e   :  { %v3662_v27 = vadd.f32 %v5603_v46, %v3653_v48  ;;  %v5031_v52 = vpop.f32.mrb[99].mxu1  ;;  %v5238_v46 = vld [vmem:[%s6422_s3 + $0x38] sm:$0xff]  }
0x1b40   :  { %vm3663_vm8 = vcmp.gt.f32.partialorder %v3662_v27, 0.5 }
0x1b41   :  { %v4265_v6 = vsel %vm3663_vm8, 1.0, %v5245_v0 }
0x1b42   :  { %v3666_v53 = vpack.c.bf16 %v4265_v6, %v4265_v6 }
0x1b44   :  { %5037 = vmatmul.mubr.msk.bf16.vlgmr.msra.gmra.mrb[8].mxu0 %vm189_vm3, %v3666_v53 }
0x1b45   :  { %5053 = vmatpush3.bf16.msra.mxu0 %v5237_v12  ;;  %5056 = vmatprep.mubr.msk.bf16.mxu0 %vm5246_vm0, %v5245_v0 }
0x1b46   :  { %5054 = vmatprep.subr.bf16.mxu0 %v5245_v0 }
0x1b49   :  { %5055 = vmatpush3.bf16.msra.mxu0 %v5238_v46 }
0x1b4a   :  { %5060 = vmatprep.subr.bf16.mxu0 %v5245_v0 }
0x1b4b   :  { %v3750_v28 = vpop.f32.mrb[100].mxu1 }
0x1b4c   :  { %v3751_v57 = vadd.f32 %v5923_v58, %v3750_v28  ;;  %v5050_v59 = vpop.f32.mrb[101].mxu1  ;;  %v5240_v58 = vld [vmem:[%s6423_s5 + $0x38] sm:$0xff]  }
0x1b4d   :  { %v3753_v35 = vpop.f32.mrb[102].mxu1 }
0x1b4e   :  { %v3760_v42 = vadd.f32 %v6291_v39, %v3751_v57  ;;  %v5051_v13 = vpop.f32.mrb[103].mxu1 }
0x1b50   :  { %vm3761_vm1 = vcmp.gt.f32.partialorder %v3760_v42, 0.5 }
0x1b51   :  { %v4269_v29 = vsel %vm3761_vm1, 1.0, %v5245_v0 }
0x1b52   :  { %v3764_v5 = vpack.c.bf16 %v4269_v29, %v4269_v29 }
0x1b54   :  { %5057 = vmatmul.mubr.msk.bf16.vlgmr.msra.gmra.mrb[88].mxu0 %vm189_vm3, %v3764_v5 }
0x1b55   :  { %5061 = vmatpush3.bf16.msra.mxu0 %v5239_v43  ;;  %5064 = vmatprep.mubr.msk.bf16.mxu0 %vm5246_vm0, %v5245_v0 }
0x1b56   :  { %5062 = vmatprep.subr.bf16.mxu0 %v5245_v0 }
0x1b59   :  { %5063 = vmatpush3.bf16.msra.mxu0 %v5240_v58 }
0x1b5a   :  { %5068 = vmatprep.subr.bf16.mxu0 %v5245_v0 }
0x1c27   :  { %v3802_v39 = vpop.f32.mrb[88].mxu0 }
0x1c28   :  { %v3803_v14 = vadd.f32 %v5241_v8, %v3802_v39  ;;  %v5058_v22 = vpop.f32.mrb[89].mxu0 }
0x1c29   :  { %v3805_v15 = vpop.f32.mrb[90].mxu0 }
0x1c2a   :  { %v3812_v47 = vadd.f32 %v6075_v21, %v3803_v14  ;;  %v5059_v16 = vpop.f32.mrb[91].mxu0  ;;  %v5243_v21 = vld [vmem:[%s6426_s7 + $0x38] sm:$0xff]  }
0x1c2c   :  { %vm3813_vm9 = vcmp.gt.f32.partialorder %v3812_v47, 0.5 }
0x1c2d   :  { %v4271_v20 = vsel %vm3813_vm9, 1.0, %v5245_v0 }
0x1c2e   :  { %v3816_v54 = vpack.c.bf16 %v4271_v20, %v4271_v20 }
0x1c30   :  { %5065 = vmatmul.mubr.msk.bf16.vlgmr.msra.gmra.mrb[92].mxu0 %vm189_vm3, %v3816_v54 }
0x1c31   :  { %5069 = vmatpush3.bf16.msra.mxu0 %v5242_v55  ;;  %5072 = vmatprep.mubr.msk.bf16.mxu0 %vm5246_vm0, %v5245_v0 }
0x1c32   :  { %5070 = vmatprep.subr.bf16.mxu0 %v5245_v0 }
0x1c35   :  { %5071 = vmatpush3.bf16.msra.mxu0 %v5243_v21 }
0x1d03   :  { %v3854_v25 = vpop.f32.mrb[92].mxu0 }
0x1d04   :  { %v3855_v23 = vadd.f32 %v5244_v60, %v3854_v25  ;;  %v5066_v63 = vpop.f32.mrb[93].mxu0 }
0x1d05   :  { %v3857_v37 = vpop.f32.mrb[94].mxu0 }
0x1d06   :  { %v3864_v26 = vadd.f32 %v5671_v62, %v3855_v23  ;;  %v5067_v7 = vpop.f32.mrb[95].mxu0 }
0x1d08   :  { %vm3865_vm10 = vcmp.gt.f32.partialorder %v3864_v26, 0.5 }
0x1d09   :  { %v4273_v9 = vsel %vm3865_vm10, 1.0, %v5245_v0 }
0x1d0a   :  { %v3868_v32 = vpack.c.bf16 %v4273_v9, %v4273_v9 }
0x1d0c   :  { %5073 = vmatmul.mubr.msk.bf16.vlgmr.msra.gmra.mrb[8].mxu0 %vm189_vm3, %v3868_v32 }
0x1ddf   :  { %v3906_v11 = vpop.f32.mrb[8].mxu0 }
0x1de0   :  { %v5076_v31 = vadd.f32 %v3906_v11, %v5523_v44  ;;  %v5074_v36 = vpop.f32.mrb[9].mxu0 }
0x1de1   :  { %v3909_v1 = vpop.f32.mrb[10].mxu0 }
0x1de2   :  { %v3913_v38 = vmul.f32 0.0625, %v5076_v31  ;;  %v5075_v2 = vpop.f32.mrb[11].mxu0 }
0x1de4   :  { %v3921_v3 = vadd.f32 %v4275_v34, %v3913_v38 }
0x1de6   :  { %3922 = vst [vmem:[%s6429_s9] sm:$0xff] %v3921_v3 }

</bundles_post_ra>
